<compile_context>
chip_gen: v7x
topology: tpu7x:2x2x1
jax: 0.10.0
libtpu: 0.0.40
codegen_flags: <defaults>
</compile_context>

<pallas_src>
import functools

import jax
import jax.numpy as jnp
import numpy as np
from jax import lax
from jax.experimental import pallas as pl
from jax.experimental.pallas import tpu as pltpu

FEATURE_DIM = 64
HIDDEN_DIM = 128
NUM_LAYERS = 2
OUTPUT_DIM = 2

_LANE = 128
_SUBLANE = 8


# ---------------------------------------------------------------------------
# Pallas kernel: full forward (2 x LSTM layer + Linear) in one call
# ---------------------------------------------------------------------------
def _fused_rnn_kernel(x_ref, wih1_ref, whh1_ref, b1_ref,
                      w2_ref, b2_ref, fcw_ref, fcb_ref,
                      out_ref, xp1_ref, h2seq_ref,
                      *, seq_len, batch_pad, hidden):
    """PyTorch nn.LSTM gate order [i, f, g, o]; biases b_ih + b_hh pre-fused."""
    S, Bp, H = seq_len, batch_pad, hidden

    def sigmoid(x):
        # exp -> EUP, add -> VPU, divide -> EUP vrcp (approx) instead of VALU.
        return pl.reciprocal(1.0 + jnp.exp(-x), approx=True)

    def gate_math(gates, c):
        i_g = sigmoid(gates[:, 0 * H:1 * H])
        f_g = sigmoid(gates[:, 1 * H:2 * H])
        g_g = jnp.tanh(gates[:, 2 * H:3 * H])
        o_g = sigmoid(gates[:, 3 * H:4 * H])
        c_new = f_g * c + i_g * g_g
        h_new = o_g * jnp.tanh(c_new)
        return h_new, c_new

    # Hoisted layer-1 input projection over ALL time steps: one MXU pass,
    # result routed through VMEM scratch so it never stays vreg-live.
    xp1_ref[...] = (jnp.dot(x_ref[...], wih1_ref[...],
                            preferred_element_type=jnp.float32) + b1_ref[...])

    whh1 = whh1_ref[...]                                  # (H, 4H)  bf16
    w2 = w2_ref[...]                                      # (2H, 4H) bf16
    b2 = b2_ref[...]                                      # (1, 4H)  f32

    h1 = jnp.zeros((Bp, H), jnp.float32)
    c1 = jnp.zeros((Bp, H), jnp.float32)
    h2 = jnp.zeros((Bp, H), jnp.float32)
    c2 = jnp.zeros((Bp, H), jnp.float32)

    # Wavefront over the two layers: at wavefront step w run layer-1 time step
    # w and layer-2 time step w-1.  Both consume only wavefront-(w-1) state
    # (h1_{w-1}, c1, h2_{w-2}, c2), so their matmul + transcendental chains are
    # independent within one iteration and can overlap.
    for w in range(S + 1):                                # fully unrolled
        h1_prev = h1                                      # h1 at time w-1

        gates1 = None
        if w < S:
            gates1 = (xp1_ref[w * Bp:(w + 1) * Bp, :]
                      + jnp.dot(h1_prev.astype(jnp.bfloat16), whh1,
                                preferred_element_type=jnp.float32))

        gates2 = None
        if w >= 1:
            # Fused input-proj + recurrence: one K=2H dot per step.
            lhs2 = jnp.concatenate([h1_prev, h2], axis=1).astype(jnp.bfloat16)
            gates2 = jnp.dot(lhs2, w2,
                             preferred_element_type=jnp.float32) + b2

        if gates1 is not None:
            h1, c1 = gate_math(gates1, c1)
        if gates2 is not None:
            h2, c2 = gate_math(gates2, c2)
            h2seq_ref[(w - 1) * Bp:w * Bp, :] = h2        # bound live range

    # FC epilogue: single lane-dense (S*Bp, H) @ (H, 128) matmul.
    out_ref[...] = (jnp.dot(h2seq_ref[...].astype(jnp.bfloat16), fcw_ref[...],
                            preferred_element_type=jnp.float32)
                    + fcb_ref[...]).astype(out_ref.dtype)


# ---------------------------------------------------------------------------
# Wrapper
# ---------------------------------------------------------------------------
@jax.jit
def rnn_model_forward(x_bsf, params):
    """x_bsf: (B, S, feature_dim) -> (B, S, output_dim); matches the PyTorch module."""
    B, S, F = x_bsf.shape
    Bp = max(_SUBLANE, ((B + _SUBLANE - 1) // _SUBLANE) * _SUBLANE)
    opad = _LANE                                          # lane-dense FC output

    # Time-major, batch padded to a full sublane tile, flattened to 2D, bf16.
    x_t = jnp.transpose(x_bsf, (1, 0, 2)).astype(jnp.float32)   # (S, B, F)
    x_t = jnp.pad(x_t, ((0, 0), (0, Bp - B), (0, 0)))           # (S, Bp, F)
    x2d = x_t.reshape(S * Bp, F).astype(jnp.bfloat16)

    (w_ih1, w_hh1, b1), (w_ih2, w_hh2, b2) = params["lstm"]
    fc_w, fc_b = params["fc_w"], params["fc_b"]
    H = w_hh1.shape[0]

    # Layer-2: fuse the input projection into the recurrence -> (2H, 4H).
    w2 = jnp.concatenate([w_ih2, w_hh2], axis=0).astype(jnp.bfloat16)

    # Lane-pad the FC weight/bias so the kernel writes a dense 128-lane output.
    fcw_pad = jnp.pad(fc_w, ((0, 0), (0, opad - fc_w.shape[1]))).astype(jnp.bfloat16)
    fcb_pad = jnp.pad(fc_b, ((0, 0), (0, opad - fc_b.shape[1])))

    kernel = functools.partial(_fused_rnn_kernel,
                               seq_len=S, batch_pad=Bp, hidden=H)
    vmem = pl.BlockSpec(memory_space=pltpu.MemorySpace.VMEM)

    out = pl.pallas_call(
        kernel,
        out_shape=jax.ShapeDtypeStruct((S * Bp, opad), jnp.float32),
        in_specs=[vmem] * 8,
        out_specs=vmem,
        scratch_shapes=[
            pltpu.VMEM((S * Bp, 4 * H), jnp.float32),     # hoisted layer-1 proj
            pltpu.VMEM((S * Bp, H), jnp.float32),         # layer-2 hidden seq
        ],
    )(x2d,
      w_ih1.astype(jnp.bfloat16), w_hh1.astype(jnp.bfloat16), b1,
      w2, b2, fcw_pad, fcb_pad)

    out = out.reshape(S, Bp, opad)[:, :B, :OUTPUT_DIM]    # drop padding
    return jnp.transpose(out, (1, 0, 2))                  # (B, S, O)


# ---------------------------------------------------------------------------
# Pure-JAX f32 reference (for verification)
# ---------------------------------------------------------------------------
def lstm_layer_ref(x_tbf, w_ih, w_hh, b):
    H = w_hh.shape[0]

    def step(carry, x_t):
        h, c = carry
        gates = x_t @ w_ih + h @ w_hh + b
        i_g = jax.nn.sigmoid(gates[:, 0 * H:1 * H])
        f_g = jax.nn.sigmoid(gates[:, 1 * H:2 * H])
        g_g = jnp.tanh(gates[:, 2 * H:3 * H])
        o_g = jax.nn.sigmoid(gates[:, 3 * H:4 * H])
        c_new = f_g * c + i_g * g_g
        h_new = o_g * jnp.tanh(c_new)
        return (h_new, c_new), h_new

    B = x_tbf.shape[1]
    init = (jnp.zeros((B, H), jnp.float32), jnp.zeros((B, H), jnp.float32))
    _, hs = lax.scan(step, init, x_tbf)
    return hs


def rnn_model_ref(x_bsf, params):
    h = jnp.transpose(x_bsf, (1, 0, 2))
    for layer in range(NUM_LAYERS):
        w_ih, w_hh, b = params["lstm"][layer]
        h = lstm_layer_ref(h, w_ih, w_hh, b)
    out = h @ params["fc_w"] + params["fc_b"]
    return jnp.transpose(out, (1, 0, 2))


# ---------------------------------------------------------------------------
# Deterministic parameter init (mimics PyTorch uniform(-1/sqrt(H), 1/sqrt(H)))
# ---------------------------------------------------------------------------
def init_params(key):
    k = 1.0 / np.sqrt(HIDDEN_DIM)
    lstm = []
    in_dim = FEATURE_DIM
    for _ in range(NUM_LAYERS):
        key, k1, k2, k3, k4 = jax.random.split(key, 5)
        # Stored transposed relative to PyTorch: (in_dim, 4H) and (H, 4H).
        w_ih = jax.random.uniform(k1, (in_dim, 4 * HIDDEN_DIM), jnp.float32, -k, k)
        w_hh = jax.random.uniform(k2, (HIDDEN_DIM, 4 * HIDDEN_DIM), jnp.float32, -k, k)
        b_ih = jax.random.uniform(k3, (1, 4 * HIDDEN_DIM), jnp.float32, -k, k)
        b_hh = jax.random.uniform(k4, (1, 4 * HIDDEN_DIM), jnp.float32, -k, k)
        lstm.append((w_ih, w_hh, b_ih + b_hh))
        in_dim = HIDDEN_DIM
    key, k5, k6 = jax.random.split(key, 3)
    fc_w = jax.random.uniform(k5, (HIDDEN_DIM, OUTPUT_DIM), jnp.float32, -k, k)
    fc_b = jax.random.uniform(k6, (1, OUTPUT_DIM), jnp.float32, -k, k)
    return {"lstm": lstm, "fc_w": fc_w, "fc_b": fc_b}


if __name__ == "__main__":
    key = jax.random.PRNGKey(0)
    key, pkey, xkey = jax.random.split(key, 3)
    params = init_params(pkey)

    B, S = 2, 8
    x = jax.random.normal(xkey, (B, S, FEATURE_DIM), jnp.float32)

    out = rnn_model_forward(x, params)
    out = jax.block_until_ready(out)
    assert out.shape == (B, S, OUTPUT_DIM), out.shape

    ref = jax.block_until_ready(rnn_model_ref(x, params))
    # Tolerance relaxed vs the f32 reference because matmul operands are bf16
    # on the MXU (per perf review); elementwise gate math remains f32.
    np.testing.assert_allclose(np.asarray(out), np.asarray(ref),
                               rtol=2e-2, atol=2e-2)

    print("KERNEL_OK")
</pallas_src>

<mosaic_0001>
module attributes {stable_mosaic.version = 11 : i64} {
  func.func @_fused_rnn_kernel(%arg0: memref<64x64xbf16, #tpu.memory_space<vmem>>, %arg1: memref<64x512xbf16, #tpu.memory_space<vmem>>, %arg2: memref<128x512xbf16, #tpu.memory_space<vmem>>, %arg3: memref<1x512xf32, #tpu.memory_space<vmem>>, %arg4: memref<256x512xbf16, #tpu.memory_space<vmem>>, %arg5: memref<1x512xf32, #tpu.memory_space<vmem>>, %arg6: memref<128x128xbf16, #tpu.memory_space<vmem>>, %arg7: memref<1x128xf32, #tpu.memory_space<vmem>>, %arg8: memref<64x128xf32, #tpu.memory_space<vmem>>, %arg9: memref<64x512xf32, #tpu.memory_space<vmem>>, %arg10: memref<64x128xf32, #tpu.memory_space<vmem>>) attributes {dimension_semantics = [], scalar_prefetch = 0 : i64, scratch_operands = 2 : i64, tpu.core_type = #tpu.core_type<tc>} {
    %c0 = arith.constant 0 : index
    %c0_0 = arith.constant 0 : index
    %0 = vector.load %arg0[%c0, %c0_0] : memref<64x64xbf16, #tpu.memory_space<vmem>>, vector<64x64xbf16>
    %c0_1 = arith.constant 0 : index
    %c0_2 = arith.constant 0 : index
    %1 = vector.load %arg1[%c0_1, %c0_2] : memref<64x512xbf16, #tpu.memory_space<vmem>>, vector<64x512xbf16>
    %cst = arith.constant dense<0.000000e+00> : vector<64x512xf32>
    %2 = tpu.matmul %0, %1, %cst {dimension_numbers = #tpu.dot_dimension_numbers<[1], [0], [0], [1], [0, 0, 1, 1], [], []>} : vector<64x64xbf16>, vector<64x512xbf16>, vector<64x512xf32> -> vector<64x512xf32>
    %c0_3 = arith.constant 0 : index
    %c0_4 = arith.constant 0 : index
    %3 = vector.load %arg3[%c0_3, %c0_4] : memref<1x512xf32, #tpu.memory_space<vmem>>, vector<1x512xf32>
    %4 = vector.broadcast %3 : vector<1x512xf32> to vector<64x512xf32>
    %5 = arith.addf %2, %4 : vector<64x512xf32>
    %c0_5 = arith.constant 0 : index
    %c0_6 = arith.constant 0 : index
    %6 = vector.load %arg9[%c0_5, %c0_6] : memref<64x512xf32, #tpu.memory_space<vmem>>, vector<64x512xf32>
    tpu.vector_store %arg9[%c0_5, %c0_6], %5 {strides = array<i32>} : memref<64x512xf32, #tpu.memory_space<vmem>>, vector<64x512xf32>,
    %c0_7 = arith.constant 0 : index
    %c0_8 = arith.constant 0 : index
    %7 = vector.load %arg2[%c0_7, %c0_8] : memref<128x512xbf16, #tpu.memory_space<vmem>>, vector<128x512xbf16>
    %c0_9 = arith.constant 0 : index
    %c0_10 = arith.constant 0 : index
    %8 = vector.load %arg4[%c0_9, %c0_10] : memref<256x512xbf16, #tpu.memory_space<vmem>>, vector<256x512xbf16>
    %c0_11 = arith.constant 0 : index
    %c0_12 = arith.constant 0 : index
    %9 = vector.load %arg5[%c0_11, %c0_12] : memref<1x512xf32, #tpu.memory_space<vmem>>, vector<1x512xf32>
    %cst_13 = arith.constant 0.000000e+00 : f32
    %10 = vector.broadcast %cst_13 : f32 to vector<8x128xf32>
    %cst_14 = arith.constant 0.000000e+00 : f32
    %11 = vector.broadcast %cst_14 : f32 to vector<8x128xf32>
    %cst_15 = arith.constant 0.000000e+00 : f32
    %12 = vector.broadcast %cst_15 : f32 to vector<8x128xf32>
    %cst_16 = arith.constant 0.000000e+00 : f32
    %13 = vector.broadcast %cst_16 : f32 to vector<8x128xf32>
    %c0_17 = arith.constant 0 : index
    %c0_18 = arith.constant 0 : index
    %14 = vector.load %arg9[%c0_17, %c0_18] : memref<64x512xf32, #tpu.memory_space<vmem>>, vector<8x512xf32>
    %15 = arith.truncf %10 : vector<8x128xf32> to vector<8x128xbf16>
    %cst_19 = arith.constant dense<0.000000e+00> : vector<8x512xf32>
    %16 = tpu.matmul %15, %7, %cst_19 {dimension_numbers = #tpu.dot_dimension_numbers<[1], [0], [0], [1], [0, 0, 1, 1], [], []>} : vector<8x128xbf16>, vector<128x512xbf16>, vector<8x512xf32> -> vector<8x512xf32>
    %17 = arith.addf %14, %16 : vector<8x512xf32>
    %18 = vector.extract_strided_slice %17 {offsets = [0, 0], sizes = [8, 128], strides = [1, 1]} : vector<8x512xf32> to vector<8x128xf32>
    %cst_20 = arith.constant 0.000000e+00 : f32
    %19 = vector.broadcast %cst_20 : f32 to vector<8x128xf32>
    %20 = arith.subf %19, %18 : vector<8x128xf32>
    %21 = math.exp %20 : vector<8x128xf32>
    %cst_21 = arith.constant 1.000000e+00 : f32
    %22 = vector.broadcast %cst_21 : f32 to vector<8x128xf32>
    %23 = arith.addf %22, %21 : vector<8x128xf32>
    %24 = tpu.reciprocal %23 {approx = true} : vector<8x128xf32> -> vector<8x128xf32>
    %25 = vector.extract_strided_slice %17 {offsets = [0, 128], sizes = [8, 128], strides = [1, 1]} : vector<8x512xf32> to vector<8x128xf32>
    %cst_22 = arith.constant 0.000000e+00 : f32
    %26 = vector.broadcast %cst_22 : f32 to vector<8x128xf32>
    %27 = arith.subf %26, %25 : vector<8x128xf32>
    %28 = math.exp %27 : vector<8x128xf32>
    %cst_23 = arith.constant 1.000000e+00 : f32
    %29 = vector.broadcast %cst_23 : f32 to vector<8x128xf32>
    %30 = arith.addf %29, %28 : vector<8x128xf32>
    %31 = tpu.reciprocal %30 {approx = true} : vector<8x128xf32> -> vector<8x128xf32>
    %32 = vector.extract_strided_slice %17 {offsets = [0, 256], sizes = [8, 128], strides = [1, 1]} : vector<8x512xf32> to vector<8x128xf32>
    %33 = math.tanh %32 : vector<8x128xf32>
    %34 = vector.extract_strided_slice %17 {offsets = [0, 384], sizes = [8, 128], strides = [1, 1]} : vector<8x512xf32> to vector<8x128xf32>
    %cst_24 = arith.constant 0.000000e+00 : f32
    %35 = vector.broadcast %cst_24 : f32 to vector<8x128xf32>
    %36 = arith.subf %35, %34 : vector<8x128xf32>
    %37 = math.exp %36 : vector<8x128xf32>
    %cst_25 = arith.constant 1.000000e+00 : f32
    %38 = vector.broadcast %cst_25 : f32 to vector<8x128xf32>
    %39 = arith.addf %38, %37 : vector<8x128xf32>
    %40 = tpu.reciprocal %39 {approx = true} : vector<8x128xf32> -> vector<8x128xf32>
    %41 = arith.mulf %31, %11 : vector<8x128xf32>
    %42 = arith.mulf %24, %33 : vector<8x128xf32>
    %43 = arith.addf %41, %42 : vector<8x128xf32>
    %44 = math.tanh %43 : vector<8x128xf32>
    %45 = arith.mulf %40, %44 : vector<8x128xf32>
    %c8 = arith.constant 8 : index
    %c0_26 = arith.constant 0 : index
    %46 = vector.load %arg9[%c8, %c0_26] : memref<64x512xf32, #tpu.memory_space<vmem>>, vector<8x512xf32>
    %47 = arith.truncf %45 : vector<8x128xf32> to vector<8x128xbf16>
    %cst_27 = arith.constant dense<0.000000e+00> : vector<8x512xf32>
    %48 = tpu.matmul %47, %7, %cst_27 {dimension_numbers = #tpu.dot_dimension_numbers<[1], [0], [0], [1], [0, 0, 1, 1], [], []>} : vector<8x128xbf16>, vector<128x512xbf16>, vector<8x512xf32> -> vector<8x512xf32>
    %49 = arith.addf %46, %48 : vector<8x512xf32>
    %50 = tpu.concatenate %45, %12 in 1 : vector<8x128xf32>, vector<8x128xf32> -> vector<8x256xf32>
    %51 = arith.truncf %50 : vector<8x256xf32> to vector<8x256xbf16>
    %cst_28 = arith.constant dense<0.000000e+00> : vector<8x512xf32>
    %52 = tpu.matmul %51, %8, %cst_28 {dimension_numbers = #tpu.dot_dimension_numbers<[1], [0], [0], [1], [0, 0, 1, 1], [], []>} : vector<8x256xbf16>, vector<256x512xbf16>, vector<8x512xf32> -> vector<8x512xf32>
    %53 = vector.broadcast %9 : vector<1x512xf32> to vector<8x512xf32>
    %54 = arith.addf %52, %53 : vector<8x512xf32>
    %55 = vector.extract_strided_slice %49 {offsets = [0, 0], sizes = [8, 128], strides = [1, 1]} : vector<8x512xf32> to vector<8x128xf32>
    %cst_29 = arith.constant 0.000000e+00 : f32
    %56 = vector.broadcast %cst_29 : f32 to vector<8x128xf32>
    %57 = arith.subf %56, %55 : vector<8x128xf32>
    %58 = math.exp %57 : vector<8x128xf32>
    %cst_30 = arith.constant 1.000000e+00 : f32
    %59 = vector.broadcast %cst_30 : f32 to vector<8x128xf32>
    %60 = arith.addf %59, %58 : vector<8x128xf32>
    %61 = tpu.reciprocal %60 {approx = true} : vector<8x128xf32> -> vector<8x128xf32>
    %62 = vector.extract_strided_slice %49 {offsets = [0, 128], sizes = [8, 128], strides = [1, 1]} : vector<8x512xf32> to vector<8x128xf32>
    %cst_31 = arith.constant 0.000000e+00 : f32
    %63 = vector.broadcast %cst_31 : f32 to vector<8x128xf32>
    %64 = arith.subf %63, %62 : vector<8x128xf32>
    %65 = math.exp %64 : vector<8x128xf32>
    %cst_32 = arith.constant 1.000000e+00 : f32
    %66 = vector.broadcast %cst_32 : f32 to vector<8x128xf32>
    %67 = arith.addf %66, %65 : vector<8x128xf32>
    %68 = tpu.reciprocal %67 {approx = true} : vector<8x128xf32> -> vector<8x128xf32>
    %69 = vector.extract_strided_slice %49 {offsets = [0, 256], sizes = [8, 128], strides = [1, 1]} : vector<8x512xf32> to vector<8x128xf32>
    %70 = math.tanh %69 : vector<8x128xf32>
    %71 = vector.extract_strided_slice %49 {offsets = [0, 384], sizes = [8, 128], strides = [1, 1]} : vector<8x512xf32> to vector<8x128xf32>
    %cst_33 = arith.constant 0.000000e+00 : f32
    %72 = vector.broadcast %cst_33 : f32 to vector<8x128xf32>
    %73 = arith.subf %72, %71 : vector<8x128xf32>
    %74 = math.exp %73 : vector<8x128xf32>
    %cst_34 = arith.constant 1.000000e+00 : f32
    %75 = vector.broadcast %cst_34 : f32 to vector<8x128xf32>
    %76 = arith.addf %75, %74 : vector<8x128xf32>
    %77 = tpu.reciprocal %76 {approx = true} : vector<8x128xf32> -> vector<8x128xf32>
    %78 = arith.mulf %68, %43 : vector<8x128xf32>
    %79 = arith.mulf %61, %70 : vector<8x128xf32>
    %80 = arith.addf %78, %79 : vector<8x128xf32>
    %81 = math.tanh %80 : vector<8x128xf32>
    %82 = arith.mulf %77, %81 : vector<8x128xf32>
    %83 = vector.extract_strided_slice %54 {offsets = [0, 0], sizes = [8, 128], strides = [1, 1]} : vector<8x512xf32> to vector<8x128xf32>
    %cst_35 = arith.constant 0.000000e+00 : f32
    %84 = vector.broadcast %cst_35 : f32 to vector<8x128xf32>
    %85 = arith.subf %84, %83 : vector<8x128xf32>
    %86 = math.exp %85 : vector<8x128xf32>
    %cst_36 = arith.constant 1.000000e+00 : f32
    %87 = vector.broadcast %cst_36 : f32 to vector<8x128xf32>
    %88 = arith.addf %87, %86 : vector<8x128xf32>
    %89 = tpu.reciprocal %88 {approx = true} : vector<8x128xf32> -> vector<8x128xf32>
    %90 = vector.extract_strided_slice %54 {offsets = [0, 128], sizes = [8, 128], strides = [1, 1]} : vector<8x512xf32> to vector<8x128xf32>
    %cst_37 = arith.constant 0.000000e+00 : f32
    %91 = vector.broadcast %cst_37 : f32 to vector<8x128xf32>
    %92 = arith.subf %91, %90 : vector<8x128xf32>
    %93 = math.exp %92 : vector<8x128xf32>
    %cst_38 = arith.constant 1.000000e+00 : f32
    %94 = vector.broadcast %cst_38 : f32 to vector<8x128xf32>
    %95 = arith.addf %94, %93 : vector<8x128xf32>
    %96 = tpu.reciprocal %95 {approx = true} : vector<8x128xf32> -> vector<8x128xf32>
    %97 = vector.extract_strided_slice %54 {offsets = [0, 256], sizes = [8, 128], strides = [1, 1]} : vector<8x512xf32> to vector<8x128xf32>
    %98 = math.tanh %97 : vector<8x128xf32>
    %99 = vector.extract_strided_slice %54 {offsets = [0, 384], sizes = [8, 128], strides = [1, 1]} : vector<8x512xf32> to vector<8x128xf32>
    %cst_39 = arith.constant 0.000000e+00 : f32
    %100 = vector.broadcast %cst_39 : f32 to vector<8x128xf32>
    %101 = arith.subf %100, %99 : vector<8x128xf32>
    %102 = math.exp %101 : vector<8x128xf32>
    %cst_40 = arith.constant 1.000000e+00 : f32
    %103 = vector.broadcast %cst_40 : f32 to vector<8x128xf32>
    %104 = arith.addf %103, %102 : vector<8x128xf32>
    %105 = tpu.reciprocal %104 {approx = true} : vector<8x128xf32> -> vector<8x128xf32>
    %106 = arith.mulf %96, %13 : vector<8x128xf32>
    %107 = arith.mulf %89, %98 : vector<8x128xf32>
    %108 = arith.addf %106, %107 : vector<8x128xf32>
    %109 = math.tanh %108 : vector<8x128xf32>
    %110 = arith.mulf %105, %109 : vector<8x128xf32>
    %c0_41 = arith.constant 0 : index
    %c0_42 = arith.constant 0 : index
    %111 = vector.load %arg10[%c0_41, %c0_42] : memref<64x128xf32, #tpu.memory_space<vmem>>, vector<8x128xf32>
    tpu.vector_store %arg10[%c0_41, %c0_42], %110 {strides = array<i32>} : memref<64x128xf32, #tpu.memory_space<vmem>>, vector<8x128xf32>,
    %c16 = arith.constant 16 : index
    %c0_43 = arith.constant 0 : index
    %112 = vector.load %arg9[%c16, %c0_43] : memref<64x512xf32, #tpu.memory_space<vmem>>, vector<8x512xf32>
    %113 = arith.truncf %82 : vector<8x128xf32> to vector<8x128xbf16>
    %cst_44 = arith.constant dense<0.000000e+00> : vector<8x512xf32>
    %114 = tpu.matmul %113, %7, %cst_44 {dimension_numbers = #tpu.dot_dimension_numbers<[1], [0], [0], [1], [0, 0, 1, 1], [], []>} : vector<8x128xbf16>, vector<128x512xbf16>, vector<8x512xf32> -> vector<8x512xf32>
    %115 = arith.addf %112, %114 : vector<8x512xf32>
    %116 = tpu.concatenate %82, %110 in 1 : vector<8x128xf32>, vector<8x128xf32> -> vector<8x256xf32>
    %117 = arith.truncf %116 : vector<8x256xf32> to vector<8x256xbf16>
    %cst_45 = arith.constant dense<0.000000e+00> : vector<8x512xf32>
    %118 = tpu.matmul %117, %8, %cst_45 {dimension_numbers = #tpu.dot_dimension_numbers<[1], [0], [0], [1], [0, 0, 1, 1], [], []>} : vector<8x256xbf16>, vector<256x512xbf16>, vector<8x512xf32> -> vector<8x512xf32>
    %119 = vector.broadcast %9 : vector<1x512xf32> to vector<8x512xf32>
    %120 = arith.addf %118, %119 : vector<8x512xf32>
    %121 = vector.extract_strided_slice %115 {offsets = [0, 0], sizes = [8, 128], strides = [1, 1]} : vector<8x512xf32> to vector<8x128xf32>
    %cst_46 = arith.constant 0.000000e+00 : f32
    %122 = vector.broadcast %cst_46 : f32 to vector<8x128xf32>
    %123 = arith.subf %122, %121 : vector<8x128xf32>
    %124 = math.exp %123 : vector<8x128xf32>
    %cst_47 = arith.constant 1.000000e+00 : f32
    %125 = vector.broadcast %cst_47 : f32 to vector<8x128xf32>
    %126 = arith.addf %125, %124 : vector<8x128xf32>
    %127 = tpu.reciprocal %126 {approx = true} : vector<8x128xf32> -> vector<8x128xf32>
    %128 = vector.extract_strided_slice %115 {offsets = [0, 128], sizes = [8, 128], strides = [1, 1]} : vector<8x512xf32> to vector<8x128xf32>
    %cst_48 = arith.constant 0.000000e+00 : f32
    %129 = vector.broadcast %cst_48 : f32 to vector<8x128xf32>
    %130 = arith.subf %129, %128 : vector<8x128xf32>
    %131 = math.exp %130 : vector<8x128xf32>
    %cst_49 = arith.constant 1.000000e+00 : f32
    %132 = vector.broadcast %cst_49 : f32 to vector<8x128xf32>
    %133 = arith.addf %132, %131 : vector<8x128xf32>
    %134 = tpu.reciprocal %133 {approx = true} : vector<8x128xf32> -> vector<8x128xf32>
    %135 = vector.extract_strided_slice %115 {offsets = [0, 256], sizes = [8, 128], strides = [1, 1]} : vector<8x512xf32> to vector<8x128xf32>
    %136 = math.tanh %135 : vector<8x128xf32>
    %137 = vector.extract_strided_slice %115 {offsets = [0, 384], sizes = [8, 128], strides = [1, 1]} : vector<8x512xf32> to vector<8x128xf32>
    %cst_50 = arith.constant 0.000000e+00 : f32
    %138 = vector.broadcast %cst_50 : f32 to vector<8x128xf32>
    %139 = arith.subf %138, %137 : vector<8x128xf32>
    %140 = math.exp %139 : vector<8x128xf32>
    %cst_51 = arith.constant 1.000000e+00 : f32
    %141 = vector.broadcast %cst_51 : f32 to vector<8x128xf32>
    %142 = arith.addf %141, %140 : vector<8x128xf32>
    %143 = tpu.reciprocal %142 {approx = true} : vector<8x128xf32> -> vector<8x128xf32>
    %144 = arith.mulf %134, %80 : vector<8x128xf32>
    %145 = arith.mulf %127, %136 : vector<8x128xf32>
    %146 = arith.addf %144, %145 : vector<8x128xf32>
    %147 = math.tanh %146 : vector<8x128xf32>
    %148 = arith.mulf %143, %147 : vector<8x128xf32>
    %149 = vector.extract_strided_slice %120 {offsets = [0, 0], sizes = [8, 128], strides = [1, 1]} : vector<8x512xf32> to vector<8x128xf32>
    %cst_52 = arith.constant 0.000000e+00 : f32
    %150 = vector.broadcast %cst_52 : f32 to vector<8x128xf32>
    %151 = arith.subf %150, %149 : vector<8x128xf32>
    %152 = math.exp %151 : vector<8x128xf32>
    %cst_53 = arith.constant 1.000000e+00 : f32
    %153 = vector.broadcast %cst_53 : f32 to vector<8x128xf32>
    %154 = arith.addf %153, %152 : vector<8x128xf32>
    %155 = tpu.reciprocal %154 {approx = true} : vector<8x128xf32> -> vector<8x128xf32>
    %156 = vector.extract_strided_slice %120 {offsets = [0, 128], sizes = [8, 128], strides = [1, 1]} : vector<8x512xf32> to vector<8x128xf32>
    %cst_54 = arith.constant 0.000000e+00 : f32
    %157 = vector.broadcast %cst_54 : f32 to vector<8x128xf32>
    %158 = arith.subf %157, %156 : vector<8x128xf32>
    %159 = math.exp %158 : vector<8x128xf32>
    %cst_55 = arith.constant 1.000000e+00 : f32
    %160 = vector.broadcast %cst_55 : f32 to vector<8x128xf32>
    %161 = arith.addf %160, %159 : vector<8x128xf32>
    %162 = tpu.reciprocal %161 {approx = true} : vector<8x128xf32> -> vector<8x128xf32>
    %163 = vector.extract_strided_slice %120 {offsets = [0, 256], sizes = [8, 128], strides = [1, 1]} : vector<8x512xf32> to vector<8x128xf32>
    %164 = math.tanh %163 : vector<8x128xf32>
    %165 = vector.extract_strided_slice %120 {offsets = [0, 384], sizes = [8, 128], strides = [1, 1]} : vector<8x512xf32> to vector<8x128xf32>
    %cst_56 = arith.constant 0.000000e+00 : f32
    %166 = vector.broadcast %cst_56 : f32 to vector<8x128xf32>
    %167 = arith.subf %166, %165 : vector<8x128xf32>
    %168 = math.exp %167 : vector<8x128xf32>
    %cst_57 = arith.constant 1.000000e+00 : f32
    %169 = vector.broadcast %cst_57 : f32 to vector<8x128xf32>
    %170 = arith.addf %169, %168 : vector<8x128xf32>
    %171 = tpu.reciprocal %170 {approx = true} : vector<8x128xf32> -> vector<8x128xf32>
    %172 = arith.mulf %162, %108 : vector<8x128xf32>
    %173 = arith.mulf %155, %164 : vector<8x128xf32>
    %174 = arith.addf %172, %173 : vector<8x128xf32>
    %175 = math.tanh %174 : vector<8x128xf32>
    %176 = arith.mulf %171, %175 : vector<8x128xf32>
    %c8_58 = arith.constant 8 : index
    %c0_59 = arith.constant 0 : index
    %177 = vector.load %arg10[%c8_58, %c0_59] : memref<64x128xf32, #tpu.memory_space<vmem>>, vector<8x128xf32>
    tpu.vector_store %arg10[%c8_58, %c0_59], %176 {strides = array<i32>} : memref<64x128xf32, #tpu.memory_space<vmem>>, vector<8x128xf32>,
    %c24 = arith.constant 24 : index
    %c0_60 = arith.constant 0 : index
    %178 = vector.load %arg9[%c24, %c0_60] : memref<64x512xf32, #tpu.memory_space<vmem>>, vector<8x512xf32>
    %179 = arith.truncf %148 : vector<8x128xf32> to vector<8x128xbf16>
    %cst_61 = arith.constant dense<0.000000e+00> : vector<8x512xf32>
    %180 = tpu.matmul %179, %7, %cst_61 {dimension_numbers = #tpu.dot_dimension_numbers<[1], [0], [0], [1], [0, 0, 1, 1], [], []>} : vector<8x128xbf16>, vector<128x512xbf16>, vector<8x512xf32> -> vector<8x512xf32>
    %181 = arith.addf %178, %180 : vector<8x512xf32>
    %182 = tpu.concatenate %148, %176 in 1 : vector<8x128xf32>, vector<8x128xf32> -> vector<8x256xf32>
    %183 = arith.truncf %182 : vector<8x256xf32> to vector<8x256xbf16>
    %cst_62 = arith.constant dense<0.000000e+00> : vector<8x512xf32>
    %184 = tpu.matmul %183, %8, %cst_62 {dimension_numbers = #tpu.dot_dimension_numbers<[1], [0], [0], [1], [0, 0, 1, 1], [], []>} : vector<8x256xbf16>, vector<256x512xbf16>, vector<8x512xf32> -> vector<8x512xf32>
    %185 = vector.broadcast %9 : vector<1x512xf32> to vector<8x512xf32>
    %186 = arith.addf %184, %185 : vector<8x512xf32>
    %187 = vector.extract_strided_slice %181 {offsets = [0, 0], sizes = [8, 128], strides = [1, 1]} : vector<8x512xf32> to vector<8x128xf32>
    %cst_63 = arith.constant 0.000000e+00 : f32
    %188 = vector.broadcast %cst_63 : f32 to vector<8x128xf32>
    %189 = arith.subf %188, %187 : vector<8x128xf32>
    %190 = math.exp %189 : vector<8x128xf32>
    %cst_64 = arith.constant 1.000000e+00 : f32
    %191 = vector.broadcast %cst_64 : f32 to vector<8x128xf32>
    %192 = arith.addf %191, %190 : vector<8x128xf32>
    %193 = tpu.reciprocal %192 {approx = true} : vector<8x128xf32> -> vector<8x128xf32>
    %194 = vector.extract_strided_slice %181 {offsets = [0, 128], sizes = [8, 128], strides = [1, 1]} : vector<8x512xf32> to vector<8x128xf32>
    %cst_65 = arith.constant 0.000000e+00 : f32
    %195 = vector.broadcast %cst_65 : f32 to vector<8x128xf32>
    %196 = arith.subf %195, %194 : vector<8x128xf32>
    %197 = math.exp %196 : vector<8x128xf32>
    %cst_66 = arith.constant 1.000000e+00 : f32
    %198 = vector.broadcast %cst_66 : f32 to vector<8x128xf32>
    %199 = arith.addf %198, %197 : vector<8x128xf32>
    %200 = tpu.reciprocal %199 {approx = true} : vector<8x128xf32> -> vector<8x128xf32>
    %201 = vector.extract_strided_slice %181 {offsets = [0, 256], sizes = [8, 128], strides = [1, 1]} : vector<8x512xf32> to vector<8x128xf32>
    %202 = math.tanh %201 : vector<8x128xf32>
    %203 = vector.extract_strided_slice %181 {offsets = [0, 384], sizes = [8, 128], strides = [1, 1]} : vector<8x512xf32> to vector<8x128xf32>
    %cst_67 = arith.constant 0.000000e+00 : f32
    %204 = vector.broadcast %cst_67 : f32 to vector<8x128xf32>
    %205 = arith.subf %204, %203 : vector<8x128xf32>
    %206 = math.exp %205 : vector<8x128xf32>
    %cst_68 = arith.constant 1.000000e+00 : f32
    %207 = vector.broadcast %cst_68 : f32 to vector<8x128xf32>
    %208 = arith.addf %207, %206 : vector<8x128xf32>
    %209 = tpu.reciprocal %208 {approx = true} : vector<8x128xf32> -> vector<8x128xf32>
    %210 = arith.mulf %200, %146 : vector<8x128xf32>
    %211 = arith.mulf %193, %202 : vector<8x128xf32>
    %212 = arith.addf %210, %211 : vector<8x128xf32>
    %213 = math.tanh %212 : vector<8x128xf32>
    %214 = arith.mulf %209, %213 : vector<8x128xf32>
    %215 = vector.extract_strided_slice %186 {offsets = [0, 0], sizes = [8, 128], strides = [1, 1]} : vector<8x512xf32> to vector<8x128xf32>
    %cst_69 = arith.constant 0.000000e+00 : f32
    %216 = vector.broadcast %cst_69 : f32 to vector<8x128xf32>
    %217 = arith.subf %216, %215 : vector<8x128xf32>
    %218 = math.exp %217 : vector<8x128xf32>
    %cst_70 = arith.constant 1.000000e+00 : f32
    %219 = vector.broadcast %cst_70 : f32 to vector<8x128xf32>
    %220 = arith.addf %219, %218 : vector<8x128xf32>
    %221 = tpu.reciprocal %220 {approx = true} : vector<8x128xf32> -> vector<8x128xf32>
    %222 = vector.extract_strided_slice %186 {offsets = [0, 128], sizes = [8, 128], strides = [1, 1]} : vector<8x512xf32> to vector<8x128xf32>
    %cst_71 = arith.constant 0.000000e+00 : f32
    %223 = vector.broadcast %cst_71 : f32 to vector<8x128xf32>
    %224 = arith.subf %223, %222 : vector<8x128xf32>
    %225 = math.exp %224 : vector<8x128xf32>
    %cst_72 = arith.constant 1.000000e+00 : f32
    %226 = vector.broadcast %cst_72 : f32 to vector<8x128xf32>
    %227 = arith.addf %226, %225 : vector<8x128xf32>
    %228 = tpu.reciprocal %227 {approx = true} : vector<8x128xf32> -> vector<8x128xf32>
    %229 = vector.extract_strided_slice %186 {offsets = [0, 256], sizes = [8, 128], strides = [1, 1]} : vector<8x512xf32> to vector<8x128xf32>
    %230 = math.tanh %229 : vector<8x128xf32>
    %231 = vector.extract_strided_slice %186 {offsets = [0, 384], sizes = [8, 128], strides = [1, 1]} : vector<8x512xf32> to vector<8x128xf32>
    %cst_73 = arith.constant 0.000000e+00 : f32
    %232 = vector.broadcast %cst_73 : f32 to vector<8x128xf32>
    %233 = arith.subf %232, %231 : vector<8x128xf32>
    %234 = math.exp %233 : vector<8x128xf32>
    %cst_74 = arith.constant 1.000000e+00 : f32
    %235 = vector.broadcast %cst_74 : f32 to vector<8x128xf32>
    %236 = arith.addf %235, %234 : vector<8x128xf32>
    %237 = tpu.reciprocal %236 {approx = true} : vector<8x128xf32> -> vector<8x128xf32>
    %238 = arith.mulf %228, %174 : vector<8x128xf32>
    %239 = arith.mulf %221, %230 : vector<8x128xf32>
    %240 = arith.addf %238, %239 : vector<8x128xf32>
    %241 = math.tanh %240 : vector<8x128xf32>
    %242 = arith.mulf %237, %241 : vector<8x128xf32>
    %c16_75 = arith.constant 16 : index
    %c0_76 = arith.constant 0 : index
    %243 = vector.load %arg10[%c16_75, %c0_76] : memref<64x128xf32, #tpu.memory_space<vmem>>, vector<8x128xf32>
    tpu.vector_store %arg10[%c16_75, %c0_76], %242 {strides = array<i32>} : memref<64x128xf32, #tpu.memory_space<vmem>>, vector<8x128xf32>,
    %c32 = arith.constant 32 : index
    %c0_77 = arith.constant 0 : index
    %244 = vector.load %arg9[%c32, %c0_77] : memref<64x512xf32, #tpu.memory_space<vmem>>, vector<8x512xf32>
    %245 = arith.truncf %214 : vector<8x128xf32> to vector<8x128xbf16>
    %cst_78 = arith.constant dense<0.000000e+00> : vector<8x512xf32>
    %246 = tpu.matmul %245, %7, %cst_78 {dimension_numbers = #tpu.dot_dimension_numbers<[1], [0], [0], [1], [0, 0, 1, 1], [], []>} : vector<8x128xbf16>, vector<128x512xbf16>, vector<8x512xf32> -> vector<8x512xf32>
    %247 = arith.addf %244, %246 : vector<8x512xf32>
    %248 = tpu.concatenate %214, %242 in 1 : vector<8x128xf32>, vector<8x128xf32> -> vector<8x256xf32>
    %249 = arith.truncf %248 : vector<8x256xf32> to vector<8x256xbf16>
    %cst_79 = arith.constant dense<0.000000e+00> : vector<8x512xf32>
    %250 = tpu.matmul %249, %8, %cst_79 {dimension_numbers = #tpu.dot_dimension_numbers<[1], [0], [0], [1], [0, 0, 1, 1], [], []>} : vector<8x256xbf16>, vector<256x512xbf16>, vector<8x512xf32> -> vector<8x512xf32>
    %251 = vector.broadcast %9 : vector<1x512xf32> to vector<8x512xf32>
    %252 = arith.addf %250, %251 : vector<8x512xf32>
    %253 = vector.extract_strided_slice %247 {offsets = [0, 0], sizes = [8, 128], strides = [1, 1]} : vector<8x512xf32> to vector<8x128xf32>
    %cst_80 = arith.constant 0.000000e+00 : f32
    %254 = vector.broadcast %cst_80 : f32 to vector<8x128xf32>
    %255 = arith.subf %254, %253 : vector<8x128xf32>
    %256 = math.exp %255 : vector<8x128xf32>
    %cst_81 = arith.constant 1.000000e+00 : f32
    %257 = vector.broadcast %cst_81 : f32 to vector<8x128xf32>
    %258 = arith.addf %257, %256 : vector<8x128xf32>
    %259 = tpu.reciprocal %258 {approx = true} : vector<8x128xf32> -> vector<8x128xf32>
    %260 = vector.extract_strided_slice %247 {offsets = [0, 128], sizes = [8, 128], strides = [1, 1]} : vector<8x512xf32> to vector<8x128xf32>
    %cst_82 = arith.constant 0.000000e+00 : f32
    %261 = vector.broadcast %cst_82 : f32 to vector<8x128xf32>
    %262 = arith.subf %261, %260 : vector<8x128xf32>
    %263 = math.exp %262 : vector<8x128xf32>
    %cst_83 = arith.constant 1.000000e+00 : f32
    %264 = vector.broadcast %cst_83 : f32 to vector<8x128xf32>
    %265 = arith.addf %264, %263 : vector<8x128xf32>
    %266 = tpu.reciprocal %265 {approx = true} : vector<8x128xf32> -> vector<8x128xf32>
    %267 = vector.extract_strided_slice %247 {offsets = [0, 256], sizes = [8, 128], strides = [1, 1]} : vector<8x512xf32> to vector<8x128xf32>
    %268 = math.tanh %267 : vector<8x128xf32>
    %269 = vector.extract_strided_slice %247 {offsets = [0, 384], sizes = [8, 128], strides = [1, 1]} : vector<8x512xf32> to vector<8x128xf32>
    %cst_84 = arith.constant 0.000000e+00 : f32
    %270 = vector.broadcast %cst_84 : f32 to vector<8x128xf32>
    %271 = arith.subf %270, %269 : vector<8x128xf32>
    %272 = math.exp %271 : vector<8x128xf32>
    %cst_85 = arith.constant 1.000000e+00 : f32
    %273 = vector.broadcast %cst_85 : f32 to vector<8x128xf32>
    %274 = arith.addf %273, %272 : vector<8x128xf32>
    %275 = tpu.reciprocal %274 {approx = true} : vector<8x128xf32> -> vector<8x128xf32>
    %276 = arith.mulf %266, %212 : vector<8x128xf32>
    %277 = arith.mulf %259, %268 : vector<8x128xf32>
    %278 = arith.addf %276, %277 : vector<8x128xf32>
    %279 = math.tanh %278 : vector<8x128xf32>
    %280 = arith.mulf %275, %279 : vector<8x128xf32>
    %281 = vector.extract_strided_slice %252 {offsets = [0, 0], sizes = [8, 128], strides = [1, 1]} : vector<8x512xf32> to vector<8x128xf32>
    %cst_86 = arith.constant 0.000000e+00 : f32
    %282 = vector.broadcast %cst_86 : f32 to vector<8x128xf32>
    %283 = arith.subf %282, %281 : vector<8x128xf32>
    %284 = math.exp %283 : vector<8x128xf32>
    %cst_87 = arith.constant 1.000000e+00 : f32
    %285 = vector.broadcast %cst_87 : f32 to vector<8x128xf32>
    %286 = arith.addf %285, %284 : vector<8x128xf32>
    %287 = tpu.reciprocal %286 {approx = true} : vector<8x128xf32> -> vector<8x128xf32>
    %288 = vector.extract_strided_slice %252 {offsets = [0, 128], sizes = [8, 128], strides = [1, 1]} : vector<8x512xf32> to vector<8x128xf32>
    %cst_88 = arith.constant 0.000000e+00 : f32
    %289 = vector.broadcast %cst_88 : f32 to vector<8x128xf32>
    %290 = arith.subf %289, %288 : vector<8x128xf32>
    %291 = math.exp %290 : vector<8x128xf32>
    %cst_89 = arith.constant 1.000000e+00 : f32
    %292 = vector.broadcast %cst_89 : f32 to vector<8x128xf32>
    %293 = arith.addf %292, %291 : vector<8x128xf32>
    %294 = tpu.reciprocal %293 {approx = true} : vector<8x128xf32> -> vector<8x128xf32>
    %295 = vector.extract_strided_slice %252 {offsets = [0, 256], sizes = [8, 128], strides = [1, 1]} : vector<8x512xf32> to vector<8x128xf32>
    %296 = math.tanh %295 : vector<8x128xf32>
    %297 = vector.extract_strided_slice %252 {offsets = [0, 384], sizes = [8, 128], strides = [1, 1]} : vector<8x512xf32> to vector<8x128xf32>
    %cst_90 = arith.constant 0.000000e+00 : f32
    %298 = vector.broadcast %cst_90 : f32 to vector<8x128xf32>
    %299 = arith.subf %298, %297 : vector<8x128xf32>
    %300 = math.exp %299 : vector<8x128xf32>
    %cst_91 = arith.constant 1.000000e+00 : f32
    %301 = vector.broadcast %cst_91 : f32 to vector<8x128xf32>
    %302 = arith.addf %301, %300 : vector<8x128xf32>
    %303 = tpu.reciprocal %302 {approx = true} : vector<8x128xf32> -> vector<8x128xf32>
    %304 = arith.mulf %294, %240 : vector<8x128xf32>
    %305 = arith.mulf %287, %296 : vector<8x128xf32>
    %306 = arith.addf %304, %305 : vector<8x128xf32>
    %307 = math.tanh %306 : vector<8x128xf32>
    %308 = arith.mulf %303, %307 : vector<8x128xf32>
    %c24_92 = arith.constant 24 : index
    %c0_93 = arith.constant 0 : index
    %309 = vector.load %arg10[%c24_92, %c0_93] : memref<64x128xf32, #tpu.memory_space<vmem>>, vector<8x128xf32>
    tpu.vector_store %arg10[%c24_92, %c0_93], %308 {strides = array<i32>} : memref<64x128xf32, #tpu.memory_space<vmem>>, vector<8x128xf32>,
    %c40 = arith.constant 40 : index
    %c0_94 = arith.constant 0 : index
    %310 = vector.load %arg9[%c40, %c0_94] : memref<64x512xf32, #tpu.memory_space<vmem>>, vector<8x512xf32>
    %311 = arith.truncf %280 : vector<8x128xf32> to vector<8x128xbf16>
    %cst_95 = arith.constant dense<0.000000e+00> : vector<8x512xf32>
    %312 = tpu.matmul %311, %7, %cst_95 {dimension_numbers = #tpu.dot_dimension_numbers<[1], [0], [0], [1], [0, 0, 1, 1], [], []>} : vector<8x128xbf16>, vector<128x512xbf16>, vector<8x512xf32> -> vector<8x512xf32>
    %313 = arith.addf %310, %312 : vector<8x512xf32>
    %314 = tpu.concatenate %280, %308 in 1 : vector<8x128xf32>, vector<8x128xf32> -> vector<8x256xf32>
    %315 = arith.truncf %314 : vector<8x256xf32> to vector<8x256xbf16>
    %cst_96 = arith.constant dense<0.000000e+00> : vector<8x512xf32>
    %316 = tpu.matmul %315, %8, %cst_96 {dimension_numbers = #tpu.dot_dimension_numbers<[1], [0], [0], [1], [0, 0, 1, 1], [], []>} : vector<8x256xbf16>, vector<256x512xbf16>, vector<8x512xf32> -> vector<8x512xf32>
    %317 = vector.broadcast %9 : vector<1x512xf32> to vector<8x512xf32>
    %318 = arith.addf %316, %317 : vector<8x512xf32>
    %319 = vector.extract_strided_slice %313 {offsets = [0, 0], sizes = [8, 128], strides = [1, 1]} : vector<8x512xf32> to vector<8x128xf32>
    %cst_97 = arith.constant 0.000000e+00 : f32
    %320 = vector.broadcast %cst_97 : f32 to vector<8x128xf32>
    %321 = arith.subf %320, %319 : vector<8x128xf32>
    %322 = math.exp %321 : vector<8x128xf32>
    %cst_98 = arith.constant 1.000000e+00 : f32
    %323 = vector.broadcast %cst_98 : f32 to vector<8x128xf32>
    %324 = arith.addf %323, %322 : vector<8x128xf32>
    %325 = tpu.reciprocal %324 {approx = true} : vector<8x128xf32> -> vector<8x128xf32>
    %326 = vector.extract_strided_slice %313 {offsets = [0, 128], sizes = [8, 128], strides = [1, 1]} : vector<8x512xf32> to vector<8x128xf32>
    %cst_99 = arith.constant 0.000000e+00 : f32
    %327 = vector.broadcast %cst_99 : f32 to vector<8x128xf32>
    %328 = arith.subf %327, %326 : vector<8x128xf32>
    %329 = math.exp %328 : vector<8x128xf32>
    %cst_100 = arith.constant 1.000000e+00 : f32
    %330 = vector.broadcast %cst_100 : f32 to vector<8x128xf32>
    %331 = arith.addf %330, %329 : vector<8x128xf32>
    %332 = tpu.reciprocal %331 {approx = true} : vector<8x128xf32> -> vector<8x128xf32>
    %333 = vector.extract_strided_slice %313 {offsets = [0, 256], sizes = [8, 128], strides = [1, 1]} : vector<8x512xf32> to vector<8x128xf32>
    %334 = math.tanh %333 : vector<8x128xf32>
    %335 = vector.extract_strided_slice %313 {offsets = [0, 384], sizes = [8, 128], strides = [1, 1]} : vector<8x512xf32> to vector<8x128xf32>
    %cst_101 = arith.constant 0.000000e+00 : f32
    %336 = vector.broadcast %cst_101 : f32 to vector<8x128xf32>
    %337 = arith.subf %336, %335 : vector<8x128xf32>
    %338 = math.exp %337 : vector<8x128xf32>
    %cst_102 = arith.constant 1.000000e+00 : f32
    %339 = vector.broadcast %cst_102 : f32 to vector<8x128xf32>
    %340 = arith.addf %339, %338 : vector<8x128xf32>
    %341 = tpu.reciprocal %340 {approx = true} : vector<8x128xf32> -> vector<8x128xf32>
    %342 = arith.mulf %332, %278 : vector<8x128xf32>
    %343 = arith.mulf %325, %334 : vector<8x128xf32>
    %344 = arith.addf %342, %343 : vector<8x128xf32>
    %345 = math.tanh %344 : vector<8x128xf32>
    %346 = arith.mulf %341, %345 : vector<8x128xf32>
    %347 = vector.extract_strided_slice %318 {offsets = [0, 0], sizes = [8, 128], strides = [1, 1]} : vector<8x512xf32> to vector<8x128xf32>
    %cst_103 = arith.constant 0.000000e+00 : f32
    %348 = vector.broadcast %cst_103 : f32 to vector<8x128xf32>
    %349 = arith.subf %348, %347 : vector<8x128xf32>
    %350 = math.exp %349 : vector<8x128xf32>
    %cst_104 = arith.constant 1.000000e+00 : f32
    %351 = vector.broadcast %cst_104 : f32 to vector<8x128xf32>
    %352 = arith.addf %351, %350 : vector<8x128xf32>
    %353 = tpu.reciprocal %352 {approx = true} : vector<8x128xf32> -> vector<8x128xf32>
    %354 = vector.extract_strided_slice %318 {offsets = [0, 128], sizes = [8, 128], strides = [1, 1]} : vector<8x512xf32> to vector<8x128xf32>
    %cst_105 = arith.constant 0.000000e+00 : f32
    %355 = vector.broadcast %cst_105 : f32 to vector<8x128xf32>
    %356 = arith.subf %355, %354 : vector<8x128xf32>
    %357 = math.exp %356 : vector<8x128xf32>
    %cst_106 = arith.constant 1.000000e+00 : f32
    %358 = vector.broadcast %cst_106 : f32 to vector<8x128xf32>
    %359 = arith.addf %358, %357 : vector<8x128xf32>
    %360 = tpu.reciprocal %359 {approx = true} : vector<8x128xf32> -> vector<8x128xf32>
    %361 = vector.extract_strided_slice %318 {offsets = [0, 256], sizes = [8, 128], strides = [1, 1]} : vector<8x512xf32> to vector<8x128xf32>
    %362 = math.tanh %361 : vector<8x128xf32>
    %363 = vector.extract_strided_slice %318 {offsets = [0, 384], sizes = [8, 128], strides = [1, 1]} : vector<8x512xf32> to vector<8x128xf32>
    %cst_107 = arith.constant 0.000000e+00 : f32
    %364 = vector.broadcast %cst_107 : f32 to vector<8x128xf32>
    %365 = arith.subf %364, %363 : vector<8x128xf32>
    %366 = math.exp %365 : vector<8x128xf32>
    %cst_108 = arith.constant 1.000000e+00 : f32
    %367 = vector.broadcast %cst_108 : f32 to vector<8x128xf32>
    %368 = arith.addf %367, %366 : vector<8x128xf32>
    %369 = tpu.reciprocal %368 {approx = true} : vector<8x128xf32> -> vector<8x128xf32>
    %370 = arith.mulf %360, %306 : vector<8x128xf32>
    %371 = arith.mulf %353, %362 : vector<8x128xf32>
    %372 = arith.addf %370, %371 : vector<8x128xf32>
    %373 = math.tanh %372 : vector<8x128xf32>
    %374 = arith.mulf %369, %373 : vector<8x128xf32>
    %c32_109 = arith.constant 32 : index
    %c0_110 = arith.constant 0 : index
    %375 = vector.load %arg10[%c32_109, %c0_110] : memref<64x128xf32, #tpu.memory_space<vmem>>, vector<8x128xf32>
    tpu.vector_store %arg10[%c32_109, %c0_110], %374 {strides = array<i32>} : memref<64x128xf32, #tpu.memory_space<vmem>>, vector<8x128xf32>,
    %c48 = arith.constant 48 : index
    %c0_111 = arith.constant 0 : index
    %376 = vector.load %arg9[%c48, %c0_111] : memref<64x512xf32, #tpu.memory_space<vmem>>, vector<8x512xf32>
    %377 = arith.truncf %346 : vector<8x128xf32> to vector<8x128xbf16>
    %cst_112 = arith.constant dense<0.000000e+00> : vector<8x512xf32>
    %378 = tpu.matmul %377, %7, %cst_112 {dimension_numbers = #tpu.dot_dimension_numbers<[1], [0], [0], [1], [0, 0, 1, 1], [], []>} : vector<8x128xbf16>, vector<128x512xbf16>, vector<8x512xf32> -> vector<8x512xf32>
    %379 = arith.addf %376, %378 : vector<8x512xf32>
    %380 = tpu.concatenate %346, %374 in 1 : vector<8x128xf32>, vector<8x128xf32> -> vector<8x256xf32>
    %381 = arith.truncf %380 : vector<8x256xf32> to vector<8x256xbf16>
    %cst_113 = arith.constant dense<0.000000e+00> : vector<8x512xf32>
    %382 = tpu.matmul %381, %8, %cst_113 {dimension_numbers = #tpu.dot_dimension_numbers<[1], [0], [0], [1], [0, 0, 1, 1], [], []>} : vector<8x256xbf16>, vector<256x512xbf16>, vector<8x512xf32> -> vector<8x512xf32>
    %383 = vector.broadcast %9 : vector<1x512xf32> to vector<8x512xf32>
    %384 = arith.addf %382, %383 : vector<8x512xf32>
    %385 = vector.extract_strided_slice %379 {offsets = [0, 0], sizes = [8, 128], strides = [1, 1]} : vector<8x512xf32> to vector<8x128xf32>
    %cst_114 = arith.constant 0.000000e+00 : f32
    %386 = vector.broadcast %cst_114 : f32 to vector<8x128xf32>
    %387 = arith.subf %386, %385 : vector<8x128xf32>
    %388 = math.exp %387 : vector<8x128xf32>
    %cst_115 = arith.constant 1.000000e+00 : f32
    %389 = vector.broadcast %cst_115 : f32 to vector<8x128xf32>
    %390 = arith.addf %389, %388 : vector<8x128xf32>
    %391 = tpu.reciprocal %390 {approx = true} : vector<8x128xf32> -> vector<8x128xf32>
    %392 = vector.extract_strided_slice %379 {offsets = [0, 128], sizes = [8, 128], strides = [1, 1]} : vector<8x512xf32> to vector<8x128xf32>
    %cst_116 = arith.constant 0.000000e+00 : f32
    %393 = vector.broadcast %cst_116 : f32 to vector<8x128xf32>
    %394 = arith.subf %393, %392 : vector<8x128xf32>
    %395 = math.exp %394 : vector<8x128xf32>
    %cst_117 = arith.constant 1.000000e+00 : f32
    %396 = vector.broadcast %cst_117 : f32 to vector<8x128xf32>
    %397 = arith.addf %396, %395 : vector<8x128xf32>
    %398 = tpu.reciprocal %397 {approx = true} : vector<8x128xf32> -> vector<8x128xf32>
    %399 = vector.extract_strided_slice %379 {offsets = [0, 256], sizes = [8, 128], strides = [1, 1]} : vector<8x512xf32> to vector<8x128xf32>
    %400 = math.tanh %399 : vector<8x128xf32>
    %401 = vector.extract_strided_slice %379 {offsets = [0, 384], sizes = [8, 128], strides = [1, 1]} : vector<8x512xf32> to vector<8x128xf32>
    %cst_118 = arith.constant 0.000000e+00 : f32
    %402 = vector.broadcast %cst_118 : f32 to vector<8x128xf32>
    %403 = arith.subf %402, %401 : vector<8x128xf32>
    %404 = math.exp %403 : vector<8x128xf32>
    %cst_119 = arith.constant 1.000000e+00 : f32
    %405 = vector.broadcast %cst_119 : f32 to vector<8x128xf32>
    %406 = arith.addf %405, %404 : vector<8x128xf32>
    %407 = tpu.reciprocal %406 {approx = true} : vector<8x128xf32> -> vector<8x128xf32>
    %408 = arith.mulf %398, %344 : vector<8x128xf32>
    %409 = arith.mulf %391, %400 : vector<8x128xf32>
    %410 = arith.addf %408, %409 : vector<8x128xf32>
    %411 = math.tanh %410 : vector<8x128xf32>
    %412 = arith.mulf %407, %411 : vector<8x128xf32>
    %413 = vector.extract_strided_slice %384 {offsets = [0, 0], sizes = [8, 128], strides = [1, 1]} : vector<8x512xf32> to vector<8x128xf32>
    %cst_120 = arith.constant 0.000000e+00 : f32
    %414 = vector.broadcast %cst_120 : f32 to vector<8x128xf32>
    %415 = arith.subf %414, %413 : vector<8x128xf32>
    %416 = math.exp %415 : vector<8x128xf32>
    %cst_121 = arith.constant 1.000000e+00 : f32
    %417 = vector.broadcast %cst_121 : f32 to vector<8x128xf32>
    %418 = arith.addf %417, %416 : vector<8x128xf32>
    %419 = tpu.reciprocal %418 {approx = true} : vector<8x128xf32> -> vector<8x128xf32>
    %420 = vector.extract_strided_slice %384 {offsets = [0, 128], sizes = [8, 128], strides = [1, 1]} : vector<8x512xf32> to vector<8x128xf32>
    %cst_122 = arith.constant 0.000000e+00 : f32
    %421 = vector.broadcast %cst_122 : f32 to vector<8x128xf32>
    %422 = arith.subf %421, %420 : vector<8x128xf32>
    %423 = math.exp %422 : vector<8x128xf32>
    %cst_123 = arith.constant 1.000000e+00 : f32
    %424 = vector.broadcast %cst_123 : f32 to vector<8x128xf32>
    %425 = arith.addf %424, %423 : vector<8x128xf32>
    %426 = tpu.reciprocal %425 {approx = true} : vector<8x128xf32> -> vector<8x128xf32>
    %427 = vector.extract_strided_slice %384 {offsets = [0, 256], sizes = [8, 128], strides = [1, 1]} : vector<8x512xf32> to vector<8x128xf32>
    %428 = math.tanh %427 : vector<8x128xf32>
    %429 = vector.extract_strided_slice %384 {offsets = [0, 384], sizes = [8, 128], strides = [1, 1]} : vector<8x512xf32> to vector<8x128xf32>
    %cst_124 = arith.constant 0.000000e+00 : f32
    %430 = vector.broadcast %cst_124 : f32 to vector<8x128xf32>
    %431 = arith.subf %430, %429 : vector<8x128xf32>
    %432 = math.exp %431 : vector<8x128xf32>
    %cst_125 = arith.constant 1.000000e+00 : f32
    %433 = vector.broadcast %cst_125 : f32 to vector<8x128xf32>
    %434 = arith.addf %433, %432 : vector<8x128xf32>
    %435 = tpu.reciprocal %434 {approx = true} : vector<8x128xf32> -> vector<8x128xf32>
    %436 = arith.mulf %426, %372 : vector<8x128xf32>
    %437 = arith.mulf %419, %428 : vector<8x128xf32>
    %438 = arith.addf %436, %437 : vector<8x128xf32>
    %439 = math.tanh %438 : vector<8x128xf32>
    %440 = arith.mulf %435, %439 : vector<8x128xf32>
    %c40_126 = arith.constant 40 : index
    %c0_127 = arith.constant 0 : index
    %441 = vector.load %arg10[%c40_126, %c0_127] : memref<64x128xf32, #tpu.memory_space<vmem>>, vector<8x128xf32>
    tpu.vector_store %arg10[%c40_126, %c0_127], %440 {strides = array<i32>} : memref<64x128xf32, #tpu.memory_space<vmem>>, vector<8x128xf32>,
    %c56 = arith.constant 56 : index
    %c0_128 = arith.constant 0 : index
    %442 = vector.load %arg9[%c56, %c0_128] : memref<64x512xf32, #tpu.memory_space<vmem>>, vector<8x512xf32>
    %443 = arith.truncf %412 : vector<8x128xf32> to vector<8x128xbf16>
    %cst_129 = arith.constant dense<0.000000e+00> : vector<8x512xf32>
    %444 = tpu.matmul %443, %7, %cst_129 {dimension_numbers = #tpu.dot_dimension_numbers<[1], [0], [0], [1], [0, 0, 1, 1], [], []>} : vector<8x128xbf16>, vector<128x512xbf16>, vector<8x512xf32> -> vector<8x512xf32>
    %445 = arith.addf %442, %444 : vector<8x512xf32>
    %446 = tpu.concatenate %412, %440 in 1 : vector<8x128xf32>, vector<8x128xf32> -> vector<8x256xf32>
    %447 = arith.truncf %446 : vector<8x256xf32> to vector<8x256xbf16>
    %cst_130 = arith.constant dense<0.000000e+00> : vector<8x512xf32>
    %448 = tpu.matmul %447, %8, %cst_130 {dimension_numbers = #tpu.dot_dimension_numbers<[1], [0], [0], [1], [0, 0, 1, 1], [], []>} : vector<8x256xbf16>, vector<256x512xbf16>, vector<8x512xf32> -> vector<8x512xf32>
    %449 = vector.broadcast %9 : vector<1x512xf32> to vector<8x512xf32>
    %450 = arith.addf %448, %449 : vector<8x512xf32>
    %451 = vector.extract_strided_slice %445 {offsets = [0, 0], sizes = [8, 128], strides = [1, 1]} : vector<8x512xf32> to vector<8x128xf32>
    %cst_131 = arith.constant 0.000000e+00 : f32
    %452 = vector.broadcast %cst_131 : f32 to vector<8x128xf32>
    %453 = arith.subf %452, %451 : vector<8x128xf32>
    %454 = math.exp %453 : vector<8x128xf32>
    %cst_132 = arith.constant 1.000000e+00 : f32
    %455 = vector.broadcast %cst_132 : f32 to vector<8x128xf32>
    %456 = arith.addf %455, %454 : vector<8x128xf32>
    %457 = tpu.reciprocal %456 {approx = true} : vector<8x128xf32> -> vector<8x128xf32>
    %458 = vector.extract_strided_slice %445 {offsets = [0, 128], sizes = [8, 128], strides = [1, 1]} : vector<8x512xf32> to vector<8x128xf32>
    %cst_133 = arith.constant 0.000000e+00 : f32
    %459 = vector.broadcast %cst_133 : f32 to vector<8x128xf32>
    %460 = arith.subf %459, %458 : vector<8x128xf32>
    %461 = math.exp %460 : vector<8x128xf32>
    %cst_134 = arith.constant 1.000000e+00 : f32
    %462 = vector.broadcast %cst_134 : f32 to vector<8x128xf32>
    %463 = arith.addf %462, %461 : vector<8x128xf32>
    %464 = tpu.reciprocal %463 {approx = true} : vector<8x128xf32> -> vector<8x128xf32>
    %465 = vector.extract_strided_slice %445 {offsets = [0, 256], sizes = [8, 128], strides = [1, 1]} : vector<8x512xf32> to vector<8x128xf32>
    %466 = math.tanh %465 : vector<8x128xf32>
    %467 = vector.extract_strided_slice %445 {offsets = [0, 384], sizes = [8, 128], strides = [1, 1]} : vector<8x512xf32> to vector<8x128xf32>
    %cst_135 = arith.constant 0.000000e+00 : f32
    %468 = vector.broadcast %cst_135 : f32 to vector<8x128xf32>
    %469 = arith.subf %468, %467 : vector<8x128xf32>
    %470 = math.exp %469 : vector<8x128xf32>
    %cst_136 = arith.constant 1.000000e+00 : f32
    %471 = vector.broadcast %cst_136 : f32 to vector<8x128xf32>
    %472 = arith.addf %471, %470 : vector<8x128xf32>
    %473 = tpu.reciprocal %472 {approx = true} : vector<8x128xf32> -> vector<8x128xf32>
    %474 = arith.mulf %464, %410 : vector<8x128xf32>
    %475 = arith.mulf %457, %466 : vector<8x128xf32>
    %476 = arith.addf %474, %475 : vector<8x128xf32>
    %477 = math.tanh %476 : vector<8x128xf32>
    %478 = arith.mulf %473, %477 : vector<8x128xf32>
    %479 = vector.extract_strided_slice %450 {offsets = [0, 0], sizes = [8, 128], strides = [1, 1]} : vector<8x512xf32> to vector<8x128xf32>
    %cst_137 = arith.constant 0.000000e+00 : f32
    %480 = vector.broadcast %cst_137 : f32 to vector<8x128xf32>
    %481 = arith.subf %480, %479 : vector<8x128xf32>
    %482 = math.exp %481 : vector<8x128xf32>
    %cst_138 = arith.constant 1.000000e+00 : f32
    %483 = vector.broadcast %cst_138 : f32 to vector<8x128xf32>
    %484 = arith.addf %483, %482 : vector<8x128xf32>
    %485 = tpu.reciprocal %484 {approx = true} : vector<8x128xf32> -> vector<8x128xf32>
    %486 = vector.extract_strided_slice %450 {offsets = [0, 128], sizes = [8, 128], strides = [1, 1]} : vector<8x512xf32> to vector<8x128xf32>
    %cst_139 = arith.constant 0.000000e+00 : f32
    %487 = vector.broadcast %cst_139 : f32 to vector<8x128xf32>
    %488 = arith.subf %487, %486 : vector<8x128xf32>
    %489 = math.exp %488 : vector<8x128xf32>
    %cst_140 = arith.constant 1.000000e+00 : f32
    %490 = vector.broadcast %cst_140 : f32 to vector<8x128xf32>
    %491 = arith.addf %490, %489 : vector<8x128xf32>
    %492 = tpu.reciprocal %491 {approx = true} : vector<8x128xf32> -> vector<8x128xf32>
    %493 = vector.extract_strided_slice %450 {offsets = [0, 256], sizes = [8, 128], strides = [1, 1]} : vector<8x512xf32> to vector<8x128xf32>
    %494 = math.tanh %493 : vector<8x128xf32>
    %495 = vector.extract_strided_slice %450 {offsets = [0, 384], sizes = [8, 128], strides = [1, 1]} : vector<8x512xf32> to vector<8x128xf32>
    %cst_141 = arith.constant 0.000000e+00 : f32
    %496 = vector.broadcast %cst_141 : f32 to vector<8x128xf32>
    %497 = arith.subf %496, %495 : vector<8x128xf32>
    %498 = math.exp %497 : vector<8x128xf32>
    %cst_142 = arith.constant 1.000000e+00 : f32
    %499 = vector.broadcast %cst_142 : f32 to vector<8x128xf32>
    %500 = arith.addf %499, %498 : vector<8x128xf32>
    %501 = tpu.reciprocal %500 {approx = true} : vector<8x128xf32> -> vector<8x128xf32>
    %502 = arith.mulf %492, %438 : vector<8x128xf32>
    %503 = arith.mulf %485, %494 : vector<8x128xf32>
    %504 = arith.addf %502, %503 : vector<8x128xf32>
    %505 = math.tanh %504 : vector<8x128xf32>
    %506 = arith.mulf %501, %505 : vector<8x128xf32>
    %c48_143 = arith.constant 48 : index
    %c0_144 = arith.constant 0 : index
    %507 = vector.load %arg10[%c48_143, %c0_144] : memref<64x128xf32, #tpu.memory_space<vmem>>, vector<8x128xf32>
    tpu.vector_store %arg10[%c48_143, %c0_144], %506 {strides = array<i32>} : memref<64x128xf32, #tpu.memory_space<vmem>>, vector<8x128xf32>,
    %508 = tpu.concatenate %478, %506 in 1 : vector<8x128xf32>, vector<8x128xf32> -> vector<8x256xf32>
    %509 = arith.truncf %508 : vector<8x256xf32> to vector<8x256xbf16>
    %cst_145 = arith.constant dense<0.000000e+00> : vector<8x512xf32>
    %510 = tpu.matmul %509, %8, %cst_145 {dimension_numbers = #tpu.dot_dimension_numbers<[1], [0], [0], [1], [0, 0, 1, 1], [], []>} : vector<8x256xbf16>, vector<256x512xbf16>, vector<8x512xf32> -> vector<8x512xf32>
    %511 = vector.broadcast %9 : vector<1x512xf32> to vector<8x512xf32>
    %512 = arith.addf %510, %511 : vector<8x512xf32>
    %513 = vector.extract_strided_slice %512 {offsets = [0, 0], sizes = [8, 128], strides = [1, 1]} : vector<8x512xf32> to vector<8x128xf32>
    %cst_146 = arith.constant 0.000000e+00 : f32
    %514 = vector.broadcast %cst_146 : f32 to vector<8x128xf32>
    %515 = arith.subf %514, %513 : vector<8x128xf32>
    %516 = math.exp %515 : vector<8x128xf32>
    %cst_147 = arith.constant 1.000000e+00 : f32
    %517 = vector.broadcast %cst_147 : f32 to vector<8x128xf32>
    %518 = arith.addf %517, %516 : vector<8x128xf32>
    %519 = tpu.reciprocal %518 {approx = true} : vector<8x128xf32> -> vector<8x128xf32>
    %520 = vector.extract_strided_slice %512 {offsets = [0, 128], sizes = [8, 128], strides = [1, 1]} : vector<8x512xf32> to vector<8x128xf32>
    %cst_148 = arith.constant 0.000000e+00 : f32
    %521 = vector.broadcast %cst_148 : f32 to vector<8x128xf32>
    %522 = arith.subf %521, %520 : vector<8x128xf32>
    %523 = math.exp %522 : vector<8x128xf32>
    %cst_149 = arith.constant 1.000000e+00 : f32
    %524 = vector.broadcast %cst_149 : f32 to vector<8x128xf32>
    %525 = arith.addf %524, %523 : vector<8x128xf32>
    %526 = tpu.reciprocal %525 {approx = true} : vector<8x128xf32> -> vector<8x128xf32>
    %527 = vector.extract_strided_slice %512 {offsets = [0, 256], sizes = [8, 128], strides = [1, 1]} : vector<8x512xf32> to vector<8x128xf32>
    %528 = math.tanh %527 : vector<8x128xf32>
    %529 = vector.extract_strided_slice %512 {offsets = [0, 384], sizes = [8, 128], strides = [1, 1]} : vector<8x512xf32> to vector<8x128xf32>
    %cst_150 = arith.constant 0.000000e+00 : f32
    %530 = vector.broadcast %cst_150 : f32 to vector<8x128xf32>
    %531 = arith.subf %530, %529 : vector<8x128xf32>
    %532 = math.exp %531 : vector<8x128xf32>
    %cst_151 = arith.constant 1.000000e+00 : f32
    %533 = vector.broadcast %cst_151 : f32 to vector<8x128xf32>
    %534 = arith.addf %533, %532 : vector<8x128xf32>
    %535 = tpu.reciprocal %534 {approx = true} : vector<8x128xf32> -> vector<8x128xf32>
    %536 = arith.mulf %526, %504 : vector<8x128xf32>
    %537 = arith.mulf %519, %528 : vector<8x128xf32>
    %538 = arith.addf %536, %537 : vector<8x128xf32>
    %539 = math.tanh %538 : vector<8x128xf32>
    %540 = arith.mulf %535, %539 : vector<8x128xf32>
    %c56_152 = arith.constant 56 : index
    %c0_153 = arith.constant 0 : index
    %541 = vector.load %arg10[%c56_152, %c0_153] : memref<64x128xf32, #tpu.memory_space<vmem>>, vector<8x128xf32>
    tpu.vector_store %arg10[%c56_152, %c0_153], %540 {strides = array<i32>} : memref<64x128xf32, #tpu.memory_space<vmem>>, vector<8x128xf32>,
    %c0_154 = arith.constant 0 : index
    %c0_155 = arith.constant 0 : index
    %542 = vector.load %arg10[%c0_154, %c0_155] : memref<64x128xf32, #tpu.memory_space<vmem>>, vector<64x128xf32>
    %543 = arith.truncf %542 : vector<64x128xf32> to vector<64x128xbf16>
    %c0_156 = arith.constant 0 : index
    %c0_157 = arith.constant 0 : index
    %544 = vector.load %arg6[%c0_156, %c0_157] : memref<128x128xbf16, #tpu.memory_space<vmem>>, vector<128x128xbf16>
    %cst_158 = arith.constant dense<0.000000e+00> : vector<64x128xf32>
    %545 = tpu.matmul %543, %544, %cst_158 {dimension_numbers = #tpu.dot_dimension_numbers<[1], [0], [0], [1], [0, 0, 1, 1], [], []>} : vector<64x128xbf16>, vector<128x128xbf16>, vector<64x128xf32> -> vector<64x128xf32>
    %c0_159 = arith.constant 0 : index
    %c0_160 = arith.constant 0 : index
    %546 = vector.load %arg7[%c0_159, %c0_160] : memref<1x128xf32, #tpu.memory_space<vmem>>, vector<1x128xf32>
    %547 = vector.broadcast %546 : vector<1x128xf32> to vector<64x128xf32>
    %548 = arith.addf %545, %547 : vector<64x128xf32>
    %c0_161 = arith.constant 0 : index
    %c0_162 = arith.constant 0 : index
    %549 = vector.load %arg8[%c0_161, %c0_162] : memref<64x128xf32, #tpu.memory_space<vmem>>, vector<64x128xf32>
    tpu.vector_store %arg8[%c0_161, %c0_162], %548 {strides = array<i32>} : memref<64x128xf32, #tpu.memory_space<vmem>>, vector<64x128xf32>,
    return
  }
}

</mosaic_0001>

<bundles_post_ra>
// kernel: rnn_model_forward.1
= control target key start
LH: loop header
LB: loop body
LE: loop exit
PB: predicated region body
PF: predicated region fallthrough
CT: control target
= control target key end

     0   :  { %v6360_v1 = vmov 0   ;;  %vm176_vm0 = vcmask 523264   ;;  %v56_v55 = vlaneseq  ;;  %s6349_s1 = inlined_call_operand.vmem [shape: bf16[64,512], index: 1, kind: input, shape index: {}]   ;;  %s6350_s2 = inlined_call_operand.vmem [shape: bf16[128,512], index: 2, kind: input, shape index: {}]   ;;  %s6351_s0 = inlined_call_operand.vmem [shape: bf16[64,64], index: 0, kind: input, shape index: {}]   ;;  %s6352_s4 = inlined_call_operand.vmem [shape: bf16[256,512], index: 4, kind: input, shape index: {}]   ;;  %s6353_s3 = inlined_call_operand.vmem [shape: f32[1,512], index: 3, kind: input, shape index: {}]   ;;  %s6354_s5 = inlined_call_operand.vmem [shape: f32[1,512], index: 5, kind: input, shape index: {}]   ;;  %s6355_s6 = inlined_call_operand.vmem [shape: bf16[128,128], index: 6, kind: input, shape index: {}]   ;;  %s6356_s7 = inlined_call_operand.vmem [shape: f32[1,128], index: 7, kind: input, shape index: {}]   ;;  %s6357_s8 = inlined_call_operand.vmem [shape: f32[64,128], index: 8, kind: output, shape index: {}]  }
   0x1   :  { %v3032_v0 = vld [vmem:[%s6349_s1 + $0x4] ss:$16 sps:$4 sm:$0xff]   ;;  %221 = vmatprep.mubr.bf16.mxu1 %v6360_v1  ;;  %660 = vmatprep.mubr.bf16.mxu0 %v6360_v1  ;;  %v3036_v3 = vld [vmem:[%s6349_s1] ss:$16 sps:$4 sm:$0xff]   ;;  %v3059_v17 = vld [vmem:[%s6349_s1 + $0xc] ss:$16 sps:$4 sm:$0xff]  }
   0x2   :  { %v3715_v2 = vld [vmem:[%s6350_s2 + $0x4] ss:$16 sps:$4 sm:$0xff]   ;;  %189 = vmatprep.subr.bf16.mxu1 %v3032_v0  ;;  %v3723_v4 = vld [vmem:[%s6350_s2] ss:$16 sps:$4 sm:$0xff]   ;;  %v3057_v20 = vld [vmem:[%s6349_s1 + $0x8] ss:$16 sps:$4 sm:$0xff]  }
   0x3   :  { %628 = vmatprep.subr.bf16.mxu0 %v3715_v2  ;;  %v3038_v5 = vld [vmem:[%s6349_s1 + $0x24] ss:$16 sps:$4 sm:$0xff]   ;;  %190 = vmatpush1.bf16.msra.mxu1 %v3036_v3  ;;  %v3042_v7 = vld [vmem:[%s6349_s1 + $0x20] ss:$16 sps:$4 sm:$0xff]   ;;  %v3069_v23 = vld [vmem:[%s6349_s1 + $0x2c] ss:$16 sps:$4 sm:$0xff]  }
   0x4   :  { %629 = vmatpush1.bf16.msra.mxu0 %v3723_v4  ;;  %v3733_v6 = vld [vmem:[%s6350_s2 + $0x24] ss:$16 sps:$4 sm:$0xff]   ;;  %191 = vmatprep.subr.bf16.mxu1 %v3038_v5  ;;  %v3741_v8 = vld [vmem:[%s6350_s2 + $0x20] ss:$16 sps:$4 sm:$0xff]   ;;  %v3067_v25 = vld [vmem:[%s6349_s1 + $0x28] ss:$16 sps:$4 sm:$0xff]  }
   0x5   :  { %630 = vmatprep.subr.bf16.mxu0 %v3733_v6  ;;  %v3044_v9 = vld [vmem:[%s6349_s1 + $0x44] ss:$16 sps:$4 sm:$0xff]   ;;  %v3048_v11 = vld [vmem:[%s6349_s1 + $0x40] ss:$16 sps:$4 sm:$0xff]   ;;  %v3066_v27 = vld [vmem:[%s6351_s0 + $0x8] sm:$0xff]   ;;  %v4025_v56 = vshrl.u32 %v56_v55, 7 }
   0x6   :  { %v3750_v10 = vld [vmem:[%s6350_s2 + $0x44] ss:$16 sps:$4 sm:$0xff]   ;;  %v3758_v12 = vld [vmem:[%s6350_s2 + $0x40] ss:$16 sps:$4 sm:$0xff]   ;;  %v3079_v28 = vld [vmem:[%s6349_s1 + $0x4c] ss:$16 sps:$4 sm:$0xff]  }
   0x7   :  { %192 = vmatpush1.bf16.msra.mxu1 %v3042_v7  ;;  %v3050_v13 = vld [vmem:[%s6349_s1 + $0x64] ss:$16 sps:$4 sm:$0xff]   ;;  %v3054_v15 = vld [vmem:[%s6349_s1 + $0x60] ss:$16 sps:$4 sm:$0xff]   ;;  %v3077_v31 = vld [vmem:[%s6349_s1 + $0x48] ss:$16 sps:$4 sm:$0xff]  }
   0x8   :  { %631 = vmatpush1.bf16.msra.mxu0 %v3741_v8  ;;  %193 = vmatprep.subr.bf16.mxu1 %v3044_v9  ;;  %v3768_v14 = vld [vmem:[%s6350_s2 + $0x64] ss:$16 sps:$4 sm:$0xff]   ;;  %v3777_v16 = vld [vmem:[%s6350_s2 + $0x60] ss:$16 sps:$4 sm:$0xff]   ;;  %v3083_v32 = vld [vmem:[%s6349_s1 + $0x6c] ss:$16 sps:$4 sm:$0xff]  }
   0x9   :  { %632 = vmatprep.subr.bf16.mxu0 %v3750_v10  ;;  %v3786_v18 = vld [vmem:[%s6350_s2 + $0x84] ss:$16 sps:$4 sm:$0xff]   ;;  %v3798_v21 = vld [vmem:[%s6350_s2 + $0x80] ss:$16 sps:$4 sm:$0xff]   ;;  %v3081_v34 = vld [vmem:[%s6349_s1 + $0x68] ss:$16 sps:$4 sm:$0xff]  }
   0xa   :  { %v3056_v19 = vld [vmem:[%s6351_s0] sm:$0xff]   ;;  %v3865_v35 = vld [vmem:[%s6350_s2 + $0xc] ss:$16 sps:$4 sm:$0xff]   ;;  %v3076_v36 = vld [vmem:[%s6351_s0 + $0x10] sm:$0xff]   ;;  %v6359_v57 = vsub.s32 0, %v4025_v56  ;;  %v6358_v59 = vsub.s32 1, %v4025_v56 }
   0xb   :  { %194 = vmatpush1.bf16.msra.mxu1 %v3048_v11  ;;  %v3804_v22 = vld [vmem:[%s6350_s2 + $0xa4] ss:$16 sps:$4 sm:$0xff]   ;;  %v3814_v24 = vld [vmem:[%s6350_s2 + $0xa0] ss:$16 sps:$4 sm:$0xff]   ;;  %v3080_v37 = vld [vmem:[%s6351_s0 + $0x18] sm:$0xff]  }
   0xc   :  { %633 = vmatpush1.bf16.msra.mxu0 %v3758_v12  ;;  %195 = vmatprep.subr.bf16.mxu1 %v3050_v13  ;;  %v3824_v26 = vld [vmem:[%s6350_s2 + $0xc4] ss:$16 sps:$4 sm:$0xff]   ;;  %v3835_v29 = vld [vmem:[%s6350_s2 + $0xc0] ss:$16 sps:$4 sm:$0xff]   ;;  %v3891_v38 = vld [vmem:[%s6350_s2 + $0x8] ss:$16 sps:$4 sm:$0xff]  }
   0xd   :  { %634 = vmatprep.subr.bf16.mxu0 %v3768_v14  ;;  %v3841_v30 = vld [vmem:[%s6350_s2 + $0xe4] ss:$16 sps:$4 sm:$0xff]   ;;  %v3855_v33 = vld [vmem:[%s6350_s2 + $0xe0] ss:$16 sps:$4 sm:$0xff]   ;;  %v3897_v39 = vld [vmem:[%s6350_s2 + $0x2c] ss:$16 sps:$4 sm:$0xff]  }
   0xe   :  { %v3905_v40 = vld [vmem:[%s6350_s2 + $0x28] ss:$16 sps:$4 sm:$0xff]   ;;  %v3912_v41 = vld [vmem:[%s6350_s2 + $0x4c] ss:$16 sps:$4 sm:$0xff]   ;;  %v4016_v53 = vld [vmem:[%s6352_s4 + $0x4] ss:$16 sps:$4 sm:$0xff]  }
   0xf   :  { %196 = vmatpush1.bf16.msra.mxu1 %v3054_v15  ;;  %v3920_v42 = vld [vmem:[%s6350_s2 + $0x48] ss:$16 sps:$4 sm:$0xff]   ;;  %v3926_v43 = vld [vmem:[%s6350_s2 + $0x6c] ss:$16 sps:$4 sm:$0xff]   ;;  %v54_v58 = vld [vmem:[%s6353_s3] sm:$0xf] }
  0x10   :  { %635 = vmatpush1.bf16.msra.mxu0 %v3777_v16  ;;  %262 = vmatprep.subr.bf16.mxu1 %v3059_v17  ;;  %v3935_v44 = vld [vmem:[%s6350_s2 + $0x68] ss:$16 sps:$4 sm:$0xff]   ;;  %v3942_v45 = vld [vmem:[%s6350_s2 + $0x8c] ss:$16 sps:$4 sm:$0xff]   ;;  %v59_v61 = vrot.slane %v54_v58, %v6359_v57  ;;  %v63_v63 = vrot.slane %v54_v58, %v6358_v59 }
  0x11   :  { %636 = vmatprep.subr.bf16.mxu0 %v3786_v18  ;;  %v3950_v46 = vld [vmem:[%s6350_s2 + $0x88] ss:$16 sps:$4 sm:$0xff]   ;;  %v3956_v47 = vld [vmem:[%s6350_s2 + $0xac] ss:$16 sps:$4 sm:$0xff]  }
  0x12   :  { %2881 = vmatmul.mubr.msk.bf16.vlgmr.msra.gmra.mrb[0].mxu1 %vm176_vm0, %v3056_v19  ;;  %v3964_v48 = vld [vmem:[%s6350_s2 + $0xa8] ss:$16 sps:$4 sm:$0xff]   ;;  %v3971_v49 = vld [vmem:[%s6350_s2 + $0xcc] ss:$16 sps:$4 sm:$0xff]  }
  0x13   :  { %263 = vmatpush1.bf16.msra.mxu1 %v3057_v20  ;;  %231 = vmatprep.mubr.bf16.mxu1 %v6360_v1  ;;  %v3977_v50 = vld [vmem:[%s6350_s2 + $0xc8] ss:$16 sps:$4 sm:$0xff]   ;;  %v3983_v51 = vld [vmem:[%s6350_s2 + $0xec] ss:$16 sps:$4 sm:$0xff]  }
  0x14   :  { %637 = vmatpush1.bf16.msra.mxu0 %v3798_v21  ;;  %264 = vmatprep.subr.bf16.mxu1 %v3069_v23  ;;  %v3990_v52 = vld [vmem:[%s6350_s2 + $0xe8] ss:$16 sps:$4 sm:$0xff]   ;;  %v4021_v54 = vld [vmem:[%s6352_s4 + $0xc] ss:$16 sps:$4 sm:$0xff]  }
  0x15   :  { %638 = vmatprep.subr.bf16.mxu0 %v3804_v22 }
  0x17   :  { %265 = vmatpush1.bf16.msra.mxu1 %v3067_v25 }
  0x18   :  { %639 = vmatpush1.bf16.msra.mxu0 %v3814_v24  ;;  %266 = vmatprep.subr.bf16.mxu1 %v3079_v28 }
  0x19   :  { %640 = vmatprep.subr.bf16.mxu0 %v3824_v26 }
  0x1a   :  { %2882 = vmatmul.mubr.msk.bf16.gmra.mrb[4].mxu1 %vm176_vm0, %v3066_v27 }
  0x1b   :  { %241 = vmatprep.mubr.bf16.mxu1 %v6360_v1  ;;  %267 = vmatpush1.bf16.msra.mxu1 %v3077_v31 }
  0x1c   :  { %641 = vmatpush1.bf16.msra.mxu0 %v3835_v29  ;;  %268 = vmatprep.subr.bf16.mxu1 %v3083_v32 }
  0x1d   :  { %642 = vmatprep.subr.bf16.mxu0 %v3841_v30 }
  0x1f   :  { %269 = vmatpush1.bf16.msra.mxu1 %v3081_v34 }
  0x20   :  { %643 = vmatpush1.bf16.msra.mxu0 %v3855_v33  ;;  %669 = vmatprep.subr.bf16.mxu1 %v3865_v35 }
  0x21   :  { %740 = vmatprep.subr.bf16.mxu0 %v3715_v2 }
  0x22   :  { %2883 = vmatmul.mubr.msk.bf16.gmra.mrb[8].mxu1 %vm176_vm0, %v3076_v36 }
  0x23   :  { %661 = vmatmul.mubr.bf16.vlgmr.msra.gmra.mrb[0].mxu0 %v6360_v1  ;;  %251 = vmatprep.mubr.bf16.mxu1 %v6360_v1 }
  0x24   :  { %741 = vmatpush1.bf16.msra.mxu0 %v3723_v4  ;;  %772 = vmatprep.mubr.bf16.mxu0 %v6360_v1 }
  0x25   :  { %742 = vmatprep.subr.bf16.mxu0 %v3733_v6 }
  0x28   :  { %743 = vmatpush1.bf16.msra.mxu0 %v3741_v8 }
  0x29   :  { %744 = vmatprep.subr.bf16.mxu0 %v3750_v10 }
  0x2a   :  { %2884 = vmatmul.mubr.msk.bf16.gmra.mrb[12].mxu1 %vm176_vm0, %v3080_v37 }
  0x2b   :  { %294 = vmatprep.mubr.bf16.mxu1 %v6360_v1 }
  0x2c   :  { %745 = vmatpush1.bf16.msra.mxu0 %v3758_v12 }
  0x2d   :  { %746 = vmatprep.subr.bf16.mxu0 %v3768_v14 }
  0x30   :  { %747 = vmatpush1.bf16.msra.mxu0 %v3777_v16 }
  0x31   :  { %748 = vmatprep.subr.bf16.mxu0 %v3786_v18 }
  0x32   :  { %2885 = vmatmul.mubr.msk.bf16.vlgmr.msra.gmra.mrb[16].mxu1 %vm176_vm0, %v3056_v19 }
  0x33   :  { %670 = vmatpush1.bf16.msra.mxu1 %v3891_v38  ;;  %304 = vmatprep.mubr.bf16.mxu1 %v6360_v1 }
  0x34   :  { %671 = vmatprep.subr.bf16.mxu1 %v3897_v39  ;;  %749 = vmatpush1.bf16.msra.mxu0 %v3798_v21 }
  0x35   :  { %750 = vmatprep.subr.bf16.mxu0 %v3804_v22 }
  0x37   :  { %672 = vmatpush1.bf16.msra.mxu1 %v3905_v40 }
  0x38   :  { %673 = vmatprep.subr.bf16.mxu1 %v3912_v41  ;;  %751 = vmatpush1.bf16.msra.mxu0 %v3814_v24 }
  0x39   :  { %752 = vmatprep.subr.bf16.mxu0 %v3824_v26 }
  0x3a   :  { %2886 = vmatmul.mubr.msk.bf16.gmra.mrb[20].mxu1 %vm176_vm0, %v3066_v27 }
  0x3b   :  { %674 = vmatpush1.bf16.msra.mxu1 %v3920_v42  ;;  %314 = vmatprep.mubr.bf16.mxu1 %v6360_v1 }
  0x3c   :  { %675 = vmatprep.subr.bf16.mxu1 %v3926_v43  ;;  %753 = vmatpush1.bf16.msra.mxu0 %v3835_v29 }
  0x3d   :  { %754 = vmatprep.subr.bf16.mxu0 %v3841_v30 }
  0x3f   :  { %676 = vmatpush1.bf16.msra.mxu1 %v3935_v44 }
  0x40   :  { %677 = vmatprep.subr.bf16.mxu1 %v3942_v45  ;;  %755 = vmatpush1.bf16.msra.mxu0 %v3855_v33 }
  0x41   :  { %1168 = vmatprep.subr.bf16.mxu0 %v4016_v53 }
  0x42   :  { %2887 = vmatmul.mubr.msk.bf16.gmra.mrb[24].mxu1 %vm176_vm0, %v3076_v36 }
  0x43   :  { %678 = vmatpush1.bf16.msra.mxu1 %v3950_v46  ;;  %324 = vmatprep.mubr.bf16.mxu1 %v6360_v1 }
  0x44   :  { %679 = vmatprep.subr.bf16.mxu1 %v3956_v47 }
  0x47   :  { %680 = vmatpush1.bf16.msra.mxu1 %v3964_v48 }
  0x48   :  { %681 = vmatprep.subr.bf16.mxu1 %v3971_v49 }
  0x4a   :  { %2888 = vmatmul.mubr.msk.bf16.gmra.mrb[28].mxu1 %vm176_vm0, %v3080_v37 }
  0x4b   :  { %682 = vmatpush1.bf16.msra.mxu1 %v3977_v50  ;;  %701 = vmatprep.mubr.bf16.mxu1 %v6360_v1 }
  0x4c   :  { %683 = vmatprep.subr.bf16.mxu1 %v3983_v51 }
  0x4f   :  { %684 = vmatpush1.bf16.msra.mxu1 %v3990_v52 }
  0x50   :  { %781 = vmatprep.subr.bf16.mxu1 %v3865_v35 }
  0x52   :  { %702 = vmatmul.mubr.bf16.vlgmr.msra.gmra.mrb[32].mxu1 %v6360_v1 }
  0x53   :  { %782 = vmatpush1.bf16.msra.mxu1 %v3891_v38  ;;  %813 = vmatprep.mubr.bf16.mxu1 %v6360_v1 }
  0x54   :  { %783 = vmatprep.subr.bf16.mxu1 %v3897_v39 }
  0x57   :  { %784 = vmatpush1.bf16.msra.mxu1 %v3905_v40 }
  0x58   :  { %785 = vmatprep.subr.bf16.mxu1 %v3912_v41 }
  0x5b   :  { %786 = vmatpush1.bf16.msra.mxu1 %v3920_v42 }
  0x5c   :  { %787 = vmatprep.subr.bf16.mxu1 %v3926_v43 }
  0x5f   :  { %788 = vmatpush1.bf16.msra.mxu1 %v3935_v44 }
  0x60   :  { %789 = vmatprep.subr.bf16.mxu1 %v3942_v45 }
  0x63   :  { %790 = vmatpush1.bf16.msra.mxu1 %v3950_v46 }
  0x64   :  { %791 = vmatprep.subr.bf16.mxu1 %v3956_v47 }
  0x67   :  { %792 = vmatpush1.bf16.msra.mxu1 %v3964_v48 }
  0x68   :  { %793 = vmatprep.subr.bf16.mxu1 %v3971_v49 }
  0x6b   :  { %794 = vmatpush1.bf16.msra.mxu1 %v3977_v50 }
  0x6c   :  { %795 = vmatprep.subr.bf16.mxu1 %v3983_v51 }
  0x6f   :  { %796 = vmatpush1.bf16.msra.mxu1 %v3990_v52 }
  0x70   :  { %1209 = vmatprep.subr.bf16.mxu1 %v4021_v54 }
  0xe5   :  { %v223_v60 = vpop.f32.mrb[0].mxu1 }
  0xe6   :  { %v225_v62 = vpop.f32.mrb[1].mxu1  ;;  %v224_v17 = vadd.f32 %v223_v60, %v59_v61 }
  0xe7   :  { %v227_v0 = vpop.f32.mrb[2].mxu1  ;;  %v226_v19 = vadd.f32 %v225_v62, %v63_v63 }
  0xe8   :  { %v4036_v2 = vadd.f32 %v227_v0, %v59_v61  ;;  %v229_v3 = vpop.f32.mrb[3].mxu1 }
  0xe9   :  { %v4038_v4 = vadd.f32 %v229_v3, %v63_v63 }
  0xed   :  { %v233_v5 = vpop.f32.mrb[4].mxu1 }
  0xee   :  { %v4040_v6 = vadd.f32 %v233_v5, %v59_v61  ;;  %v235_v7 = vpop.f32.mrb[5].mxu1 }
  0xef   :  { %v4042_v8 = vadd.f32 %v235_v7, %v63_v63  ;;  %v237_v9 = vpop.f32.mrb[6].mxu1 }
  0xf0   :  { %6649 = vst [vmem:[#allocation4_spill] sm:$0xff] %v4040_v6  ;;  %v4044_v11 = vadd.f32 %v237_v9, %v59_v61  ;;  %v239_v13 = vpop.f32.mrb[7].mxu1  ;;  %v4262_v6 = vld [vmem:[%s6352_s4 + $0xe4] ss:$16 sps:$4 sm:$0xff]  }
  0xf1   :  { %6650 = vst [vmem:[#allocation5_spill] sm:$0xff] %v4042_v8  ;;  %v4046_v15 = vadd.f32 %v239_v13, %v63_v63  ;;  %v4250_v8 = vld [vmem:[%s6352_s4 + $0xc0] ss:$16 sps:$4 sm:$0xff]   ;;  %6678 = vst [vmem:[#allocation33_spill] sm:$0xff] %v4262_v6 }
  0xf2   :  { %6651 = vst [vmem:[#allocation6_spill] sm:$0xff] %v4044_v11  ;;  %v4238_v11 = vld [vmem:[%s6352_s4 + $0xc4] ss:$16 sps:$4 sm:$0xff]   ;;  %6676 = vst [vmem:[#allocation31_spill] sm:$0xff] %v4250_v8 }
  0xf3   :  { %6652 = vst [vmem:[#allocation7_spill] sm:$0xff] %v4046_v15  ;;  %v4226_v15 = vld [vmem:[%s6352_s4 + $0xa0] ss:$16 sps:$4 sm:$0xff]   ;;  %6674 = vst [vmem:[#allocation29_spill] sm:$0xff] %v4238_v11 }
  0xf5   :  { %v243_v20 = vpop.f32.mrb[8].mxu1 }
  0xf6   :  { %v662_v23 = vpop.f32.mrb[0].mxu0  ;;  %v4048_v25 = vadd.f32 %v243_v20, %v59_v61  ;;  %v245_v28 = vpop.f32.mrb[9].mxu1 }
  0xf7   :  { %v710_v27 = vadd.f32 %v662_v23, %v224_v17  ;;  %v664_v31 = vpop.f32.mrb[1].mxu0  ;;  %v4050_v32 = vadd.f32 %v245_v28, %v63_v63  ;;  %v247_v36 = vpop.f32.mrb[10].mxu1  ;;  %v6363_v28 = vsub.s32 3, %v4025_v56 }
  0xf8   :  { %6653 = vst [vmem:[#allocation8_spill] sm:$0xff] %v4048_v25  ;;  %v711_v34 = vadd.f32 %v664_v31, %v226_v19  ;;  %v666_v37 = vpop.f32.mrb[2].mxu0  ;;  %v4052_v55 = vadd.f32 %v247_v36, %v59_v61  ;;  %v249_v0 = vpop.f32.mrb[11].mxu1  ;;  %v6362_v19 = vsub.s32 2, %v4025_v56 }
  0xf9   :  { %6654 = vst [vmem:[#allocation9_spill] sm:$0xff] %v4050_v32  ;;  %v667_v3 = vpop.f32.mrb[3].mxu0  ;;  %v4054_v5 = vadd.f32 %v249_v0, %v63_v63  ;;  %v71_v0 = vrot.slane %v54_v58, %v6363_v28 }
  0xfa   :  { %6655 = vst [vmem:[#allocation10_spill] sm:$0xff] %v4052_v55  ;;  %v67_v36 = vrot.slane %v54_v58, %v6362_v19 }
  0xfb   :  { %6656 = vst [vmem:[#allocation11_spill] sm:$0xff] %v4054_v5 }
  0xfd   :  { %v253_v60 = vpop.f32.mrb[12].mxu1 }
  0xfe   :  { %v4056_v62 = vadd.f32 %v253_v60, %v59_v61  ;;  %v255_v7 = vpop.f32.mrb[13].mxu1 }
  0xff   :  { %v4058_v9 = vadd.f32 %v255_v7, %v63_v63  ;;  %v257_v13 = vpop.f32.mrb[14].mxu1 }
 0x100   :  { %6657 = vst [vmem:[#allocation12_spill] sm:$0xff] %v4056_v62  ;;  %v4060_v17 = vadd.f32 %v257_v13, %v59_v61  ;;  %v259_v20 = vpop.f32.mrb[15].mxu1 }
 0x101   :  { %6658 = vst [vmem:[#allocation13_spill] sm:$0xff] %v4058_v9  ;;  %v4062_v23 = vadd.f32 %v259_v20, %v63_v63  ;;  %v719_v63 = vsub.f32 0.0, %v711_v34  ;;  %v714_v20 = vsub.f32 0.0, %v710_v27 }
 0x102   :  { %6659 = vst [vmem:[#allocation14_spill] sm:$0xff] %v4060_v17 }
 0x103   :  { %6660 = vst [vmem:[#allocation15_spill] sm:$0xff] %v4062_v23  ;;  %v720_v9 = vmul.f32 1.442695, %v719_v63 }
 0x105   :  { %v296_v31 = vpop.f32.mrb[16].mxu1  ;;  %3212 = vpow2.f32 %v720_v9 }
 0x106   :  { %v298_v37 = vpop.f32.mrb[17].mxu1 }
 0x107   :  { %v300_v3 = vpop.f32.mrb[18].mxu1 }
 0x108   :  { %v4070_v60 = vadd.f32 %v300_v3, %v67_v36  ;;  %v302_v61 = vpop.f32.mrb[19].mxu1  ;;  %v715_v3 = vmul.f32 1.442695, %v714_v20 }
 0x109   :  { %v4072_v7 = vadd.f32 %v302_v61, %v71_v0 }
 0x10a   :  { %3214 = vpow2.f32 %v715_v3 }
 0x10d   :  { %v306_v13 = vpop.f32.mrb[20].mxu1 }
 0x10e   :  { %v4074_v59 = vadd.f32 %v306_v13, %v67_v36  ;;  %v308_v57 = vpop.f32.mrb[21].mxu1 }
 0x10f   :  { %v4076_v1 = vadd.f32 %v308_v57, %v71_v0  ;;  %v310_v23 = vpop.f32.mrb[22].mxu1  ;;  %v3213_v63 = vpop.eup %3212 }
 0x110   :  { %6661 = vst [vmem:[#allocation16_spill] sm:$0xff] %v4074_v59  ;;  %v4078_v19 = vadd.f32 %v310_v23, %v67_v36  ;;  %v312_v17 = vpop.f32.mrb[23].mxu1  ;;  %v4255_v59 = vld [vmem:[%s6352_s4 + $0xc8] ss:$16 sps:$4 sm:$0xff]  }
 0x111   :  { %6662 = vst [vmem:[#allocation17_spill] sm:$0xff] %v4076_v1  ;;  %v4080_v58 = vadd.f32 %v312_v17, %v71_v0  ;;  %v4243_v1 = vld [vmem:[%s6352_s4 + $0xcc] ss:$16 sps:$4 sm:$0xff]   ;;  %6677 = vst [vmem:[#allocation32_spill] sm:$0xff] %v4255_v59 }
 0x112   :  { %6663 = vst [vmem:[#allocation18_spill] sm:$0xff] %v4078_v19  ;;  %v4231_v19 = vld [vmem:[%s6352_s4 + $0xa8] ss:$16 sps:$4 sm:$0xff]   ;;  %6675 = vst [vmem:[#allocation30_spill] sm:$0xff] %v4243_v1 }
 0x113   :  { %6664 = vst [vmem:[#allocation19_spill] sm:$0xff] %v4080_v58  ;;  %6673 = vst [vmem:[#allocation28_spill] sm:$0xff] %v4231_v19 }
 0x114   :  { %v3215_v3 = vpop.eup %3214 }
 0x115   :  { %v316_v28 = vpop.f32.mrb[24].mxu1 }
 0x116   :  { %v4082_v61 = vadd.f32 %v316_v28, %v67_v36  ;;  %v318_v34 = vpop.f32.mrb[25].mxu1 }
 0x117   :  { %v4084_v27 = vadd.f32 %v318_v34, %v71_v0  ;;  %v320_v13 = vpop.f32.mrb[26].mxu1 }
 0x118   :  { %6665 = vst [vmem:[#allocation20_spill] sm:$0xff] %v4082_v61  ;;  %v4086_v62 = vadd.f32 %v320_v13, %v67_v36  ;;  %v322_v57 = vpop.f32.mrb[27].mxu1  ;;  %v717_v13 = vadd.f32 1.0, %v3215_v3  ;;  %v299_v61 = vadd.f32 %v298_v37, %v71_v0 }
 0x119   :  { %6666 = vst [vmem:[#allocation21_spill] sm:$0xff] %v4084_v27  ;;  %v4088_v5 = vadd.f32 %v322_v57, %v71_v0  ;;  %v722_v27 = vadd.f32 1.0, %v3213_v63 }
 0x11a   :  { %6667 = vst [vmem:[#allocation22_spill] sm:$0xff] %v4086_v62  ;;  %v297_v62 = vadd.f32 %v296_v31, %v67_v36 }
 0x11b   :  { %6668 = vst [vmem:[#allocation23_spill] sm:$0xff] %v4088_v5  ;;  %3216 = vrcp.f32 %v722_v27  ;;  %v4130_v27 = vld [vmem:[%s6352_s4 + $0x20] ss:$16 sps:$4 sm:$0xff]  }
 0x11c   :  { %3218 = vrcp.f32 %v717_v13  ;;  %v3661_v13 = vmov 0.0|0.0  }
 0x11d   :  { %v326_v23 = vpop.f32.mrb[28].mxu1 }
 0x11e   :  { %v4090_v55 = vadd.f32 %v326_v23, %v67_v36  ;;  %v328_v17 = vpop.f32.mrb[29].mxu1 }
 0x11f   :  { %v4092_v20 = vadd.f32 %v328_v17, %v71_v0  ;;  %v330_v9 = vpop.f32.mrb[30].mxu1 }
 0x120   :  { %6669 = vst [vmem:[#allocation24_spill] sm:$0xff] %v4090_v55  ;;  %v4094_v28 = vadd.f32 %v330_v9, %v67_v36  ;;  %v332_v32 = vpop.f32.mrb[31].mxu1 }
 0x121   :  { %6670 = vst [vmem:[#allocation25_spill] sm:$0xff] %v4092_v20  ;;  %v4096_v34 = vadd.f32 %v332_v32, %v71_v0 }
 0x122   :  { %6671 = vst [vmem:[#allocation26_spill] sm:$0xff] %v4094_v28 }
 0x123   :  { %6672 = vst [vmem:[#allocation27_spill] sm:$0xff] %v4096_v34 }
 0x125   :  { %v703_v57 = vpop.f32.mrb[32].mxu1  ;;  %v3217_v9 = vpop.eup %3216 }
 0x126   :  { %v712_v5 = vadd.f32 %v703_v57, %v297_v62  ;;  %v705_v23 = vpop.f32.mrb[33].mxu1  ;;  %v3219_v28 = vpop.eup %3218  ;;  %v730_v34 = vmul.f32 0.0, %v3217_v9  ;;  %v4154_v57 = vld [vmem:[%s6352_s4 + $0x40] ss:$16 sps:$4 sm:$0xff]   ;;  %v4171_v9 = vld [vmem:[%s6352_s4 + $0x6c] ss:$16 sps:$4 sm:$0xff]  }
 0x127   :  { %v713_v55 = vadd.f32 %v705_v23, %v299_v61  ;;  %v707_v25 = vpop.f32.mrb[34].mxu1  ;;  %v4121_v61 = vld [vmem:[%s6352_s4 + $0x2c] ss:$16 sps:$4 sm:$0xff]   ;;  %v4159_v23 = vld [vmem:[%s6352_s4 + $0x48] ss:$16 sps:$4 sm:$0xff]  }
 0x128   :  { %3220 = vtanh.f32 %v712_v5  ;;  %v708_v17 = vpop.f32.mrb[35].mxu1  ;;  %v4109_v5 = vld [vmem:[%s6352_s4 + $0x8] ss:$16 sps:$4 sm:$0xff]  }
 0x129   :  { %v725_v20 = vsub.f32 0.0, %v713_v55  ;;  %v4104_v55 = vld [vmem:[%s6352_s4] ss:$16 sps:$4 sm:$0xff]   ;;  %v4166_v17 = vld [vmem:[%s6352_s4 + $0x64] ss:$16 sps:$4 sm:$0xff]  }
 0x12b   :  { %v726_v58 = vmul.f32 1.442695, %v725_v20  ;;  %v4135_v20 = vld [vmem:[%s6352_s4 + $0x28] ss:$16 sps:$4 sm:$0xff]  }
 0x12d   :  { %3222 = vpow2.f32 %v726_v58  ;;  %v4116_v58 = vld [vmem:[%s6352_s4 + $0x24] ss:$16 sps:$4 sm:$0xff]  }
 0x132   :  { %v3221_v32 = vpop.eup %3220 }
 0x133   :  { %v731_v63 = vmul.f32 %v3221_v32, %v3219_v28  ;;  %v4142_v28 = vld [vmem:[%s6352_s4 + $0x44] ss:$16 sps:$4 sm:$0xff]   ;;  %v4178_v32 = vld [vmem:[%s6352_s4 + $0x60] ss:$16 sps:$4 sm:$0xff]  }
 0x135   :  { %v4098_v3 = vadd.f32 %v731_v63, %v730_v34  ;;  %v4147_v34 = vld [vmem:[%s6352_s4 + $0x4c] ss:$16 sps:$4 sm:$0xff]   ;;  %v4183_v63 = vld [vmem:[%s6352_s4 + $0x68] ss:$16 sps:$4 sm:$0xff]  }
 0x137   :  { %v3223_v31 = vpop.eup %3222  ;;  %3224 = vtanh.f32 %v4098_v3 }
 0x138   :  { %v728_v36 = vadd.f32 1.0, %v3223_v31  ;;  %v4190_v31 = vld [vmem:[%s6352_s4 + $0x84] ss:$16 sps:$4 sm:$0xff]  }
 0x13a   :  { %3226 = vrcp.f32 %v728_v36  ;;  %v4195_v36 = vld [vmem:[%s6352_s4 + $0x8c] ss:$16 sps:$4 sm:$0xff]  }
 0x141   :  { %v3225_v62 = vpop.eup %3224 }
 0x144   :  { %v3227_v37 = vpop.eup %3226 }
 0x145   :  { %v734_v25 = vmul.f32 %v3227_v37, %v3225_v62  ;;  %v4202_v62 = vld [vmem:[%s6352_s4 + $0x80] ss:$16 sps:$4 sm:$0xff]   ;;  %v4207_v37 = vld [vmem:[%s6352_s4 + $0x88] ss:$16 sps:$4 sm:$0xff]  }
 0x147   :  { %v4111_v0 = vpack.c.bf16 %v734_v25, %v734_v25  ;;  %v4214_v25 = vld [vmem:[%s6352_s4 + $0xa4] ss:$16 sps:$4 sm:$0xff]  }
 0x149   :  { %773 = vmatmul.mubr.bf16.vlgmr.msra.gmra.mrb[4].mxu0 %v4111_v0  ;;  %814 = vmatmul.mubr.bf16.vlgmr.msra.gmra.mrb[36].mxu1 %v4111_v0 }
 0x14a   :  { %1169 = vmatpush1.bf16.msra.mxu0 %v4104_v55  ;;  %1210 = vmatpush1.bf16.msra.mxu1 %v4109_v5 }
 0x14b   :  { %1170 = vmatprep.subr.bf16.mxu0 %v4116_v58  ;;  %1211 = vmatprep.subr.bf16.mxu1 %v4121_v61 }
 0x14c   :  { %1200 = vmatprep.mubr.bf16.mxu0 %v3661_v13  ;;  %1241 = vmatprep.mubr.bf16.mxu1 %v3661_v13  ;;  %v4219_v13 = vld [vmem:[%s6352_s4 + $0xac] ss:$16 sps:$4 sm:$0xff]  }
 0x14e   :  { %1171 = vmatpush1.bf16.msra.mxu0 %v4130_v27  ;;  %1212 = vmatpush1.bf16.msra.mxu1 %v4135_v20 }
 0x14f   :  { %1172 = vmatprep.subr.bf16.mxu0 %v4142_v28  ;;  %1213 = vmatprep.subr.bf16.mxu1 %v4147_v34 }
 0x152   :  { %1173 = vmatpush1.bf16.msra.mxu0 %v4154_v57  ;;  %1214 = vmatpush1.bf16.msra.mxu1 %v4159_v23 }
 0x153   :  { %1174 = vmatprep.subr.bf16.mxu0 %v4166_v17  ;;  %1215 = vmatprep.subr.bf16.mxu1 %v4171_v9 }
 0x156   :  { %1175 = vmatpush1.bf16.msra.mxu0 %v4178_v32  ;;  %1216 = vmatpush1.bf16.msra.mxu1 %v4183_v63 }
 0x157   :  { %1176 = vmatprep.subr.bf16.mxu0 %v4190_v31  ;;  %1217 = vmatprep.subr.bf16.mxu1 %v4195_v36 }
 0x15a   :  { %1177 = vmatpush1.bf16.msra.mxu0 %v4202_v62  ;;  %1218 = vmatpush1.bf16.msra.mxu1 %v4207_v37 }
 0x15b   :  { %1178 = vmatprep.subr.bf16.mxu0 %v4214_v25  ;;  %1219 = vmatprep.subr.bf16.mxu1 %v4219_v13 }
 0x15e   :  { %1179 = vmatpush1.bf16.msra.mxu0 %v4226_v15  ;;  %1220 = vmatpush1.bf16.msra.mxu1 %v4231_v19  ;;  %v4267_v19 = vld [vmem:[%s6352_s4 + $0xec] ss:$16 sps:$4 sm:$0xff]  }
 0x15f   :  { %1180 = vmatprep.subr.bf16.mxu0 %v4238_v11  ;;  %1221 = vmatprep.subr.bf16.mxu1 %v4243_v1  ;;  %6679 = vst [vmem:[#allocation34_spill] sm:$0xff] %v4267_v19  ;;  %v4274_v11 = vld [vmem:[%s6352_s4 + $0xe0] ss:$16 sps:$4 sm:$0xff]   ;;  %v4279_v1 = vld [vmem:[%s6352_s4 + $0xe8] ss:$16 sps:$4 sm:$0xff]  }
 0x160   :  { %6680 = vst [vmem:[#allocation35_spill] sm:$0xff] %v4274_v11  ;;  %6681 = vst [vmem:[#allocation36_spill] sm:$0xff] %v4279_v1 }
 0x162   :  { %1181 = vmatpush1.bf16.msra.mxu0 %v4250_v8  ;;  %1222 = vmatpush1.bf16.msra.mxu1 %v4255_v59  ;;  %v4286_v8 = vld [vmem:[%s6352_s4 + $0x104] ss:$16 sps:$4 sm:$0xff]   ;;  %v4291_v59 = vld [vmem:[%s6352_s4 + $0x10c] ss:$16 sps:$4 sm:$0xff]  }
 0x163   :  { %1182 = vmatprep.subr.bf16.mxu0 %v4262_v6  ;;  %1223 = vmatprep.subr.bf16.mxu1 %v4267_v19  ;;  %6682 = vst [vmem:[#allocation37_spill] sm:$0xff] %v4286_v8  ;;  %6683 = vst [vmem:[#allocation38_spill] sm:$0xff] %v4291_v59  ;;  %v4298_v6 = vld [vmem:[%s6352_s4 + $0x100] ss:$16 sps:$4 sm:$0xff]   ;;  %v4303_v19 = vld [vmem:[%s6352_s4 + $0x108] ss:$16 sps:$4 sm:$0xff]  }
 0x164   :  { %6684 = vst [vmem:[#allocation39_spill] sm:$0xff] %v4298_v6  ;;  %6685 = vst [vmem:[#allocation40_spill] sm:$0xff] %v4303_v19 }
 0x166   :  { %1183 = vmatpush1.bf16.msra.mxu0 %v4274_v11  ;;  %1224 = vmatpush1.bf16.msra.mxu1 %v4279_v1  ;;  %v4310_v11 = vld [vmem:[%s6352_s4 + $0x124] ss:$16 sps:$4 sm:$0xff]   ;;  %v4315_v1 = vld [vmem:[%s6352_s4 + $0x12c] ss:$16 sps:$4 sm:$0xff]  }
 0x167   :  { %1184 = vmatprep.subr.bf16.mxu0 %v4286_v8  ;;  %1225 = vmatprep.subr.bf16.mxu1 %v4291_v59  ;;  %6686 = vst [vmem:[#allocation41_spill] sm:$0xff] %v4310_v11  ;;  %6687 = vst [vmem:[#allocation42_spill] sm:$0xff] %v4315_v1  ;;  %v4322_v8 = vld [vmem:[%s6352_s4 + $0x120] ss:$16 sps:$4 sm:$0xff]   ;;  %v4327_v59 = vld [vmem:[%s6352_s4 + $0x128] ss:$16 sps:$4 sm:$0xff]  }
 0x168   :  { %6688 = vst [vmem:[#allocation43_spill] sm:$0xff] %v4322_v8  ;;  %6689 = vst [vmem:[#allocation44_spill] sm:$0xff] %v4327_v59 }
 0x16a   :  { %1185 = vmatpush1.bf16.msra.mxu0 %v4298_v6  ;;  %1226 = vmatpush1.bf16.msra.mxu1 %v4303_v19  ;;  %v4334_v6 = vld [vmem:[%s6352_s4 + $0x144] ss:$16 sps:$4 sm:$0xff]   ;;  %v4339_v19 = vld [vmem:[%s6352_s4 + $0x14c] ss:$16 sps:$4 sm:$0xff]  }
 0x16b   :  { %1186 = vmatprep.subr.bf16.mxu0 %v4310_v11  ;;  %1227 = vmatprep.subr.bf16.mxu1 %v4315_v1  ;;  %6690 = vst [vmem:[#allocation45_spill] sm:$0xff] %v4334_v6  ;;  %6691 = vst [vmem:[#allocation46_spill] sm:$0xff] %v4339_v19  ;;  %v4346_v11 = vld [vmem:[%s6352_s4 + $0x140] ss:$16 sps:$4 sm:$0xff]   ;;  %v4351_v1 = vld [vmem:[%s6352_s4 + $0x148] ss:$16 sps:$4 sm:$0xff]  }
 0x16c   :  { %6692 = vst [vmem:[#allocation47_spill] sm:$0xff] %v4346_v11  ;;  %6693 = vst [vmem:[#allocation48_spill] sm:$0xff] %v4351_v1 }
 0x16e   :  { %1187 = vmatpush1.bf16.msra.mxu0 %v4322_v8  ;;  %1228 = vmatpush1.bf16.msra.mxu1 %v4327_v59  ;;  %v4358_v8 = vld [vmem:[%s6352_s4 + $0x164] ss:$16 sps:$4 sm:$0xff]   ;;  %v4363_v59 = vld [vmem:[%s6352_s4 + $0x16c] ss:$16 sps:$4 sm:$0xff]  }
 0x16f   :  { %1188 = vmatprep.subr.bf16.mxu0 %v4334_v6  ;;  %1229 = vmatprep.subr.bf16.mxu1 %v4339_v19  ;;  %6694 = vst [vmem:[#allocation49_spill] sm:$0xff] %v4358_v8  ;;  %6695 = vst [vmem:[#allocation50_spill] sm:$0xff] %v4363_v59  ;;  %v4370_v6 = vld [vmem:[%s6352_s4 + $0x160] ss:$16 sps:$4 sm:$0xff]   ;;  %v4375_v19 = vld [vmem:[%s6352_s4 + $0x168] ss:$16 sps:$4 sm:$0xff]  }
 0x170   :  { %6696 = vst [vmem:[#allocation51_spill] sm:$0xff] %v4370_v6  ;;  %6697 = vst [vmem:[#allocation52_spill] sm:$0xff] %v4375_v19 }
 0x172   :  { %1189 = vmatpush1.bf16.msra.mxu0 %v4346_v11  ;;  %1230 = vmatpush1.bf16.msra.mxu1 %v4351_v1  ;;  %v4382_v11 = vld [vmem:[%s6352_s4 + $0x184] ss:$16 sps:$4 sm:$0xff]   ;;  %v4387_v1 = vld [vmem:[%s6352_s4 + $0x18c] ss:$16 sps:$4 sm:$0xff]  }
 0x173   :  { %1190 = vmatprep.subr.bf16.mxu0 %v4358_v8  ;;  %1231 = vmatprep.subr.bf16.mxu1 %v4363_v59  ;;  %6698 = vst [vmem:[#allocation53_spill] sm:$0xff] %v4382_v11  ;;  %6699 = vst [vmem:[#allocation54_spill] sm:$0xff] %v4387_v1  ;;  %v4394_v8 = vld [vmem:[%s6352_s4 + $0x180] ss:$16 sps:$4 sm:$0xff]   ;;  %v4399_v59 = vld [vmem:[%s6352_s4 + $0x188] ss:$16 sps:$4 sm:$0xff]  }
 0x174   :  { %6700 = vst [vmem:[#allocation55_spill] sm:$0xff] %v4394_v8  ;;  %6701 = vst [vmem:[#allocation56_spill] sm:$0xff] %v4399_v59 }
 0x176   :  { %1191 = vmatpush1.bf16.msra.mxu0 %v4370_v6  ;;  %1232 = vmatpush1.bf16.msra.mxu1 %v4375_v19  ;;  %v4406_v6 = vld [vmem:[%s6352_s4 + $0x1a4] ss:$16 sps:$4 sm:$0xff]   ;;  %v4411_v19 = vld [vmem:[%s6352_s4 + $0x1ac] ss:$16 sps:$4 sm:$0xff]  }
 0x177   :  { %1192 = vmatprep.subr.bf16.mxu0 %v4382_v11  ;;  %1233 = vmatprep.subr.bf16.mxu1 %v4387_v1  ;;  %6702 = vst [vmem:[#allocation57_spill] sm:$0xff] %v4406_v6  ;;  %6703 = vst [vmem:[#allocation58_spill] sm:$0xff] %v4411_v19  ;;  %v4418_v11 = vld [vmem:[%s6352_s4 + $0x1a0] ss:$16 sps:$4 sm:$0xff]   ;;  %v4423_v1 = vld [vmem:[%s6352_s4 + $0x1a8] ss:$16 sps:$4 sm:$0xff]  }
 0x178   :  { %6704 = vst [vmem:[#allocation59_spill] sm:$0xff] %v4418_v11  ;;  %6705 = vst [vmem:[#allocation60_spill] sm:$0xff] %v4423_v1 }
 0x17a   :  { %1193 = vmatpush1.bf16.msra.mxu0 %v4394_v8  ;;  %1234 = vmatpush1.bf16.msra.mxu1 %v4399_v59  ;;  %v4430_v8 = vld [vmem:[%s6352_s4 + $0x1c4] ss:$16 sps:$4 sm:$0xff]   ;;  %v4435_v59 = vld [vmem:[%s6352_s4 + $0x1cc] ss:$16 sps:$4 sm:$0xff]  }
 0x17b   :  { %1194 = vmatprep.subr.bf16.mxu0 %v4406_v6  ;;  %1235 = vmatprep.subr.bf16.mxu1 %v4411_v19  ;;  %6706 = vst [vmem:[#allocation61_spill] sm:$0xff] %v4430_v8  ;;  %6707 = vst [vmem:[#allocation62_spill] sm:$0xff] %v4435_v59  ;;  %v4442_v6 = vld [vmem:[%s6352_s4 + $0x1c0] ss:$16 sps:$4 sm:$0xff]   ;;  %v4447_v19 = vld [vmem:[%s6352_s4 + $0x1c8] ss:$16 sps:$4 sm:$0xff]  }
 0x17c   :  { %6708 = vst [vmem:[#allocation63_spill] sm:$0xff] %v4442_v6  ;;  %6709 = vst [vmem:[#allocation64_spill] sm:$0xff] %v4447_v19 }
 0x17e   :  { %1195 = vmatpush1.bf16.msra.mxu0 %v4418_v11  ;;  %1236 = vmatpush1.bf16.msra.mxu1 %v4423_v1  ;;  %v4454_v11 = vld [vmem:[%s6352_s4 + $0x1e4] ss:$16 sps:$4 sm:$0xff]   ;;  %v4459_v1 = vld [vmem:[%s6352_s4 + $0x1ec] ss:$16 sps:$4 sm:$0xff]  }
 0x17f   :  { %1196 = vmatprep.subr.bf16.mxu0 %v4430_v8  ;;  %1237 = vmatprep.subr.bf16.mxu1 %v4435_v59  ;;  %6710 = vst [vmem:[#allocation65_spill] sm:$0xff] %v4454_v11  ;;  %6711 = vst [vmem:[#allocation66_spill] sm:$0xff] %v4459_v1  ;;  %v4466_v8 = vld [vmem:[%s6352_s4 + $0x1e0] ss:$16 sps:$4 sm:$0xff]   ;;  %v4471_v59 = vld [vmem:[%s6352_s4 + $0x1e8] ss:$16 sps:$4 sm:$0xff]  }
 0x180   :  { %6712 = vst [vmem:[#allocation67_spill] sm:$0xff] %v4466_v8  ;;  %6713 = vst [vmem:[#allocation68_spill] sm:$0xff] %v4471_v59 }
 0x182   :  { %1197 = vmatpush1.bf16.msra.mxu0 %v4442_v6  ;;  %1238 = vmatpush1.bf16.msra.mxu1 %v4447_v19  ;;  %v4480_v19 = vld [vmem:[%s6350_s2 + $0x4] ss:$16 sps:$4 sm:$0xff]  }
 0x183   :  { %1198 = vmatprep.subr.bf16.mxu0 %v4454_v11  ;;  %1239 = vmatprep.subr.bf16.mxu1 %v4459_v1  ;;  %6714 = vst [vmem:[#allocation69_spill] sm:$0xff] %v4480_v19  ;;  %v4489_v1 = vld [vmem:[%s6350_s2] ss:$16 sps:$4 sm:$0xff]  }
 0x184   :  { %6715 = vst [vmem:[#allocation70_spill] sm:$0xff] %v4489_v1 }
 0x186   :  { %1199 = vmatpush1.bf16.msra.mxu0 %v4466_v8  ;;  %1240 = vmatpush1.bf16.msra.mxu1 %v4471_v59  ;;  %v4496_v59 = vld [vmem:[%s6350_s2 + $0x24] ss:$16 sps:$4 sm:$0xff]  }
 0x187   :  { %1298 = vmatprep.subr.bf16.mxu0 %v4480_v19  ;;  %1339 = vmatprep.subr.bf16.mxu1 %v3865_v35  ;;  %6716 = vst [vmem:[#allocation71_spill] sm:$0xff] %v4496_v59  ;;  %v6717_v35 = vmov 0  }
 0x189   :  { %1201 = vmatmul.mubr.bf16.vlgmr.msra.gmra.mrb[8].mxu0 %v4111_v0  ;;  %1242 = vmatmul.mubr.bf16.vlgmr.msra.gmra.mrb[40].mxu1 %v4111_v0  ;;  %v4505_v0 = vld [vmem:[%s6350_s2 + $0x20] ss:$16 sps:$4 sm:$0xff]  }
 0x18a   :  { %1299 = vmatpush1.bf16.msra.mxu0 %v4489_v1  ;;  %1340 = vmatpush1.bf16.msra.mxu1 %v3891_v38  ;;  %6718 = vst [vmem:[#allocation72_spill] sm:$0xff] %v4505_v0 }
 0x18b   :  { %1300 = vmatprep.subr.bf16.mxu0 %v4496_v59  ;;  %1341 = vmatprep.subr.bf16.mxu1 %v3897_v39 }
 0x18c   :  { %1330 = vmatprep.mubr.bf16.mxu0 %v6717_v35  ;;  %1371 = vmatprep.mubr.bf16.mxu1 %v6717_v35 }
 0x18e   :  { %1301 = vmatpush1.bf16.msra.mxu0 %v4505_v0  ;;  %1342 = vmatpush1.bf16.msra.mxu1 %v3905_v40 }
 0x18f   :  { %1302 = vmatprep.subr.bf16.mxu0 %v3750_v10  ;;  %1343 = vmatprep.subr.bf16.mxu1 %v3912_v41 }
 0x192   :  { %1303 = vmatpush1.bf16.msra.mxu0 %v3758_v12  ;;  %1344 = vmatpush1.bf16.msra.mxu1 %v3920_v42 }
 0x193   :  { %1304 = vmatprep.subr.bf16.mxu0 %v3768_v14  ;;  %1345 = vmatprep.subr.bf16.mxu1 %v3926_v43 }
 0x196   :  { %1305 = vmatpush1.bf16.msra.mxu0 %v3777_v16  ;;  %1346 = vmatpush1.bf16.msra.mxu1 %v3935_v44 }
 0x197   :  { %1306 = vmatprep.subr.bf16.mxu0 %v3786_v18  ;;  %1347 = vmatprep.subr.bf16.mxu1 %v3942_v45 }
 0x19a   :  { %1307 = vmatpush1.bf16.msra.mxu0 %v3798_v21  ;;  %1348 = vmatpush1.bf16.msra.mxu1 %v3950_v46 }
 0x19b   :  { %1308 = vmatprep.subr.bf16.mxu0 %v3804_v22  ;;  %1349 = vmatprep.subr.bf16.mxu1 %v3956_v47 }
 0x19e   :  { %1309 = vmatpush1.bf16.msra.mxu0 %v3814_v24  ;;  %1350 = vmatpush1.bf16.msra.mxu1 %v3964_v48 }
 0x19f   :  { %1310 = vmatprep.subr.bf16.mxu0 %v3824_v26  ;;  %1351 = vmatprep.subr.bf16.mxu1 %v3971_v49 }
 0x1a2   :  { %1311 = vmatpush1.bf16.msra.mxu0 %v3835_v29  ;;  %1352 = vmatpush1.bf16.msra.mxu1 %v3977_v50 }
 0x1a3   :  { %1312 = vmatprep.subr.bf16.mxu0 %v3841_v30  ;;  %1353 = vmatprep.subr.bf16.mxu1 %v3983_v51 }
 0x1a6   :  { %1313 = vmatpush1.bf16.msra.mxu0 %v3855_v33  ;;  %1354 = vmatpush1.bf16.msra.mxu1 %v3990_v52 }
 0x1a7   :  { %1385 = vmatprep.subr.bf16.mxu0 %v4016_v53  ;;  %1426 = vmatprep.subr.bf16.mxu1 %v4021_v54 }
 0x21c   :  { %v774_v10 = vpop.f32.mrb[4].mxu0  ;;  %v815_v12 = vpop.f32.mrb[36].mxu1 }
 0x21d   :  { %v822_v14 = vadd.f32 %v774_v10, %v4036_v2  ;;  %v824_v16 = vadd.f32 %v815_v12, %v4070_v60  ;;  %v776_v18 = vpop.f32.mrb[5].mxu0  ;;  %v817_v21 = vpop.f32.mrb[37].mxu1  ;;  %v6719_v12 = vsub.s32 0, %v4025_v56 }
 0x21e   :  { %v823_v22 = vadd.f32 %v776_v18, %v4038_v4  ;;  %v825_v24 = vadd.f32 %v817_v21, %v4072_v7  ;;  %v778_v26 = vpop.f32.mrb[6].mxu0  ;;  %v819_v29 = vpop.f32.mrb[38].mxu1 }
 0x21f   :  { %v1250_v30 = vsub.f32 0.0, %v822_v14  ;;  %v779_v33 = vpop.f32.mrb[7].mxu0  ;;  %v820_v38 = vpop.f32.mrb[39].mxu1 }
 0x220   :  { %v1255_v39 = vsub.f32 0.0, %v823_v22  ;;  %v1261_v42 = vsub.f32 0.0, %v825_v24  ;;  %v6723_v33 = vsub.s32 3, %v4025_v56 }
 0x221   :  { %v1251_v40 = vmul.f32 1.442695, %v1250_v30 }
 0x222   :  { %v1256_v41 = vmul.f32 1.442695, %v1255_v39  ;;  %v1262_v43 = vmul.f32 1.442695, %v1261_v42 }
 0x223   :  { %3228 = vpow2.f32 %v1251_v40 }
 0x224   :  { %3230 = vpow2.f32 %v1256_v41 }
 0x225   :  { %3232 = vpow2.f32 %v1262_v43 }
 0x226   :  { %3234 = vtanh.f32 %v824_v16  ;;  %v6721_v16 = vsub.s32 1, %v4025_v56 }
 0x22d   :  { %v3229_v44 = vpop.eup %3228 }
 0x22e   :  { %v3231_v45 = vpop.eup %3230  ;;  %v1253_v46 = vadd.f32 1.0, %v3229_v44 }
 0x22f   :  { %v1258_v47 = vadd.f32 1.0, %v3231_v45  ;;  %v3233_v48 = vpop.eup %3232 }
 0x230   :  { %3236 = vrcp.f32 %v1253_v46  ;;  %v3235_v49 = vpop.eup %3234  ;;  %v1264_v53 = vadd.f32 1.0, %v3233_v48  ;;  %v6725_v48 = vld [vmem:[#allocation28_spill] sm:$0xff] }
 0x231   :  { %3238 = vrcp.f32 %v1258_v47 }
 0x232   :  { %3240 = vrcp.f32 %v1264_v53 }
 0x23a   :  { %v3237_v50 = vpop.eup %3236 }
 0x23b   :  { %v3239_v51 = vpop.eup %3238  ;;  %v1267_v52 = vmul.f32 %v3237_v50, %v3235_v49  ;;  %v6726_v49 = vld [vmem:[#allocation29_spill] sm:$0xff]  ;;  %v6727_v50 = vld [vmem:[#allocation30_spill] sm:$0xff] }
 0x23c   :  { %v1266_v54 = vmul.f32 %v3239_v51, %v4098_v3  ;;  %v3241_v4 = vpop.eup %3240  ;;  %v463_v3 = vld [vmem:[%s6354_s5] sm:$0xf] }
 0x23d   :  { %v4562_v14 = vrot.slane %v463_v3, %v6719_v12  ;;  %v4568_v18 = vrot.slane %v463_v3, %v6721_v16  ;;  %v4578_v38 = vrot.slane %v463_v3, %v6723_v33 }
 0x23e   :  { %v4540_v2 = vadd.f32 %v1267_v52, %v1266_v54  ;;  %v6728_v52 = vsub.s32 2, %v4025_v56  ;;  %v6730_v54 = vld [vmem:[#allocation31_spill] sm:$0xff]  ;;  %v6737_v56 = vld [vmem:[#allocation38_spill] sm:$0xff] }
 0x23f   :  { %6720 = vst [vmem:[#allocation73_spill] sm:$0xff] %v4562_v14  ;;  %6722 = vst [vmem:[#allocation74_spill] sm:$0xff] %v4568_v18 }
 0x240   :  { %3242 = vtanh.f32 %v4540_v2  ;;  %6724 = vst [vmem:[#allocation75_spill] sm:$0xff] %v4578_v38  ;;  %v4591_v53 = vrot.slane %v463_v3, %v6728_v52 }
 0x242   :  { %6729 = vst [vmem:[#allocation28_spill] sm:$0xff] %v4591_v53 }
 0x24a   :  { %v3243_v60 = vpop.eup %3242 }
 0x24b   :  { %v1270_v7 = vmul.f32 %v3243_v60, %v3241_v4  ;;  %v6731_v4 = vld [vmem:[#allocation32_spill] sm:$0xff]  ;;  %v6732_v60 = vld [vmem:[#allocation33_spill] sm:$0xff] }
 0x24d   :  { %v4543_v10 = vpack.c.bf16 %v1270_v7, %v1270_v7  ;;  %v6733_v7 = vld [vmem:[#allocation34_spill] sm:$0xff] }
 0x24f   :  { %1331 = vmatmul.mubr.bf16.vlgmr.msra.gmra.mrb[12].mxu0 %v4543_v10  ;;  %1372 = vmatmul.mubr.bf16.vlgmr.msra.gmra.mrb[44].mxu1 %v4543_v10 }
 0x250   :  { %1386 = vmatpush1.bf16.msra.mxu0 %v4104_v55  ;;  %1427 = vmatpush1.bf16.msra.mxu1 %v4109_v5 }
 0x251   :  { %1387 = vmatprep.subr.bf16.mxu0 %v4116_v58  ;;  %1428 = vmatprep.subr.bf16.mxu1 %v4121_v61 }
 0x254   :  { %1388 = vmatpush1.bf16.msra.mxu0 %v4130_v27  ;;  %1429 = vmatpush1.bf16.msra.mxu1 %v4135_v20 }
 0x255   :  { %1389 = vmatprep.subr.bf16.mxu0 %v4142_v28  ;;  %1430 = vmatprep.subr.bf16.mxu1 %v4147_v34 }
 0x258   :  { %1390 = vmatpush1.bf16.msra.mxu0 %v4154_v57  ;;  %1431 = vmatpush1.bf16.msra.mxu1 %v4159_v23 }
 0x259   :  { %1391 = vmatprep.subr.bf16.mxu0 %v4166_v17  ;;  %1432 = vmatprep.subr.bf16.mxu1 %v4171_v9 }
 0x25c   :  { %v1202_v21 = vpop.f32.mrb[8].mxu0  ;;  %v1243_v22 = vpop.f32.mrb[40].mxu1  ;;  %1392 = vmatpush1.bf16.msra.mxu0 %v4178_v32  ;;  %1433 = vmatpush1.bf16.msra.mxu1 %v4183_v63 }
 0x25d   :  { %v1203_v24 = vadd.f32 %v1202_v21, %v4562_v14  ;;  %v1204_v26 = vpop.f32.mrb[9].mxu0  ;;  %v1245_v29 = vpop.f32.mrb[41].mxu1  ;;  %1393 = vmatprep.subr.bf16.mxu0 %v4190_v31  ;;  %1434 = vmatprep.subr.bf16.mxu1 %v4195_v36  ;;  %v1244_v16 = vadd.f32 %v1243_v22, %v4591_v53  ;;  %v6734_v21 = vld [vmem:[#allocation35_spill] sm:$0xff]  ;;  %v6740_v22 = vld [vmem:[#allocation41_spill] sm:$0xff] }
 0x25e   :  { %v1205_v30 = vadd.f32 %v1204_v26, %v4568_v18  ;;  %v1206_v39 = vpop.f32.mrb[10].mxu0  ;;  %v1247_v40 = vpop.f32.mrb[42].mxu1  ;;  %v1246_v47 = vadd.f32 %v1245_v29, %v4578_v38  ;;  %v6736_v29 = vld [vmem:[#allocation37_spill] sm:$0xff] }
 0x25f   :  { %v1271_v41 = vsub.f32 0.0, %v1203_v24  ;;  %v1207_v42 = vpop.f32.mrb[11].mxu0  ;;  %v1248_v43 = vpop.f32.mrb[43].mxu1  ;;  %v6735_v24 = vld [vmem:[#allocation36_spill] sm:$0xff]  ;;  %v6738_v39 = vld [vmem:[#allocation39_spill] sm:$0xff] }
 0x260   :  { %v1276_v44 = vsub.f32 0.0, %v1205_v30  ;;  %1394 = vmatpush1.bf16.msra.mxu0 %v4202_v62  ;;  %1435 = vmatpush1.bf16.msra.mxu1 %v4207_v37  ;;  %v1282_v51 = vsub.f32 0.0, %v1246_v47  ;;  %v6739_v40 = vld [vmem:[#allocation40_spill] sm:$0xff]  ;;  %v6742_v42 = vld [vmem:[#allocation43_spill] sm:$0xff] }
 0x261   :  { %v1272_v45 = vmul.f32 1.442695, %v1271_v41  ;;  %1395 = vmatprep.subr.bf16.mxu0 %v4214_v25  ;;  %1436 = vmatprep.subr.bf16.mxu1 %v4219_v13  ;;  %v6741_v41 = vld [vmem:[#allocation42_spill] sm:$0xff]  ;;  %v6743_v43 = vld [vmem:[#allocation44_spill] sm:$0xff]  ;;  %v6746_v47 = vld [vmem:[#allocation47_spill] sm:$0xff] }
 0x262   :  { %v1277_v46 = vmul.f32 1.442695, %v1276_v44  ;;  %v1283_v12 = vmul.f32 1.442695, %v1282_v51  ;;  %v6744_v44 = vld [vmem:[#allocation45_spill] sm:$0xff]  ;;  %v6747_v51 = vld [vmem:[#allocation48_spill] sm:$0xff] }
 0x263   :  { %3244 = vpow2.f32 %v1272_v45  ;;  %v6745_v45 = vld [vmem:[#allocation46_spill] sm:$0xff] }
 0x264   :  { %3246 = vpow2.f32 %v1277_v46  ;;  %1396 = vmatpush1.bf16.msra.mxu0 %v4226_v15  ;;  %1437 = vmatpush1.bf16.msra.mxu1 %v6725_v48 }
 0x265   :  { %1397 = vmatprep.subr.bf16.mxu0 %v6726_v49  ;;  %1438 = vmatprep.subr.bf16.mxu1 %v6727_v50  ;;  %3248 = vpow2.f32 %v1283_v12  ;;  %v6748_v12 = vld [vmem:[#allocation49_spill] sm:$0xff] }
 0x266   :  { %3250 = vtanh.f32 %v1244_v16  ;;  %v6749_v16 = vld [vmem:[#allocation50_spill] sm:$0xff] }
 0x268   :  { %1398 = vmatpush1.bf16.msra.mxu0 %v6730_v54  ;;  %1439 = vmatpush1.bf16.msra.mxu1 %v6731_v4 }
 0x269   :  { %1399 = vmatprep.subr.bf16.mxu0 %v6732_v60  ;;  %1440 = vmatprep.subr.bf16.mxu1 %v6733_v7 }
 0x26c   :  { %1400 = vmatpush1.bf16.msra.mxu0 %v6734_v21  ;;  %1441 = vmatpush1.bf16.msra.mxu1 %v6735_v24 }
 0x26d   :  { %v3245_v26 = vpop.eup %3244  ;;  %1401 = vmatprep.subr.bf16.mxu0 %v6736_v29  ;;  %1442 = vmatprep.subr.bf16.mxu1 %v6737_v56 }
 0x26e   :  { %v3247_v3 = vpop.eup %3246  ;;  %v1274_v30 = vadd.f32 1.0, %v3245_v26 }
 0x26f   :  { %v1279_v33 = vadd.f32 1.0, %v3247_v3  ;;  %v3249_v46 = vpop.eup %3248 }
 0x270   :  { %3252 = vrcp.f32 %v1274_v30  ;;  %1402 = vmatpush1.bf16.msra.mxu0 %v6738_v39  ;;  %1443 = vmatpush1.bf16.msra.mxu1 %v6739_v40  ;;  %v3251_v52 = vpop.eup %3250 }
 0x271   :  { %3254 = vrcp.f32 %v1279_v33  ;;  %1403 = vmatprep.subr.bf16.mxu0 %v6740_v22  ;;  %1444 = vmatprep.subr.bf16.mxu1 %v6741_v41  ;;  %v1285_v33 = vadd.f32 1.0, %v3249_v46  ;;  %v6753_v41 = vld [vmem:[#allocation54_spill] sm:$0xff] }
 0x272   :  { %v6758_v46 = vld [vmem:[#allocation58_spill] sm:$0xff] }
 0x273   :  { %3256 = vrcp.f32 %v1285_v33  ;;  %v6764_v33 = vld [vmem:[#allocation66_spill] sm:$0xff] }
 0x274   :  { %1404 = vmatpush1.bf16.msra.mxu0 %v6742_v42  ;;  %1445 = vmatpush1.bf16.msra.mxu1 %v6743_v43  ;;  %v6750_v43 = vld [vmem:[#allocation51_spill] sm:$0xff] }
 0x275   :  { %1405 = vmatprep.subr.bf16.mxu0 %v6744_v44  ;;  %1446 = vmatprep.subr.bf16.mxu1 %v6745_v45  ;;  %v6751_v44 = vld [vmem:[#allocation52_spill] sm:$0xff]  ;;  %v6752_v45 = vld [vmem:[#allocation53_spill] sm:$0xff] }
 0x278   :  { %1406 = vmatpush1.bf16.msra.mxu0 %v6746_v47  ;;  %1447 = vmatpush1.bf16.msra.mxu1 %v6747_v51 }
 0x279   :  { %1407 = vmatprep.subr.bf16.mxu0 %v6748_v12  ;;  %1448 = vmatprep.subr.bf16.mxu1 %v6749_v16  ;;  %v6755_v12 = vld [vmem:[#allocation55_spill] sm:$0xff]  ;;  %v6756_v16 = vld [vmem:[#allocation56_spill] sm:$0xff] }
 0x27a   :  { %v3253_v26 = vpop.eup %3252 }
 0x27b   :  { %v3255_v3 = vpop.eup %3254  ;;  %v1288_v30 = vmul.f32 %v3253_v26, %v3251_v52  ;;  %v6757_v52 = vld [vmem:[#allocation57_spill] sm:$0xff]  ;;  %v6759_v26 = vld [vmem:[#allocation59_spill] sm:$0xff] }
 0x27c   :  { %v1287_v42 = vmul.f32 0.0, %v3255_v3  ;;  %1408 = vmatpush1.bf16.msra.mxu0 %v6750_v43  ;;  %1449 = vmatpush1.bf16.msra.mxu1 %v6751_v44  ;;  %v6760_v3 = vld [vmem:[#allocation60_spill] sm:$0xff] }
 0x27d   :  { %1409 = vmatprep.subr.bf16.mxu0 %v6752_v45  ;;  %1450 = vmatprep.subr.bf16.mxu1 %v6753_v41  ;;  %v6761_v45 = vld [vmem:[#allocation61_spill] sm:$0xff]  ;;  %v6762_v41 = vld [vmem:[#allocation62_spill] sm:$0xff] }
 0x27e   :  { %v4618_v47 = vadd.f32 %v1288_v30, %v1287_v42  ;;  %v6763_v42 = vld [vmem:[#allocation64_spill] sm:$0xff]  ;;  %v3257_v30 = vpop.eup %3256 }
 0x280   :  { %6754 = vst [vmem:[#allocation29_spill] sm:$0xff] %v4618_v47  ;;  %3258 = vtanh.f32 %v4618_v47  ;;  %1410 = vmatpush1.bf16.msra.mxu0 %v6755_v12  ;;  %1451 = vmatpush1.bf16.msra.mxu1 %v6756_v16 }
 0x281   :  { %1411 = vmatprep.subr.bf16.mxu0 %v6757_v52  ;;  %1452 = vmatprep.subr.bf16.mxu1 %v6758_v46 }
 0x284   :  { %1412 = vmatpush1.bf16.msra.mxu0 %v6759_v26  ;;  %1453 = vmatpush1.bf16.msra.mxu1 %v6760_v3  ;;  %v6766_v26 = vld [vmem:[#allocation68_spill] sm:$0xff] }
 0x285   :  { %1413 = vmatprep.subr.bf16.mxu0 %v6761_v45  ;;  %1454 = vmatprep.subr.bf16.mxu1 %v6762_v41 }
 0x288   :  { %1414 = vmatpush1.bf16.msra.mxu0 %v4442_v6  ;;  %1455 = vmatpush1.bf16.msra.mxu1 %v6763_v42  ;;  %v4643_v42 = vld [vmem:[%s6350_s2 + $0xc] ss:$16 sps:$4 sm:$0xff]  }
 0x289   :  { %1415 = vmatprep.subr.bf16.mxu0 %v4454_v11  ;;  %1456 = vmatprep.subr.bf16.mxu1 %v6764_v33  ;;  %6767 = vst [vmem:[#allocation31_spill] sm:$0xff] %v4643_v42 }
 0x28a   :  { %v3259_v52 = vpop.eup %3258 }
 0x28b   :  { %v4633_v16 = vmul.f32 %v3259_v52, %v3257_v30  ;;  %v4652_v52 = vld [vmem:[%s6350_s2 + $0x8] ss:$16 sps:$4 sm:$0xff]   ;;  %v4659_v30 = vld [vmem:[%s6350_s2 + $0x2c] ss:$16 sps:$4 sm:$0xff]  }
 0x28c   :  { %1416 = vmatpush1.bf16.msra.mxu0 %v4466_v8  ;;  %1457 = vmatpush1.bf16.msra.mxu1 %v6766_v26  ;;  %6768 = vst [vmem:[#allocation32_spill] sm:$0xff] %v4652_v52  ;;  %6769 = vst [vmem:[#allocation33_spill] sm:$0xff] %v4659_v30  ;;  %v6800_v8 = vld [vmem:[#allocation17_spill] sm:$0xff] }
 0x28d   :  { %6765 = vst [vmem:[#allocation30_spill] sm:$0xff] %v4633_v16  ;;  %v1384_v45 = vpack.c.bf16 %v4633_v16, %v4633_v16  ;;  %1515 = vmatprep.subr.bf16.mxu0 %v4480_v19  ;;  %1556 = vmatprep.subr.bf16.mxu1 %v4643_v42  ;;  %v4680_v16 = vld [vmem:[%s6350_s2 + $0x4c] ss:$16 sps:$4 sm:$0xff]  }
 0x28e   :  { %6772 = vst [vmem:[#allocation36_spill] sm:$0xff] %v4680_v16  ;;  %v6799_v19 = vld [vmem:[#allocation5_spill] sm:$0xff] }
 0x28f   :  { %1417 = vmatprep.mubr.bf16.mxu0 %v1384_v45  ;;  %1458 = vmatprep.mubr.bf16.mxu1 %v1384_v45  ;;  %v4674_v45 = vld [vmem:[%s6350_s2 + $0x44] ss:$16 sps:$4 sm:$0xff]  }
 0x290   :  { %1418 = vmatmul.mubr.bf16.vlgmr.msra.gmra.mrb[16].mxu0 %v4543_v10  ;;  %1459 = vmatmul.mubr.bf16.vlgmr.msra.gmra.mrb[48].mxu1 %v4543_v10  ;;  %v4668_v10 = vld [vmem:[%s6350_s2 + $0x28] ss:$16 sps:$4 sm:$0xff]   ;;  %6771 = vst [vmem:[#allocation35_spill] sm:$0xff] %v4674_v45 }
 0x291   :  { %1516 = vmatpush1.bf16.msra.mxu0 %v4489_v1  ;;  %1557 = vmatpush1.bf16.msra.mxu1 %v4652_v52  ;;  %6770 = vst [vmem:[#allocation34_spill] sm:$0xff] %v4668_v10  ;;  %v6798_v52 = vld [vmem:[#allocation16_spill] sm:$0xff] }
 0x292   :  { %1517 = vmatprep.subr.bf16.mxu0 %v4496_v59  ;;  %1558 = vmatprep.subr.bf16.mxu1 %v4659_v30  ;;  %v6797_v30 = vld [vmem:[#allocation4_spill] sm:$0xff] }
 0x293   :  { %1547 = vmatprep.mubr.bf16.mxu0 %v6717_v35  ;;  %1588 = vmatprep.mubr.bf16.mxu1 %v6717_v35 }
 0x295   :  { %1518 = vmatpush1.bf16.msra.mxu0 %v4505_v0  ;;  %1559 = vmatpush1.bf16.msra.mxu1 %v4668_v10  ;;  %v4686_v0 = vld [vmem:[%s6350_s2 + $0x40] ss:$16 sps:$4 sm:$0xff]   ;;  %v4692_v10 = vld [vmem:[%s6350_s2 + $0x48] ss:$16 sps:$4 sm:$0xff]  }
 0x296   :  { %1519 = vmatprep.subr.bf16.mxu0 %v4674_v45  ;;  %1560 = vmatprep.subr.bf16.mxu1 %v4680_v16  ;;  %6773 = vst [vmem:[#allocation37_spill] sm:$0xff] %v4686_v0  ;;  %6774 = vst [vmem:[#allocation38_spill] sm:$0xff] %v4692_v10  ;;  %v4698_v45 = vld [vmem:[%s6350_s2 + $0x64] ss:$16 sps:$4 sm:$0xff]   ;;  %v4704_v16 = vld [vmem:[%s6350_s2 + $0x6c] ss:$16 sps:$4 sm:$0xff]  }
 0x297   :  { %6775 = vst [vmem:[#allocation39_spill] sm:$0xff] %v4698_v45  ;;  %6776 = vst [vmem:[#allocation40_spill] sm:$0xff] %v4704_v16 }
 0x299   :  { %1520 = vmatpush1.bf16.msra.mxu0 %v4686_v0  ;;  %1561 = vmatpush1.bf16.msra.mxu1 %v4692_v10  ;;  %v4710_v0 = vld [vmem:[%s6350_s2 + $0x60] ss:$16 sps:$4 sm:$0xff]   ;;  %v4716_v10 = vld [vmem:[%s6350_s2 + $0x68] ss:$16 sps:$4 sm:$0xff]  }
 0x29a   :  { %1521 = vmatprep.subr.bf16.mxu0 %v4698_v45  ;;  %1562 = vmatprep.subr.bf16.mxu1 %v4704_v16  ;;  %6777 = vst [vmem:[#allocation41_spill] sm:$0xff] %v4710_v0  ;;  %6778 = vst [vmem:[#allocation48_spill] sm:$0xff] %v4716_v10  ;;  %v4722_v45 = vld [vmem:[%s6350_s2 + $0x84] ss:$16 sps:$4 sm:$0xff]   ;;  %v4728_v16 = vld [vmem:[%s6350_s2 + $0x8c] ss:$16 sps:$4 sm:$0xff]  }
 0x29b   :  { %6779 = vst [vmem:[#allocation51_spill] sm:$0xff] %v4722_v45  ;;  %6780 = vst [vmem:[#allocation52_spill] sm:$0xff] %v4728_v16 }
 0x29d   :  { %1522 = vmatpush1.bf16.msra.mxu0 %v4710_v0  ;;  %1563 = vmatpush1.bf16.msra.mxu1 %v4716_v10  ;;  %v4734_v0 = vld [vmem:[%s6350_s2 + $0x80] ss:$16 sps:$4 sm:$0xff]   ;;  %v4740_v10 = vld [vmem:[%s6350_s2 + $0x88] ss:$16 sps:$4 sm:$0xff]  }
 0x29e   :  { %1523 = vmatprep.subr.bf16.mxu0 %v4722_v45  ;;  %1564 = vmatprep.subr.bf16.mxu1 %v4728_v16  ;;  %6781 = vst [vmem:[#allocation76_spill] sm:$0xff] %v4734_v0  ;;  %6782 = vst [vmem:[#allocation77_spill] sm:$0xff] %v4740_v10  ;;  %v4746_v45 = vld [vmem:[%s6350_s2 + $0xa4] ss:$16 sps:$4 sm:$0xff]   ;;  %v4752_v16 = vld [vmem:[%s6350_s2 + $0xac] ss:$16 sps:$4 sm:$0xff]  }
 0x29f   :  { %6783 = vst [vmem:[#allocation78_spill] sm:$0xff] %v4746_v45  ;;  %6784 = vst [vmem:[#allocation79_spill] sm:$0xff] %v4752_v16 }
 0x2a1   :  { %1524 = vmatpush1.bf16.msra.mxu0 %v4734_v0  ;;  %1565 = vmatpush1.bf16.msra.mxu1 %v4740_v10  ;;  %v4758_v0 = vld [vmem:[%s6350_s2 + $0xa0] ss:$16 sps:$4 sm:$0xff]   ;;  %v4764_v10 = vld [vmem:[%s6350_s2 + $0xa8] ss:$16 sps:$4 sm:$0xff]  }
 0x2a2   :  { %1525 = vmatprep.subr.bf16.mxu0 %v4746_v45  ;;  %1566 = vmatprep.subr.bf16.mxu1 %v4752_v16  ;;  %6785 = vst [vmem:[#allocation80_spill] sm:$0xff] %v4758_v0  ;;  %6786 = vst [vmem:[#allocation81_spill] sm:$0xff] %v4764_v10  ;;  %v4770_v45 = vld [vmem:[%s6350_s2 + $0xc4] ss:$16 sps:$4 sm:$0xff]   ;;  %v4776_v16 = vld [vmem:[%s6350_s2 + $0xcc] ss:$16 sps:$4 sm:$0xff]  }
 0x2a3   :  { %6787 = vst [vmem:[#allocation82_spill] sm:$0xff] %v4770_v45  ;;  %6788 = vst [vmem:[#allocation83_spill] sm:$0xff] %v4776_v16 }
 0x2a5   :  { %1526 = vmatpush1.bf16.msra.mxu0 %v4758_v0  ;;  %1567 = vmatpush1.bf16.msra.mxu1 %v4764_v10  ;;  %v4782_v0 = vld [vmem:[%s6350_s2 + $0xc0] ss:$16 sps:$4 sm:$0xff]   ;;  %v4788_v10 = vld [vmem:[%s6350_s2 + $0xc8] ss:$16 sps:$4 sm:$0xff]  }
 0x2a6   :  { %1527 = vmatprep.subr.bf16.mxu0 %v4770_v45  ;;  %1568 = vmatprep.subr.bf16.mxu1 %v4776_v16  ;;  %6789 = vst [vmem:[#allocation84_spill] sm:$0xff] %v4782_v0  ;;  %6790 = vst [vmem:[#allocation85_spill] sm:$0xff] %v4788_v10  ;;  %v4794_v45 = vld [vmem:[%s6350_s2 + $0xe4] ss:$16 sps:$4 sm:$0xff]   ;;  %v4800_v16 = vld [vmem:[%s6350_s2 + $0xec] ss:$16 sps:$4 sm:$0xff]  }
 0x2a7   :  { %6791 = vst [vmem:[#allocation86_spill] sm:$0xff] %v4794_v45  ;;  %6792 = vst [vmem:[#allocation87_spill] sm:$0xff] %v4800_v16 }
 0x2a9   :  { %1528 = vmatpush1.bf16.msra.mxu0 %v4782_v0  ;;  %1569 = vmatpush1.bf16.msra.mxu1 %v4788_v10  ;;  %v4806_v0 = vld [vmem:[%s6350_s2 + $0xe0] ss:$16 sps:$4 sm:$0xff]   ;;  %v4812_v10 = vld [vmem:[%s6350_s2 + $0xe8] ss:$16 sps:$4 sm:$0xff]  }
 0x2aa   :  { %1529 = vmatprep.subr.bf16.mxu0 %v4794_v45  ;;  %1570 = vmatprep.subr.bf16.mxu1 %v4800_v16  ;;  %6793 = vst [vmem:[#allocation88_spill] sm:$0xff] %v4806_v0  ;;  %6794 = vst [vmem:[#allocation89_spill] sm:$0xff] %v4812_v10  ;;  %v4818_v45 = vld [vmem:[%s6352_s4 + $0x4] ss:$16 sps:$4 sm:$0xff]   ;;  %v4824_v16 = vld [vmem:[%s6352_s4 + $0xc] ss:$16 sps:$4 sm:$0xff]  }
 0x2ab   :  { %6795 = vst [vmem:[#allocation90_spill] sm:$0xff] %v4818_v45  ;;  %6796 = vst [vmem:[#allocation91_spill] sm:$0xff] %v4824_v16 }
 0x2ad   :  { %1530 = vmatpush1.bf16.msra.mxu0 %v4806_v0  ;;  %1571 = vmatpush1.bf16.msra.mxu1 %v4812_v10 }
 0x2ae   :  { %1602 = vmatprep.subr.bf16.mxu0 %v4818_v45  ;;  %1643 = vmatprep.subr.bf16.mxu1 %v4824_v16 }
 0x322   :  { %v1332_v0 = vpop.f32.mrb[12].mxu0  ;;  %v1373_v35 = vpop.f32.mrb[44].mxu1 }
 0x323   :  { %v1380_v59 = vadd.f32 %v1332_v0, %v6797_v30  ;;  %v1382_v10 = vadd.f32 %v1373_v35, %v6798_v52  ;;  %v1334_v1 = vpop.f32.mrb[13].mxu0  ;;  %v1375_v42 = vpop.f32.mrb[45].mxu1 }
 0x324   :  { %v1381_v26 = vadd.f32 %v1334_v1, %v6799_v19  ;;  %v1383_v33 = vadd.f32 %v1375_v42, %v6800_v8  ;;  %v1336_v45 = vpop.f32.mrb[14].mxu0  ;;  %v1377_v11 = vpop.f32.mrb[46].mxu1  ;;  %v6809_v42 = vld [vmem:[#allocation29_spill] sm:$0xff] }
 0x325   :  { %v1467_v6 = vsub.f32 0.0, %v1380_v59  ;;  %v1337_v41 = vpop.f32.mrb[15].mxu0  ;;  %v1378_v3 = vpop.f32.mrb[47].mxu1  ;;  %v6811_v45 = vld [vmem:[#allocation54_spill] sm:$0xff] }
 0x326   :  { %v1472_v46 = vsub.f32 0.0, %v1381_v26  ;;  %v1478_v47 = vsub.f32 0.0, %v1383_v33 }
 0x327   :  { %v1468_v12 = vmul.f32 1.442695, %v1467_v6 }
 0x328   :  { %v1473_v16 = vmul.f32 1.442695, %v1472_v46  ;;  %v1479_v0 = vmul.f32 1.442695, %v1478_v47 }
 0x329   :  { %3260 = vpow2.f32 %v1468_v12 }
 0x32a   :  { %3262 = vpow2.f32 %v1473_v16 }
 0x32b   :  { %3264 = vpow2.f32 %v1479_v0  ;;  %v6812_v0 = vld [vmem:[#allocation55_spill] sm:$0xff] }
 0x32c   :  { %3266 = vtanh.f32 %v1382_v10  ;;  %v6810_v10 = vld [vmem:[#allocation53_spill] sm:$0xff] }
 0x333   :  { %v3261_v30 = vpop.eup %3260 }
 0x334   :  { %v3263_v35 = vpop.eup %3262  ;;  %v1470_v52 = vadd.f32 1.0, %v3261_v30  ;;  %v6813_v30 = vld [vmem:[#allocation56_spill] sm:$0xff] }
 0x335   :  { %v1475_v1 = vadd.f32 1.0, %v3263_v35  ;;  %v3265_v8 = vpop.eup %3264  ;;  %v6814_v35 = vld [vmem:[#allocation57_spill] sm:$0xff] }
 0x336   :  { %3268 = vrcp.f32 %v1470_v52  ;;  %v3267_v11 = vpop.eup %3266  ;;  %v1481_v26 = vadd.f32 1.0, %v3265_v8  ;;  %v6815_v52 = vld [vmem:[#allocation58_spill] sm:$0xff] }
 0x337   :  { %3270 = vrcp.f32 %v1475_v1  ;;  %v6818_v1 = vld [vmem:[#allocation61_spill] sm:$0xff]  ;;  %v6819_v8 = vld [vmem:[#allocation62_spill] sm:$0xff] }
 0x338   :  { %3272 = vrcp.f32 %v1481_v26 }
 0x340   :  { %v3269_v59 = vpop.eup %3268 }
 0x341   :  { %v3271_v19 = vpop.eup %3270  ;;  %v1484_v41 = vmul.f32 %v3269_v59, %v3267_v11  ;;  %v6820_v11 = vld [vmem:[#allocation63_spill] sm:$0xff]  ;;  %v6821_v59 = vld [vmem:[#allocation64_spill] sm:$0xff] }
 0x342   :  { %v1483_v6 = vmul.f32 %v3271_v19, %v4540_v2  ;;  %v3273_v47 = vpop.eup %3272  ;;  %v6822_v19 = vld [vmem:[#allocation65_spill] sm:$0xff] }
 0x344   :  { %v4832_v12 = vadd.f32 %v1484_v41, %v1483_v6  ;;  %v6823_v41 = vld [vmem:[#allocation66_spill] sm:$0xff] }
 0x346   :  { %3274 = vtanh.f32 %v4832_v12 }
 0x350   :  { %v3275_v16 = vpop.eup %3274 }
 0x351   :  { %v1487_v46 = vmul.f32 %v3275_v16, %v3273_v47  ;;  %v6824_v47 = vld [vmem:[#allocation67_spill] sm:$0xff]  ;;  %v6825_v16 = vld [vmem:[#allocation68_spill] sm:$0xff] }
 0x353   :  { %v4835_v3 = vpack.c.bf16 %v1487_v46, %v1487_v46 }
 0x355   :  { %1548 = vmatmul.mubr.bf16.vlgmr.msra.gmra.mrb[20].mxu0 %v4835_v3  ;;  %1589 = vmatmul.mubr.bf16.vlgmr.msra.gmra.mrb[52].mxu1 %v4835_v3 }
 0x356   :  { %1603 = vmatpush1.bf16.msra.mxu0 %v4104_v55  ;;  %1644 = vmatpush1.bf16.msra.mxu1 %v4109_v5 }
 0x357   :  { %1604 = vmatprep.subr.bf16.mxu0 %v4116_v58  ;;  %1645 = vmatprep.subr.bf16.mxu1 %v4121_v61 }
 0x35a   :  { %1605 = vmatpush1.bf16.msra.mxu0 %v4130_v27  ;;  %1646 = vmatpush1.bf16.msra.mxu1 %v4135_v20 }
 0x35b   :  { %1606 = vmatprep.subr.bf16.mxu0 %v4142_v28  ;;  %1647 = vmatprep.subr.bf16.mxu1 %v4147_v34 }
 0x35e   :  { %1607 = vmatpush1.bf16.msra.mxu0 %v4154_v57  ;;  %1648 = vmatpush1.bf16.msra.mxu1 %v4159_v23 }
 0x35f   :  { %1608 = vmatprep.subr.bf16.mxu0 %v4166_v17  ;;  %1649 = vmatprep.subr.bf16.mxu1 %v4171_v9 }
 0x362   :  { %1609 = vmatpush1.bf16.msra.mxu0 %v4178_v32  ;;  %1650 = vmatpush1.bf16.msra.mxu1 %v4183_v63 }
 0x363   :  { %v1419_v55 = vpop.f32.mrb[16].mxu0  ;;  %v1460_v5 = vpop.f32.mrb[48].mxu1  ;;  %1610 = vmatprep.subr.bf16.mxu0 %v4190_v31  ;;  %1651 = vmatprep.subr.bf16.mxu1 %v4195_v36 }
 0x364   :  { %v1420_v58 = vadd.f32 %v1419_v55, %v4562_v14  ;;  %v1421_v61 = vpop.f32.mrb[17].mxu0  ;;  %v1462_v27 = vpop.f32.mrb[49].mxu1  ;;  %v6827_v55 = vld [vmem:[#allocation69_spill] sm:$0xff] }
 0x365   :  { %v1422_v20 = vadd.f32 %v1421_v61, %v4568_v18  ;;  %v1423_v28 = vpop.f32.mrb[18].mxu0  ;;  %v1464_v34 = vpop.f32.mrb[50].mxu1  ;;  %v1463_v31 = vadd.f32 %v1462_v27, %v4578_v38  ;;  %v6829_v61 = vld [vmem:[#allocation70_spill] sm:$0xff]  ;;  %v6830_v27 = vld [vmem:[#allocation32_spill] sm:$0xff] }
 0x366   :  { %v1488_v57 = vsub.f32 0.0, %v1420_v58  ;;  %v1424_v23 = vpop.f32.mrb[19].mxu0  ;;  %v1465_v17 = vpop.f32.mrb[51].mxu1  ;;  %1611 = vmatpush1.bf16.msra.mxu0 %v4202_v62  ;;  %1652 = vmatpush1.bf16.msra.mxu1 %v4207_v37  ;;  %v1461_v37 = vadd.f32 %v1460_v5, %v4591_v53  ;;  %v6828_v5 = vld [vmem:[#allocation31_spill] sm:$0xff]  ;;  %v6832_v28 = vld [vmem:[#allocation33_spill] sm:$0xff]  ;;  %v6833_v34 = vmov 0  }
 0x367   :  { %v1493_v9 = vsub.f32 0.0, %v1422_v20  ;;  %1612 = vmatprep.subr.bf16.mxu0 %v4214_v25  ;;  %1653 = vmatprep.subr.bf16.mxu1 %v4219_v13  ;;  %v1499_v36 = vsub.f32 0.0, %v1463_v31  ;;  %v6831_v20 = vld [vmem:[#allocation71_spill] sm:$0xff]  ;;  %v6835_v23 = vld [vmem:[#allocation34_spill] sm:$0xff]  ;;  %v6841_v31 = vld [vmem:[#allocation40_spill] sm:$0xff] }
 0x368   :  { %v1489_v32 = vmul.f32 1.442695, %v1488_v57  ;;  %v6834_v57 = vld [vmem:[#allocation72_spill] sm:$0xff]  ;;  %v6836_v17 = vld [vmem:[#allocation35_spill] sm:$0xff] }
 0x369   :  { %v1494_v63 = vmul.f32 1.442695, %v1493_v9  ;;  %v1500_v62 = vmul.f32 1.442695, %v1499_v36  ;;  %v6837_v9 = vld [vmem:[#allocation36_spill] sm:$0xff]  ;;  %v6842_v36 = vld [vmem:[#allocation41_spill] sm:$0xff] }
 0x36a   :  { %3276 = vpow2.f32 %v1489_v32  ;;  %1613 = vmatpush1.bf16.msra.mxu0 %v4226_v15  ;;  %1654 = vmatpush1.bf16.msra.mxu1 %v6725_v48  ;;  %v6801_v48 = vld [vmem:[#allocation42_spill] sm:$0xff] }
 0x36b   :  { %3278 = vpow2.f32 %v1494_v63  ;;  %1614 = vmatprep.subr.bf16.mxu0 %v6726_v49  ;;  %1655 = vmatprep.subr.bf16.mxu1 %v6727_v50  ;;  %v6802_v49 = vld [vmem:[#allocation43_spill] sm:$0xff]  ;;  %v6803_v50 = vld [vmem:[#allocation44_spill] sm:$0xff]  ;;  %v6839_v32 = vld [vmem:[#allocation38_spill] sm:$0xff] }
 0x36c   :  { %3280 = vpow2.f32 %v1500_v62  ;;  %v6840_v63 = vld [vmem:[#allocation39_spill] sm:$0xff]  ;;  %v6843_v62 = vld [vmem:[#allocation48_spill] sm:$0xff] }
 0x36d   :  { %3282 = vtanh.f32 %v1461_v37  ;;  %v6844_v37 = vld [vmem:[#allocation51_spill] sm:$0xff] }
 0x36e   :  { %1615 = vmatpush1.bf16.msra.mxu0 %v6730_v54  ;;  %1656 = vmatpush1.bf16.msra.mxu1 %v6731_v4  ;;  %v6804_v54 = vld [vmem:[#allocation45_spill] sm:$0xff]  ;;  %v6805_v4 = vld [vmem:[#allocation46_spill] sm:$0xff] }
 0x36f   :  { %1616 = vmatprep.subr.bf16.mxu0 %v6732_v60  ;;  %1657 = vmatprep.subr.bf16.mxu1 %v6733_v7  ;;  %v6806_v60 = vld [vmem:[#allocation47_spill] sm:$0xff] }
 0x372   :  { %1617 = vmatpush1.bf16.msra.mxu0 %v6734_v21  ;;  %1658 = vmatpush1.bf16.msra.mxu1 %v6735_v24  ;;  %v6807_v21 = vld [vmem:[#allocation49_spill] sm:$0xff]  ;;  %v6808_v24 = vld [vmem:[#allocation50_spill] sm:$0xff] }
 0x373   :  { %1618 = vmatprep.subr.bf16.mxu0 %v6736_v29  ;;  %1659 = vmatprep.subr.bf16.mxu1 %v6737_v56 }
 0x374   :  { %v3277_v15 = vpop.eup %3276 }
 0x375   :  { %v3279_v25 = vpop.eup %3278  ;;  %v1491_v13 = vadd.f32 1.0, %v3277_v15  ;;  %v6845_v15 = vld [vmem:[#allocation52_spill] sm:$0xff] }
 0x376   :  { %v1496_v2 = vadd.f32 1.0, %v3279_v25  ;;  %1619 = vmatpush1.bf16.msra.mxu0 %v6738_v39  ;;  %1660 = vmatpush1.bf16.msra.mxu1 %v6739_v40  ;;  %v3281_v7 = vpop.eup %3280  ;;  %v6846_v25 = vld [vmem:[#allocation76_spill] sm:$0xff] }
 0x377   :  { %3284 = vrcp.f32 %v1491_v13  ;;  %1620 = vmatprep.subr.bf16.mxu0 %v6740_v22  ;;  %1661 = vmatprep.subr.bf16.mxu1 %v6801_v48  ;;  %v3283_v29 = vpop.eup %3282  ;;  %v1502_v22 = vadd.f32 1.0, %v3281_v7  ;;  %v6847_v13 = vld [vmem:[#allocation77_spill] sm:$0xff]  ;;  %v6849_v48 = vld [vmem:[#allocation79_spill] sm:$0xff] }
 0x378   :  { %3286 = vrcp.f32 %v1496_v2  ;;  %v6848_v2 = vld [vmem:[#allocation78_spill] sm:$0xff]  ;;  %v6855_v7 = vld [vmem:[#allocation85_spill] sm:$0xff] }
 0x379   :  { %3288 = vrcp.f32 %v1502_v22 }
 0x37a   :  { %1621 = vmatpush1.bf16.msra.mxu0 %v6802_v49  ;;  %1662 = vmatpush1.bf16.msra.mxu1 %v6803_v50  ;;  %v6850_v49 = vld [vmem:[#allocation80_spill] sm:$0xff]  ;;  %v6851_v50 = vld [vmem:[#allocation81_spill] sm:$0xff] }
 0x37b   :  { %1622 = vmatprep.subr.bf16.mxu0 %v6804_v54  ;;  %1663 = vmatprep.subr.bf16.mxu1 %v6805_v4  ;;  %v6852_v54 = vld [vmem:[#allocation82_spill] sm:$0xff]  ;;  %v6853_v4 = vld [vmem:[#allocation83_spill] sm:$0xff] }
 0x37e   :  { %1623 = vmatpush1.bf16.msra.mxu0 %v6806_v60  ;;  %1664 = vmatpush1.bf16.msra.mxu1 %v6747_v51  ;;  %v6854_v60 = vld [vmem:[#allocation84_spill] sm:$0xff] }
 0x37f   :  { %1624 = vmatprep.subr.bf16.mxu0 %v6807_v21  ;;  %1665 = vmatprep.subr.bf16.mxu1 %v6808_v24  ;;  %v6856_v21 = vld [vmem:[#allocation86_spill] sm:$0xff]  ;;  %v6857_v24 = vld [vmem:[#allocation87_spill] sm:$0xff] }
 0x381   :  { %v3285_v56 = vpop.eup %3284 }
 0x382   :  { %v3287_v39 = vpop.eup %3286  ;;  %v1505_v40 = vmul.f32 %v3285_v56, %v3283_v29  ;;  %1625 = vmatpush1.bf16.msra.mxu0 %v6750_v43  ;;  %1666 = vmatpush1.bf16.msra.mxu1 %v6751_v44  ;;  %v6816_v43 = vld [vmem:[#allocation59_spill] sm:$0xff]  ;;  %v6817_v44 = vld [vmem:[#allocation60_spill] sm:$0xff]  ;;  %v6859_v56 = vld [vmem:[#allocation89_spill] sm:$0xff] }
 0x383   :  { %v1504_v33 = vmul.f32 %v3287_v39, %v6809_v42  ;;  %1626 = vmatprep.subr.bf16.mxu0 %v6810_v10  ;;  %1667 = vmatprep.subr.bf16.mxu1 %v6811_v45  ;;  %v3289_v26 = vpop.eup %3288  ;;  %v6858_v29 = vld [vmem:[#allocation88_spill] sm:$0xff]  ;;  %v6860_v39 = vld [vmem:[#allocation90_spill] sm:$0xff] }
 0x384   :  { %v6863_v45 = vld [vmem:[#allocation18_spill] sm:$0xff] }
 0x385   :  { %v4892_v51 = vadd.f32 %v1505_v40, %v1504_v33  ;;  %v6861_v40 = vld [vmem:[#allocation91_spill] sm:$0xff]  ;;  %v6862_v33 = vld [vmem:[#allocation6_spill] sm:$0xff] }
 0x386   :  { %1627 = vmatpush1.bf16.msra.mxu0 %v6812_v0  ;;  %1668 = vmatpush1.bf16.msra.mxu1 %v6813_v30 }
 0x387   :  { %1628 = vmatprep.subr.bf16.mxu0 %v6814_v35  ;;  %1669 = vmatprep.subr.bf16.mxu1 %v6815_v52  ;;  %3290 = vtanh.f32 %v4892_v51  ;;  %v6864_v52 = vld [vmem:[#allocation7_spill] sm:$0xff] }
 0x38a   :  { %1629 = vmatpush1.bf16.msra.mxu0 %v6816_v43  ;;  %1670 = vmatpush1.bf16.msra.mxu1 %v6817_v44  ;;  %v6865_v44 = vld [vmem:[#allocation19_spill] sm:$0xff] }
 0x38b   :  { %1630 = vmatprep.subr.bf16.mxu0 %v6818_v1  ;;  %1671 = vmatprep.subr.bf16.mxu1 %v6819_v8 }
 0x38e   :  { %1631 = vmatpush1.bf16.msra.mxu0 %v6820_v11  ;;  %1672 = vmatpush1.bf16.msra.mxu1 %v6821_v59 }
 0x38f   :  { %1632 = vmatprep.subr.bf16.mxu0 %v6822_v19  ;;  %1673 = vmatprep.subr.bf16.mxu1 %v6823_v41 }
 0x391   :  { %v3291_v6 = vpop.eup %3290 }
 0x392   :  { %1633 = vmatpush1.bf16.msra.mxu0 %v6824_v47  ;;  %1674 = vmatpush1.bf16.msra.mxu1 %v6825_v16  ;;  %v4909_v46 = vmul.f32 %v3291_v6, %v3289_v26 }
 0x393   :  { %1732 = vmatprep.subr.bf16.mxu0 %v6827_v55  ;;  %1773 = vmatprep.subr.bf16.mxu1 %v6828_v5 }
 0x394   :  { %6826 = vst [vmem:[#allocation4_spill] sm:$0xff] %v4909_v46  ;;  %v1601_v58 = vpack.c.bf16 %v4909_v46, %v4909_v46  ;;  %v5070_v46 = vld [vmem:[%s6352_s4 + $0x88] ss:$16 sps:$4 sm:$0xff]  }
 0x395   :  { %6867 = vst [vmem:[#allocation5_spill] sm:$0xff] %v5070_v46 }
 0x396   :  { %1634 = vmatprep.mubr.bf16.mxu0 %v1601_v58  ;;  %1675 = vmatprep.mubr.bf16.mxu1 %v1601_v58 }
 0x397   :  { %1635 = vmatmul.mubr.bf16.vlgmr.msra.gmra.mrb[24].mxu0 %v4835_v3  ;;  %1676 = vmatmul.mubr.bf16.vlgmr.msra.gmra.mrb[56].mxu1 %v4835_v3  ;;  %v6838_v3 = vld [vmem:[#allocation37_spill] sm:$0xff] }
 0x398   :  { %1733 = vmatpush1.bf16.msra.mxu0 %v6829_v61  ;;  %1774 = vmatpush1.bf16.msra.mxu1 %v6830_v27 }
 0x399   :  { %1734 = vmatprep.subr.bf16.mxu0 %v6831_v20  ;;  %1775 = vmatprep.subr.bf16.mxu1 %v6832_v28 }
 0x39a   :  { %1764 = vmatprep.mubr.bf16.mxu0 %v6833_v34  ;;  %1805 = vmatprep.mubr.bf16.mxu1 %v6833_v34 }
 0x39c   :  { %1735 = vmatpush1.bf16.msra.mxu0 %v6834_v57  ;;  %1776 = vmatpush1.bf16.msra.mxu1 %v6835_v23 }
 0x39d   :  { %1736 = vmatprep.subr.bf16.mxu0 %v6836_v17  ;;  %1777 = vmatprep.subr.bf16.mxu1 %v6837_v9 }
 0x3a0   :  { %1737 = vmatpush1.bf16.msra.mxu0 %v6838_v3  ;;  %1778 = vmatpush1.bf16.msra.mxu1 %v6839_v32 }
 0x3a1   :  { %1738 = vmatprep.subr.bf16.mxu0 %v6840_v63  ;;  %1779 = vmatprep.subr.bf16.mxu1 %v6841_v31 }
 0x3a4   :  { %1739 = vmatpush1.bf16.msra.mxu0 %v6842_v36  ;;  %1780 = vmatpush1.bf16.msra.mxu1 %v6843_v62 }
 0x3a5   :  { %1740 = vmatprep.subr.bf16.mxu0 %v6844_v37  ;;  %1781 = vmatprep.subr.bf16.mxu1 %v6845_v15 }
 0x3a8   :  { %1741 = vmatpush1.bf16.msra.mxu0 %v6846_v25  ;;  %1782 = vmatpush1.bf16.msra.mxu1 %v6847_v13 }
 0x3a9   :  { %1742 = vmatprep.subr.bf16.mxu0 %v6848_v2  ;;  %1783 = vmatprep.subr.bf16.mxu1 %v6849_v48 }
 0x3ac   :  { %1743 = vmatpush1.bf16.msra.mxu0 %v6850_v49  ;;  %1784 = vmatpush1.bf16.msra.mxu1 %v6851_v50 }
 0x3ad   :  { %1744 = vmatprep.subr.bf16.mxu0 %v6852_v54  ;;  %1785 = vmatprep.subr.bf16.mxu1 %v6853_v4 }
 0x3b0   :  { %1745 = vmatpush1.bf16.msra.mxu0 %v6854_v60  ;;  %1786 = vmatpush1.bf16.msra.mxu1 %v6855_v7 }
 0x3b1   :  { %1746 = vmatprep.subr.bf16.mxu0 %v6856_v21  ;;  %1787 = vmatprep.subr.bf16.mxu1 %v6857_v24 }
 0x3b4   :  { %1747 = vmatpush1.bf16.msra.mxu0 %v6858_v29  ;;  %1788 = vmatpush1.bf16.msra.mxu1 %v6859_v56 }
 0x3b5   :  { %1819 = vmatprep.subr.bf16.mxu0 %v6860_v39  ;;  %1860 = vmatprep.subr.bf16.mxu1 %v6861_v40 }
 0x428   :  { %v1549_v22 = vpop.f32.mrb[20].mxu0  ;;  %v1590_v42 = vpop.f32.mrb[52].mxu1 }
 0x429   :  { %v1597_v10 = vadd.f32 %v1549_v22, %v6862_v33  ;;  %v1599_v0 = vadd.f32 %v1590_v42, %v6863_v45  ;;  %v1551_v30 = vpop.f32.mrb[21].mxu0  ;;  %v1592_v35 = vpop.f32.mrb[53].mxu1 }
 0x42a   :  { %v1598_v43 = vadd.f32 %v1551_v30, %v6864_v52  ;;  %v1600_v1 = vadd.f32 %v1592_v35, %v6865_v44  ;;  %v1553_v8 = vpop.f32.mrb[22].mxu0  ;;  %v1594_v11 = vpop.f32.mrb[54].mxu1 }
 0x42b   :  { %v1684_v59 = vsub.f32 0.0, %v1597_v10  ;;  %v1554_v19 = vpop.f32.mrb[23].mxu0  ;;  %v1595_v41 = vpop.f32.mrb[55].mxu1  ;;  %v4966_v8 = vld [vmem:[%s6352_s4] ss:$16 sps:$4 sm:$0xff]  }
 0x42c   :  { %v1689_v26 = vsub.f32 0.0, %v1598_v43  ;;  %v1695_v16 = vsub.f32 0.0, %v1600_v1  ;;  %v4978_v11 = vld [vmem:[%s6352_s4 + $0x24] ss:$16 sps:$4 sm:$0xff]   ;;  %v4990_v19 = vld [vmem:[%s6352_s4 + $0x20] ss:$16 sps:$4 sm:$0xff]  }
 0x42d   :  { %v1685_v6 = vmul.f32 1.442695, %v1684_v59  ;;  %v4984_v59 = vld [vmem:[%s6352_s4 + $0x2c] ss:$16 sps:$4 sm:$0xff]   ;;  %v4996_v41 = vld [vmem:[%s6352_s4 + $0x28] ss:$16 sps:$4 sm:$0xff]  }
 0x42e   :  { %v1690_v47 = vmul.f32 1.442695, %v1689_v26  ;;  %v1696_v55 = vmul.f32 1.442695, %v1695_v16  ;;  %v5002_v26 = vld [vmem:[%s6352_s4 + $0x44] ss:$16 sps:$4 sm:$0xff]  }
 0x42f   :  { %3292 = vpow2.f32 %v1685_v6  ;;  %v5008_v6 = vld [vmem:[%s6352_s4 + $0x4c] ss:$16 sps:$4 sm:$0xff]   ;;  %v5020_v16 = vld [vmem:[%s6352_s4 + $0x48] ss:$16 sps:$4 sm:$0xff]  }
 0x430   :  { %3294 = vpow2.f32 %v1690_v47  ;;  %v5014_v47 = vld [vmem:[%s6352_s4 + $0x40] ss:$16 sps:$4 sm:$0xff]  }
 0x431   :  { %3296 = vpow2.f32 %v1696_v55  ;;  %v5026_v55 = vld [vmem:[%s6352_s4 + $0x64] ss:$16 sps:$4 sm:$0xff]  }
 0x432   :  { %3298 = vtanh.f32 %v1599_v0 }
 0x439   :  { %v3293_v58 = vpop.eup %3292 }
 0x43a   :  { %v3295_v61 = vpop.eup %3294  ;;  %v1687_v20 = vadd.f32 1.0, %v3293_v58  ;;  %v5032_v58 = vld [vmem:[%s6352_s4 + $0x6c] ss:$16 sps:$4 sm:$0xff]  }
 0x43b   :  { %v1692_v57 = vadd.f32 1.0, %v3295_v61  ;;  %v3297_v22 = vpop.eup %3296  ;;  %v5038_v61 = vld [vmem:[%s6352_s4 + $0x60] ss:$16 sps:$4 sm:$0xff]  }
 0x43c   :  { %3300 = vrcp.f32 %v1687_v20  ;;  %v3299_v42 = vpop.eup %3298  ;;  %v1698_v30 = vadd.f32 1.0, %v3297_v22  ;;  %v5044_v20 = vld [vmem:[%s6352_s4 + $0x68] ss:$16 sps:$4 sm:$0xff]   ;;  %v5056_v22 = vld [vmem:[%s6352_s4 + $0x8c] ss:$16 sps:$4 sm:$0xff]  }
 0x43d   :  { %3302 = vrcp.f32 %v1692_v57  ;;  %v5050_v57 = vld [vmem:[%s6352_s4 + $0x84] ss:$16 sps:$4 sm:$0xff]   ;;  %6866 = vst [vmem:[#allocation16_spill] sm:$0xff] %v5056_v22 }
 0x43e   :  { %3304 = vrcp.f32 %v1698_v30 }
 0x446   :  { %v3301_v33 = vpop.eup %3300 }
 0x447   :  { %v3303_v10 = vpop.eup %3302  ;;  %v1701_v45 = vmul.f32 %v3301_v33, %v3299_v42 }
 0x448   :  { %v1700_v35 = vmul.f32 %v3303_v10, %v4832_v12  ;;  %v3305_v43 = vpop.eup %3304  ;;  %v4972_v12 = vld [vmem:[%s6352_s4 + $0x8] ss:$16 sps:$4 sm:$0xff]  }
 0x44a   :  { %v4956_v52 = vadd.f32 %v1701_v45, %v1700_v35 }
 0x44c   :  { %3306 = vtanh.f32 %v4956_v52 }
 0x456   :  { %v3307_v44 = vpop.eup %3306 }
 0x457   :  { %v1704_v1 = vmul.f32 %v3307_v44, %v3305_v43 }
 0x459   :  { %v4959_v0 = vpack.c.bf16 %v1704_v1, %v1704_v1  ;;  %v5064_v1 = vld [vmem:[%s6352_s4 + $0x80] ss:$16 sps:$4 sm:$0xff]  }
 0x45b   :  { %1765 = vmatmul.mubr.bf16.vlgmr.msra.gmra.mrb[28].mxu0 %v4959_v0  ;;  %1806 = vmatmul.mubr.bf16.vlgmr.msra.gmra.mrb[60].mxu1 %v4959_v0 }
 0x45c   :  { %1820 = vmatpush1.bf16.msra.mxu0 %v4966_v8  ;;  %1861 = vmatpush1.bf16.msra.mxu1 %v4972_v12 }
 0x45d   :  { %1821 = vmatprep.subr.bf16.mxu0 %v4978_v11  ;;  %1862 = vmatprep.subr.bf16.mxu1 %v4984_v59 }
 0x460   :  { %1822 = vmatpush1.bf16.msra.mxu0 %v4990_v19  ;;  %1863 = vmatpush1.bf16.msra.mxu1 %v4996_v41 }
 0x461   :  { %1823 = vmatprep.subr.bf16.mxu0 %v5002_v26  ;;  %1864 = vmatprep.subr.bf16.mxu1 %v5008_v6 }
 0x464   :  { %1824 = vmatpush1.bf16.msra.mxu0 %v5014_v47  ;;  %1865 = vmatpush1.bf16.msra.mxu1 %v5020_v16 }
 0x465   :  { %1825 = vmatprep.subr.bf16.mxu0 %v5026_v55  ;;  %1866 = vmatprep.subr.bf16.mxu1 %v5032_v58 }
 0x468   :  { %1826 = vmatpush1.bf16.msra.mxu0 %v5038_v61  ;;  %1867 = vmatpush1.bf16.msra.mxu1 %v5044_v20 }
 0x469   :  { %1827 = vmatprep.subr.bf16.mxu0 %v5050_v57  ;;  %1868 = vmatprep.subr.bf16.mxu1 %v5056_v22 }
 0x46a   :  { %v1636_v42 = vpop.f32.mrb[24].mxu0  ;;  %v1677_v33 = vpop.f32.mrb[56].mxu1 }
 0x46b   :  { %v1637_v10 = vadd.f32 %v1636_v42, %v4562_v14  ;;  %v1638_v45 = vpop.f32.mrb[25].mxu0  ;;  %v1679_v30 = vpop.f32.mrb[57].mxu1 }
 0x46c   :  { %v1639_v35 = vadd.f32 %v1638_v45, %v4568_v18  ;;  %v1640_v43 = vpop.f32.mrb[26].mxu0  ;;  %v1681_v44 = vpop.f32.mrb[58].mxu1  ;;  %1828 = vmatpush1.bf16.msra.mxu0 %v5064_v1  ;;  %1869 = vmatpush1.bf16.msra.mxu1 %v5070_v46  ;;  %v5076_v45 = vld [vmem:[%s6352_s4 + $0xa4] ss:$16 sps:$4 sm:$0xff]  }
 0x46d   :  { %v1705_v42 = vsub.f32 0.0, %v1637_v10  ;;  %v1641_v14 = vpop.f32.mrb[27].mxu0  ;;  %v1682_v22 = vpop.f32.mrb[59].mxu1  ;;  %1829 = vmatprep.subr.bf16.mxu0 %v5076_v45  ;;  %v5082_v43 = vld [vmem:[%s6352_s4 + $0xac] ss:$16 sps:$4 sm:$0xff]  }
 0x46e   :  { %1870 = vmatprep.subr.bf16.mxu1 %v5082_v43  ;;  %v1710_v44 = vsub.f32 0.0, %v1639_v35  ;;  %v1680_v14 = vadd.f32 %v1679_v30, %v4578_v38  ;;  %v5089_v22 = vld [vmem:[%s6352_s4 + $0xa0] ss:$16 sps:$4 sm:$0xff]   ;;  %v5095_v10 = vld [vmem:[%s6352_s4 + $0xa8] ss:$16 sps:$4 sm:$0xff]  }
 0x46f   :  { %v1706_v18 = vmul.f32 1.442695, %v1705_v42  ;;  %v5101_v35 = vld [vmem:[%s6352_s4 + $0xc4] ss:$16 sps:$4 sm:$0xff]   ;;  %v5107_v30 = vld [vmem:[%s6352_s4 + $0xcc] ss:$16 sps:$4 sm:$0xff]  }
 0x470   :  { %v1711_v46 = vmul.f32 1.442695, %v1710_v44  ;;  %1830 = vmatpush1.bf16.msra.mxu0 %v5089_v22  ;;  %1871 = vmatpush1.bf16.msra.mxu1 %v5095_v10  ;;  %6868 = vst [vmem:[#allocation17_spill] sm:$0xff] %v5101_v35  ;;  %6869 = vst [vmem:[#allocation42_spill] sm:$0xff] %v5107_v30  ;;  %v1716_v42 = vsub.f32 0.0, %v1680_v14 }
 0x471   :  { %3308 = vpow2.f32 %v1706_v18  ;;  %1831 = vmatprep.subr.bf16.mxu0 %v5101_v35  ;;  %1872 = vmatprep.subr.bf16.mxu1 %v5107_v30  ;;  %v5113_v18 = vld [vmem:[%s6352_s4 + $0xc0] ss:$16 sps:$4 sm:$0xff]   ;;  %v5119_v44 = vld [vmem:[%s6352_s4 + $0xc8] ss:$16 sps:$4 sm:$0xff]   ;;  %v5125_v30 = vld [vmem:[%s6352_s4 + $0xe4] ss:$16 sps:$4 sm:$0xff]  }
 0x472   :  { %3310 = vpow2.f32 %v1711_v46  ;;  %6870 = vst [vmem:[#allocation43_spill] sm:$0xff] %v5113_v18  ;;  %6871 = vst [vmem:[#allocation44_spill] sm:$0xff] %v5119_v44  ;;  %v5131_v46 = vld [vmem:[%s6352_s4 + $0xec] ss:$16 sps:$4 sm:$0xff]   ;;  %v1717_v14 = vmul.f32 1.442695, %v1716_v42 }
 0x473   :  { %6872 = vst [vmem:[#allocation45_spill] sm:$0xff] %v5125_v30  ;;  %6873 = vst [vmem:[#allocation46_spill] sm:$0xff] %v5131_v46  ;;  %v5150_v42 = vld [vmem:[%s6352_s4 + $0x104] ss:$16 sps:$4 sm:$0xff]  }
 0x474   :  { %1832 = vmatpush1.bf16.msra.mxu0 %v5113_v18  ;;  %1873 = vmatpush1.bf16.msra.mxu1 %v5119_v44  ;;  %v5137_v18 = vld [vmem:[%s6352_s4 + $0xe0] ss:$16 sps:$4 sm:$0xff]   ;;  %v5143_v44 = vld [vmem:[%s6352_s4 + $0xe8] ss:$16 sps:$4 sm:$0xff]   ;;  %6876 = vst [vmem:[#allocation50_spill] sm:$0xff] %v5150_v42  ;;  %3312 = vpow2.f32 %v1717_v14 }
 0x475   :  { %1833 = vmatprep.subr.bf16.mxu0 %v5125_v30  ;;  %1874 = vmatprep.subr.bf16.mxu1 %v5131_v46  ;;  %6874 = vst [vmem:[#allocation47_spill] sm:$0xff] %v5137_v18  ;;  %6875 = vst [vmem:[#allocation49_spill] sm:$0xff] %v5143_v44  ;;  %v1678_v30 = vadd.f32 %v1677_v33, %v4591_v53  ;;  %v5162_v33 = vld [vmem:[%s6352_s4 + $0x100] ss:$16 sps:$4 sm:$0xff]   ;;  %v5168_v53 = vld [vmem:[%s6352_s4 + $0x108] ss:$16 sps:$4 sm:$0xff]  }
 0x476   :  { %6878 = vst [vmem:[#allocation53_spill] sm:$0xff] %v5162_v33  ;;  %6879 = vst [vmem:[#allocation54_spill] sm:$0xff] %v5168_v53  ;;  %v5180_v14 = vld [vmem:[%s6352_s4 + $0x12c] ss:$16 sps:$4 sm:$0xff]  }
 0x477   :  { %3314 = vtanh.f32 %v1678_v30  ;;  %6881 = vst [vmem:[#allocation56_spill] sm:$0xff] %v5180_v14  ;;  %v5192_v30 = vld [vmem:[%s6352_s4 + $0x128] ss:$16 sps:$4 sm:$0xff]  }
 0x478   :  { %1834 = vmatpush1.bf16.msra.mxu0 %v5137_v18  ;;  %1875 = vmatpush1.bf16.msra.mxu1 %v5143_v44  ;;  %v5156_v18 = vld [vmem:[%s6352_s4 + $0x10c] ss:$16 sps:$4 sm:$0xff]   ;;  %6883 = vst [vmem:[#allocation58_spill] sm:$0xff] %v5192_v30 }
 0x479   :  { %1835 = vmatprep.subr.bf16.mxu0 %v5150_v42  ;;  %6877 = vst [vmem:[#allocation29_spill] sm:$0xff] %v5156_v18  ;;  %1876 = vmatprep.subr.bf16.mxu1 %v5156_v18  ;;  %v5246_v42 = vld [vmem:[%s6352_s4 + $0x184] ss:$16 sps:$4 sm:$0xff]  }
 0x47a   :  { %6892 = vst [vmem:[#allocation67_spill] sm:$0xff] %v5246_v42 }
 0x47b   :  { %v3309_v46 = vpop.eup %3308 }
 0x47c   :  { %v3311_v35 = vpop.eup %3310  ;;  %v1708_v38 = vadd.f32 1.0, %v3309_v46  ;;  %1836 = vmatpush1.bf16.msra.mxu0 %v5162_v33  ;;  %1877 = vmatpush1.bf16.msra.mxu1 %v5168_v53  ;;  %v5174_v46 = vld [vmem:[%s6352_s4 + $0x124] ss:$16 sps:$4 sm:$0xff]  }
 0x47d   :  { %v1713_v18 = vadd.f32 1.0, %v3311_v35  ;;  %6880 = vst [vmem:[#allocation55_spill] sm:$0xff] %v5174_v46  ;;  %1837 = vmatprep.subr.bf16.mxu0 %v5174_v46  ;;  %1878 = vmatprep.subr.bf16.mxu1 %v5180_v14  ;;  %v5186_v35 = vld [vmem:[%s6352_s4 + $0x120] ss:$16 sps:$4 sm:$0xff]   ;;  %v5198_v14 = vld [vmem:[%s6352_s4 + $0x144] ss:$16 sps:$4 sm:$0xff]  }
 0x47e   :  { %3316 = vrcp.f32 %v1708_v38  ;;  %6882 = vst [vmem:[#allocation57_spill] sm:$0xff] %v5186_v35  ;;  %6884 = vst [vmem:[#allocation59_spill] sm:$0xff] %v5198_v14  ;;  %v5204_v38 = vld [vmem:[%s6352_s4 + $0x14c] ss:$16 sps:$4 sm:$0xff]  }
 0x47f   :  { %3318 = vrcp.f32 %v1713_v18  ;;  %6885 = vst [vmem:[#allocation60_spill] sm:$0xff] %v5204_v38  ;;  %v5210_v18 = vld [vmem:[%s6352_s4 + $0x140] ss:$16 sps:$4 sm:$0xff]  }
 0x480   :  { %1838 = vmatpush1.bf16.msra.mxu0 %v5186_v35  ;;  %1879 = vmatpush1.bf16.msra.mxu1 %v5192_v30  ;;  %6886 = vst [vmem:[#allocation61_spill] sm:$0xff] %v5210_v18  ;;  %v5216_v30 = vld [vmem:[%s6352_s4 + $0x148] ss:$16 sps:$4 sm:$0xff]  }
 0x481   :  { %1839 = vmatprep.subr.bf16.mxu0 %v5198_v14  ;;  %1880 = vmatprep.subr.bf16.mxu1 %v5204_v38  ;;  %6887 = vst [vmem:[#allocation62_spill] sm:$0xff] %v5216_v30  ;;  %v5222_v14 = vld [vmem:[%s6352_s4 + $0x164] ss:$16 sps:$4 sm:$0xff]   ;;  %v5228_v38 = vld [vmem:[%s6352_s4 + $0x16c] ss:$16 sps:$4 sm:$0xff]  }
 0x482   :  { %6888 = vst [vmem:[#allocation63_spill] sm:$0xff] %v5222_v14  ;;  %6889 = vst [vmem:[#allocation64_spill] sm:$0xff] %v5228_v38 }
 0x484   :  { %1840 = vmatpush1.bf16.msra.mxu0 %v5210_v18  ;;  %1881 = vmatpush1.bf16.msra.mxu1 %v5216_v30  ;;  %v3313_v18 = vpop.eup %3312  ;;  %v5234_v30 = vld [vmem:[%s6352_s4 + $0x160] ss:$16 sps:$4 sm:$0xff]  }
 0x485   :  { %1841 = vmatprep.subr.bf16.mxu0 %v5222_v14  ;;  %1882 = vmatprep.subr.bf16.mxu1 %v5228_v38  ;;  %v3315_v35 = vpop.eup %3314  ;;  %6890 = vst [vmem:[#allocation65_spill] sm:$0xff] %v5234_v30  ;;  %v5240_v14 = vld [vmem:[%s6352_s4 + $0x168] ss:$16 sps:$4 sm:$0xff]   ;;  %v1719_v38 = vadd.f32 1.0, %v3313_v18  ;;  %v5304_v18 = vld [vmem:[%s6352_s4 + $0x1cc] ss:$16 sps:$4 sm:$0xff]  }
 0x486   :  { %6891 = vst [vmem:[#allocation66_spill] sm:$0xff] %v5240_v14  ;;  %6901 = vst [vmem:[#allocation34_spill] sm:$0xff] %v5304_v18 }
 0x487   :  { %3320 = vrcp.f32 %v1719_v38  ;;  %v5298_v38 = vld [vmem:[%s6352_s4 + $0x1c4] ss:$16 sps:$4 sm:$0xff]  }
 0x488   :  { %v3317_v46 = vpop.eup %3316  ;;  %1842 = vmatpush1.bf16.msra.mxu0 %v5234_v30  ;;  %1883 = vmatpush1.bf16.msra.mxu1 %v5240_v14  ;;  %v5252_v30 = vld [vmem:[%s6352_s4 + $0x18c] ss:$16 sps:$4 sm:$0xff]   ;;  %6900 = vst [vmem:[#allocation72_spill] sm:$0xff] %v5298_v38 }
 0x489   :  { %v3319_v53 = vpop.eup %3318  ;;  %v1722_v33 = vmul.f32 %v3317_v46, %v3315_v35  ;;  %1843 = vmatprep.subr.bf16.mxu0 %v5246_v42  ;;  %6893 = vst [vmem:[#allocation68_spill] sm:$0xff] %v5252_v30  ;;  %1884 = vmatprep.subr.bf16.mxu1 %v5252_v30  ;;  %v5261_v46 = vld [vmem:[%s6352_s4 + $0x180] ss:$16 sps:$4 sm:$0xff]   ;;  %v5267_v35 = vld [vmem:[%s6352_s4 + $0x188] ss:$16 sps:$4 sm:$0xff]  }
 0x48a   :  { %v1721_v44 = vmul.f32 %v3319_v53, %v4892_v51  ;;  %6894 = vst [vmem:[#allocation69_spill] sm:$0xff] %v5261_v46  ;;  %6895 = vst [vmem:[#allocation31_spill] sm:$0xff] %v5267_v35  ;;  %v5273_v53 = vld [vmem:[%s6352_s4 + $0x1a4] ss:$16 sps:$4 sm:$0xff]   ;;  %v5279_v51 = vld [vmem:[%s6352_s4 + $0x1ac] ss:$16 sps:$4 sm:$0xff]  }
 0x48b   :  { %6896 = vst [vmem:[#allocation70_spill] sm:$0xff] %v5273_v53  ;;  %6897 = vst [vmem:[#allocation32_spill] sm:$0xff] %v5279_v51 }
 0x48c   :  { %v5256_v14 = vadd.f32 %v1722_v33, %v1721_v44  ;;  %1844 = vmatpush1.bf16.msra.mxu0 %v5261_v46  ;;  %1885 = vmatpush1.bf16.msra.mxu1 %v5267_v35  ;;  %v5286_v44 = vld [vmem:[%s6352_s4 + $0x1a0] ss:$16 sps:$4 sm:$0xff]   ;;  %v5292_v33 = vld [vmem:[%s6352_s4 + $0x1a8] ss:$16 sps:$4 sm:$0xff]  }
 0x48d   :  { %1845 = vmatprep.subr.bf16.mxu0 %v5273_v53  ;;  %1886 = vmatprep.subr.bf16.mxu1 %v5279_v51  ;;  %6898 = vst [vmem:[#allocation71_spill] sm:$0xff] %v5286_v44  ;;  %6899 = vst [vmem:[#allocation33_spill] sm:$0xff] %v5292_v33 }
 0x48e   :  { %3322 = vtanh.f32 %v5256_v14 }
 0x490   :  { %1846 = vmatpush1.bf16.msra.mxu0 %v5286_v44  ;;  %1887 = vmatpush1.bf16.msra.mxu1 %v5292_v33  ;;  %v5310_v44 = vld [vmem:[%s6352_s4 + $0x1c0] ss:$16 sps:$4 sm:$0xff]   ;;  %v5316_v33 = vld [vmem:[%s6352_s4 + $0x1c8] ss:$16 sps:$4 sm:$0xff]  }
 0x491   :  { %1847 = vmatprep.subr.bf16.mxu0 %v5298_v38  ;;  %1888 = vmatprep.subr.bf16.mxu1 %v5304_v18  ;;  %6902 = vst [vmem:[#allocation35_spill] sm:$0xff] %v5310_v44  ;;  %6903 = vst [vmem:[#allocation36_spill] sm:$0xff] %v5316_v33  ;;  %v5322_v38 = vld [vmem:[%s6352_s4 + $0x1e4] ss:$16 sps:$4 sm:$0xff]   ;;  %v5328_v18 = vld [vmem:[%s6352_s4 + $0x1ec] ss:$16 sps:$4 sm:$0xff]  }
 0x492   :  { %6904 = vst [vmem:[#allocation37_spill] sm:$0xff] %v5322_v38  ;;  %6905 = vst [vmem:[#allocation38_spill] sm:$0xff] %v5328_v18 }
 0x494   :  { %1848 = vmatpush1.bf16.msra.mxu0 %v5310_v44  ;;  %1889 = vmatpush1.bf16.msra.mxu1 %v5316_v33  ;;  %v3321_v44 = vpop.eup %3320  ;;  %v5334_v33 = vld [vmem:[%s6352_s4 + $0x1e0] ss:$16 sps:$4 sm:$0xff]  }
 0x495   :  { %1849 = vmatprep.subr.bf16.mxu0 %v5322_v38  ;;  %1890 = vmatprep.subr.bf16.mxu1 %v5328_v18  ;;  %6906 = vst [vmem:[#allocation39_spill] sm:$0xff] %v5334_v33  ;;  %v5340_v38 = vld [vmem:[%s6352_s4 + $0x1e8] ss:$16 sps:$4 sm:$0xff]   ;;  %v5348_v18 = vld [vmem:[%s6350_s2 + $0x4] ss:$16 sps:$4 sm:$0xff]  }
 0x496   :  { %6907 = vst [vmem:[#allocation40_spill] sm:$0xff] %v5340_v38  ;;  %6909 = vst [vmem:[#allocation48_spill] sm:$0xff] %v5348_v18 }
 0x498   :  { %v3323_v51 = vpop.eup %3322  ;;  %1850 = vmatpush1.bf16.msra.mxu0 %v5334_v33  ;;  %1891 = vmatpush1.bf16.msra.mxu1 %v5340_v38 }
 0x499   :  { %v5343_v53 = vmul.f32 %v3323_v51, %v3321_v44  ;;  %1949 = vmatprep.subr.bf16.mxu0 %v5348_v18  ;;  %1990 = vmatprep.subr.bf16.mxu1 %v6828_v5  ;;  %v5359_v51 = vld [vmem:[%s6350_s2] ss:$16 sps:$4 sm:$0xff]   ;;  %v5366_v5 = vld [vmem:[%s6350_s2 + $0x24] ss:$16 sps:$4 sm:$0xff]  }
 0x49a   :  { %6910 = vst [vmem:[#allocation51_spill] sm:$0xff] %v5359_v51  ;;  %6911 = vst [vmem:[#allocation52_spill] sm:$0xff] %v5366_v5 }
 0x49b   :  { %6908 = vst [vmem:[#allocation41_spill] sm:$0xff] %v5343_v53  ;;  %v1818_v33 = vpack.c.bf16 %v5343_v53, %v5343_v53  ;;  %v6941_v53 = vld [vmem:[#allocation61_spill] sm:$0xff] }
 0x49d   :  { %1851 = vmatprep.mubr.bf16.mxu0 %v1818_v33  ;;  %1892 = vmatprep.mubr.bf16.mxu1 %v1818_v33 }
 0x49e   :  { %1852 = vmatmul.mubr.bf16.vlgmr.msra.gmra.mrb[32].mxu0 %v4959_v0  ;;  %1893 = vmatmul.mubr.bf16.vlgmr.msra.gmra.mrb[64].mxu1 %v4959_v0  ;;  %v5375_v0 = vld [vmem:[%s6350_s2 + $0x20] ss:$16 sps:$4 sm:$0xff]  }
 0x49f   :  { %1950 = vmatpush1.bf16.msra.mxu0 %v5359_v51  ;;  %1991 = vmatpush1.bf16.msra.mxu1 %v6830_v27  ;;  %6912 = vst [vmem:[#allocation76_spill] sm:$0xff] %v5375_v0 }
 0x4a0   :  { %1951 = vmatprep.subr.bf16.mxu0 %v5366_v5  ;;  %1992 = vmatprep.subr.bf16.mxu1 %v6832_v28 }
 0x4a1   :  { %1981 = vmatprep.mubr.bf16.mxu0 %v6833_v34  ;;  %2022 = vmatprep.mubr.bf16.mxu1 %v6833_v34 }
 0x4a3   :  { %1952 = vmatpush1.bf16.msra.mxu0 %v5375_v0  ;;  %1993 = vmatpush1.bf16.msra.mxu1 %v6835_v23  ;;  %v6913_v23 = vld [vmem:[#allocation8_spill] sm:$0xff] }
 0x4a4   :  { %1953 = vmatprep.subr.bf16.mxu0 %v6836_v17  ;;  %1994 = vmatprep.subr.bf16.mxu1 %v6837_v9  ;;  %v6914_v9 = vld [vmem:[#allocation20_spill] sm:$0xff] }
 0x4a7   :  { %1954 = vmatpush1.bf16.msra.mxu0 %v6838_v3  ;;  %1995 = vmatpush1.bf16.msra.mxu1 %v6839_v32 }
 0x4a8   :  { %1955 = vmatprep.subr.bf16.mxu0 %v6840_v63  ;;  %1996 = vmatprep.subr.bf16.mxu1 %v6841_v31  ;;  %v6915_v31 = vld [vmem:[#allocation9_spill] sm:$0xff] }
 0x4ab   :  { %1956 = vmatpush1.bf16.msra.mxu0 %v6842_v36  ;;  %1997 = vmatpush1.bf16.msra.mxu1 %v6843_v62  ;;  %v6916_v62 = vld [vmem:[#allocation21_spill] sm:$0xff] }
 0x4ac   :  { %1957 = vmatprep.subr.bf16.mxu0 %v6844_v37  ;;  %1998 = vmatprep.subr.bf16.mxu1 %v6845_v15 }
 0x4af   :  { %1958 = vmatpush1.bf16.msra.mxu0 %v6846_v25  ;;  %1999 = vmatpush1.bf16.msra.mxu1 %v6847_v13 }
 0x4b0   :  { %1959 = vmatprep.subr.bf16.mxu0 %v6848_v2  ;;  %2000 = vmatprep.subr.bf16.mxu1 %v6849_v48 }
 0x4b3   :  { %1960 = vmatpush1.bf16.msra.mxu0 %v6850_v49  ;;  %2001 = vmatpush1.bf16.msra.mxu1 %v6851_v50 }
 0x4b4   :  { %1961 = vmatprep.subr.bf16.mxu0 %v6852_v54  ;;  %2002 = vmatprep.subr.bf16.mxu1 %v6853_v4 }
 0x4b7   :  { %1962 = vmatpush1.bf16.msra.mxu0 %v6854_v60  ;;  %2003 = vmatpush1.bf16.msra.mxu1 %v6855_v7 }
 0x4b8   :  { %1963 = vmatprep.subr.bf16.mxu0 %v6856_v21  ;;  %2004 = vmatprep.subr.bf16.mxu1 %v6857_v24 }
 0x4bb   :  { %1964 = vmatpush1.bf16.msra.mxu0 %v6858_v29  ;;  %2005 = vmatpush1.bf16.msra.mxu1 %v6859_v56 }
 0x4bc   :  { %2036 = vmatprep.subr.bf16.mxu0 %v6860_v39  ;;  %2077 = vmatprep.subr.bf16.mxu1 %v6861_v40 }
 0x52e   :  { %v1766_v27 = vpop.f32.mrb[28].mxu0  ;;  %v1807_v28 = vpop.f32.mrb[60].mxu1 }
 0x52f   :  { %v1814_v17 = vadd.f32 %v1766_v27, %v6913_v23  ;;  %v1816_v3 = vadd.f32 %v1807_v28, %v6914_v9  ;;  %v1768_v32 = vpop.f32.mrb[29].mxu0  ;;  %v1809_v63 = vpop.f32.mrb[61].mxu1 }
 0x530   :  { %v1815_v36 = vadd.f32 %v1768_v32, %v6915_v31  ;;  %v1817_v37 = vadd.f32 %v1809_v63, %v6916_v62  ;;  %v1770_v15 = vpop.f32.mrb[30].mxu0  ;;  %v1811_v25 = vpop.f32.mrb[62].mxu1 }
 0x531   :  { %v1901_v13 = vsub.f32 0.0, %v1814_v17  ;;  %v1771_v2 = vpop.f32.mrb[31].mxu0  ;;  %v1812_v48 = vpop.f32.mrb[63].mxu1  ;;  %v6919_v25 = vld [vmem:[#allocation5_spill] sm:$0xff] }
 0x532   :  { %v1906_v49 = vsub.f32 0.0, %v1815_v36  ;;  %v1912_v4 = vsub.f32 0.0, %v1817_v37  ;;  %v6918_v36 = vld [vmem:[#allocation73_spill] sm:$0xff] }
 0x533   :  { %v1902_v50 = vmul.f32 1.442695, %v1901_v13  ;;  %v6920_v13 = vld [vmem:[#allocation74_spill] sm:$0xff] }
 0x534   :  { %v1907_v54 = vmul.f32 1.442695, %v1906_v49  ;;  %v1913_v60 = vmul.f32 1.442695, %v1912_v4 }
 0x535   :  { %3324 = vpow2.f32 %v1902_v50 }
 0x536   :  { %3326 = vpow2.f32 %v1907_v54 }
 0x537   :  { %3328 = vpow2.f32 %v1913_v60 }
 0x538   :  { %3330 = vtanh.f32 %v1816_v3 }
 0x53f   :  { %v3325_v7 = vpop.eup %3324 }
 0x540   :  { %v3327_v21 = vpop.eup %3326  ;;  %v1904_v24 = vadd.f32 1.0, %v3325_v7 }
 0x541   :  { %v1909_v29 = vadd.f32 1.0, %v3327_v21  ;;  %v3329_v56 = vpop.eup %3328 }
 0x542   :  { %3332 = vrcp.f32 %v1904_v24  ;;  %v3331_v39 = vpop.eup %3330  ;;  %v1915_v27 = vadd.f32 1.0, %v3329_v56  ;;  %v6921_v24 = vld [vmem:[#allocation75_spill] sm:$0xff]  ;;  %v6922_v56 = vld [vmem:[#allocation17_spill] sm:$0xff] }
 0x543   :  { %3334 = vrcp.f32 %v1909_v29 }
 0x544   :  { %3336 = vrcp.f32 %v1915_v27  ;;  %v6926_v27 = vld [vmem:[#allocation45_spill] sm:$0xff] }
 0x54c   :  { %v3333_v40 = vpop.eup %3332 }
 0x54d   :  { %v3335_v44 = vpop.eup %3334  ;;  %v1918_v33 = vmul.f32 %v3333_v40, %v3331_v39  ;;  %v6923_v39 = vld [vmem:[#allocation42_spill] sm:$0xff]  ;;  %v6924_v40 = vld [vmem:[#allocation43_spill] sm:$0xff] }
 0x54e   :  { %v1917_v28 = vmul.f32 %v3335_v44, %v4956_v52  ;;  %v3337_v17 = vpop.eup %3336  ;;  %v6917_v52 = vld [vmem:[#allocation16_spill] sm:$0xff] }
 0x54f   :  { %v6925_v44 = vld [vmem:[#allocation44_spill] sm:$0xff] }
 0x550   :  { %v5410_v23 = vadd.f32 %v1918_v33, %v1917_v28  ;;  %v6927_v28 = vld [vmem:[#allocation46_spill] sm:$0xff] }
 0x552   :  { %3338 = vtanh.f32 %v5410_v23 }
 0x55c   :  { %v3339_v9 = vpop.eup %3338 }
 0x55d   :  { %v1921_v32 = vmul.f32 %v3339_v9, %v3337_v17  ;;  %v6928_v17 = vld [vmem:[#allocation47_spill] sm:$0xff]  ;;  %v6929_v9 = vld [vmem:[#allocation49_spill] sm:$0xff] }
 0x55f   :  { %v5413_v3 = vpack.c.bf16 %v1921_v32, %v1921_v32 }
 0x561   :  { %1982 = vmatmul.mubr.bf16.vlgmr.msra.gmra.mrb[36].mxu0 %v5413_v3  ;;  %2023 = vmatmul.mubr.bf16.vlgmr.msra.gmra.mrb[68].mxu1 %v5413_v3 }
 0x562   :  { %2037 = vmatpush1.bf16.msra.mxu0 %v4966_v8  ;;  %2078 = vmatpush1.bf16.msra.mxu1 %v4972_v12 }
 0x563   :  { %2038 = vmatprep.subr.bf16.mxu0 %v4978_v11  ;;  %2079 = vmatprep.subr.bf16.mxu1 %v4984_v59 }
 0x566   :  { %2039 = vmatpush1.bf16.msra.mxu0 %v4990_v19  ;;  %2080 = vmatpush1.bf16.msra.mxu1 %v4996_v41 }
 0x567   :  { %2040 = vmatprep.subr.bf16.mxu0 %v5002_v26  ;;  %2081 = vmatprep.subr.bf16.mxu1 %v5008_v6 }
 0x56a   :  { %2041 = vmatpush1.bf16.msra.mxu0 %v5014_v47  ;;  %2082 = vmatpush1.bf16.msra.mxu1 %v5020_v16 }
 0x56b   :  { %2042 = vmatprep.subr.bf16.mxu0 %v5026_v55  ;;  %2083 = vmatprep.subr.bf16.mxu1 %v5032_v58 }
 0x56e   :  { %2043 = vmatpush1.bf16.msra.mxu0 %v5038_v61  ;;  %2084 = vmatpush1.bf16.msra.mxu1 %v5044_v20 }
 0x56f   :  { %2044 = vmatprep.subr.bf16.mxu0 %v5050_v57  ;;  %2085 = vmatprep.subr.bf16.mxu1 %v6917_v52 }
 0x571   :  { %v1853_v63 = vpop.f32.mrb[32].mxu0  ;;  %v1894_v31 = vpop.f32.mrb[64].mxu1 }
 0x572   :  { %v1854_v62 = vadd.f32 %v1853_v63, %v6918_v36  ;;  %v1855_v37 = vpop.f32.mrb[33].mxu0  ;;  %v1896_v15 = vpop.f32.mrb[65].mxu1  ;;  %2045 = vmatpush1.bf16.msra.mxu0 %v5064_v1  ;;  %2086 = vmatpush1.bf16.msra.mxu1 %v6919_v25  ;;  %v6930_v63 = vld [vmem:[#allocation50_spill] sm:$0xff] }
 0x573   :  { %v1856_v2 = vadd.f32 %v1855_v37, %v6920_v13  ;;  %v1857_v48 = vpop.f32.mrb[34].mxu0  ;;  %v1898_v49 = vpop.f32.mrb[66].mxu1  ;;  %2046 = vmatprep.subr.bf16.mxu0 %v5076_v45  ;;  %2087 = vmatprep.subr.bf16.mxu1 %v5082_v43  ;;  %v1897_v29 = vadd.f32 %v1896_v15, %v6921_v24  ;;  %v6932_v37 = vld [vmem:[#allocation28_spill] sm:$0xff] }
 0x574   :  { %v1922_v50 = vsub.f32 0.0, %v1854_v62  ;;  %v1858_v54 = vpop.f32.mrb[35].mxu0  ;;  %v1899_v4 = vpop.f32.mrb[67].mxu1  ;;  %v6931_v62 = vld [vmem:[#allocation29_spill] sm:$0xff]  ;;  %v1895_v15 = vadd.f32 %v1894_v31, %v6932_v37  ;;  %v6934_v49 = vld [vmem:[#allocation54_spill] sm:$0xff]  ;;  %v6939_v31 = vld [vmem:[#allocation59_spill] sm:$0xff] }
 0x575   :  { %v1927_v60 = vsub.f32 0.0, %v1856_v2  ;;  %v1933_v33 = vsub.f32 0.0, %v1897_v29  ;;  %v6933_v48 = vld [vmem:[#allocation53_spill] sm:$0xff]  ;;  %v6935_v4 = vld [vmem:[#allocation55_spill] sm:$0xff]  ;;  %v6938_v29 = vld [vmem:[#allocation58_spill] sm:$0xff] }
 0x576   :  { %v1923_v7 = vmul.f32 1.442695, %v1922_v50  ;;  %2047 = vmatpush1.bf16.msra.mxu0 %v5089_v22  ;;  %2088 = vmatpush1.bf16.msra.mxu1 %v5095_v10 }
 0x577   :  { %v1928_v21 = vmul.f32 1.442695, %v1927_v60  ;;  %2048 = vmatprep.subr.bf16.mxu0 %v6922_v56  ;;  %2089 = vmatprep.subr.bf16.mxu1 %v6923_v39  ;;  %v1934_v32 = vmul.f32 1.442695, %v1933_v33  ;;  %v6936_v60 = vld [vmem:[#allocation56_spill] sm:$0xff] }
 0x578   :  { %3340 = vpow2.f32 %v1923_v7  ;;  %v6940_v33 = vld [vmem:[#allocation60_spill] sm:$0xff] }
 0x579   :  { %3342 = vpow2.f32 %v1928_v21  ;;  %v6937_v21 = vld [vmem:[#allocation57_spill] sm:$0xff] }
 0x57a   :  { %2049 = vmatpush1.bf16.msra.mxu0 %v6924_v40  ;;  %2090 = vmatpush1.bf16.msra.mxu1 %v6925_v44  ;;  %3344 = vpow2.f32 %v1934_v32  ;;  %v6943_v32 = vld [vmem:[#allocation63_spill] sm:$0xff] }
 0x57b   :  { %2050 = vmatprep.subr.bf16.mxu0 %v6926_v27  ;;  %2091 = vmatprep.subr.bf16.mxu1 %v6927_v28  ;;  %3346 = vtanh.f32 %v1895_v15 }
 0x57e   :  { %2051 = vmatpush1.bf16.msra.mxu0 %v6928_v17  ;;  %2092 = vmatpush1.bf16.msra.mxu1 %v6929_v9 }
 0x57f   :  { %2052 = vmatprep.subr.bf16.mxu0 %v6930_v63  ;;  %2093 = vmatprep.subr.bf16.mxu1 %v6931_v62 }
 0x582   :  { %v3341_v2 = vpop.eup %3340  ;;  %2053 = vmatpush1.bf16.msra.mxu0 %v6933_v48  ;;  %2094 = vmatpush1.bf16.msra.mxu1 %v6934_v49 }
 0x583   :  { %v3343_v50 = vpop.eup %3342  ;;  %v1925_v54 = vadd.f32 1.0, %v3341_v2  ;;  %2054 = vmatprep.subr.bf16.mxu0 %v6935_v4  ;;  %2095 = vmatprep.subr.bf16.mxu1 %v6936_v60  ;;  %v6942_v2 = vld [vmem:[#allocation62_spill] sm:$0xff]  ;;  %v6944_v4 = vld [vmem:[#allocation64_spill] sm:$0xff] }
 0x584   :  { %v1930_v7 = vadd.f32 1.0, %v3343_v50  ;;  %v3345_v15 = vpop.eup %3344 }
 0x585   :  { %3348 = vrcp.f32 %v1925_v54  ;;  %v3347_v50 = vpop.eup %3346  ;;  %v6945_v54 = vld [vmem:[#allocation65_spill] sm:$0xff] }
 0x586   :  { %3350 = vrcp.f32 %v1930_v7  ;;  %2055 = vmatpush1.bf16.msra.mxu0 %v6937_v21  ;;  %2096 = vmatpush1.bf16.msra.mxu1 %v6938_v29  ;;  %v6946_v7 = vld [vmem:[#allocation66_spill] sm:$0xff] }
 0x587   :  { %2056 = vmatprep.subr.bf16.mxu0 %v6939_v31  ;;  %2097 = vmatprep.subr.bf16.mxu1 %v6940_v33 }
 0x58a   :  { %2057 = vmatpush1.bf16.msra.mxu0 %v6941_v53  ;;  %2098 = vmatpush1.bf16.msra.mxu1 %v6942_v2  ;;  %v1936_v53 = vadd.f32 1.0, %v3345_v15  ;;  %v6954_v15 = vld [vmem:[#allocation36_spill] sm:$0xff] }
 0x58b   :  { %2058 = vmatprep.subr.bf16.mxu0 %v6943_v32  ;;  %2099 = vmatprep.subr.bf16.mxu1 %v6944_v4  ;;  %v6947_v32 = vld [vmem:[#allocation70_spill] sm:$0xff] }
 0x58c   :  { %3352 = vrcp.f32 %v1936_v53  ;;  %v6957_v53 = vld [vmem:[#allocation39_spill] sm:$0xff] }
 0x58e   :  { %2059 = vmatpush1.bf16.msra.mxu0 %v6945_v54  ;;  %2100 = vmatpush1.bf16.msra.mxu1 %v6946_v7  ;;  %v6948_v54 = vld [vmem:[#allocation32_spill] sm:$0xff] }
 0x58f   :  { %v3349_v21 = vpop.eup %3348  ;;  %2060 = vmatprep.subr.bf16.mxu0 %v5246_v42  ;;  %2101 = vmatprep.subr.bf16.mxu1 %v5252_v30  ;;  %v6949_v42 = vld [vmem:[#allocation71_spill] sm:$0xff]  ;;  %v6950_v30 = vld [vmem:[#allocation33_spill] sm:$0xff] }
 0x590   :  { %v3351_v33 = vpop.eup %3350  ;;  %v1939_v31 = vmul.f32 %v3349_v21, %v3347_v50  ;;  %v6951_v21 = vld [vmem:[#allocation72_spill] sm:$0xff] }
 0x591   :  { %v1938_v2 = vmul.f32 %v3351_v33, %v5256_v14  ;;  %v6952_v14 = vld [vmem:[#allocation34_spill] sm:$0xff]  ;;  %v6953_v33 = vld [vmem:[#allocation35_spill] sm:$0xff] }
 0x592   :  { %2061 = vmatpush1.bf16.msra.mxu0 %v5261_v46  ;;  %2102 = vmatpush1.bf16.msra.mxu1 %v5267_v35 }
 0x593   :  { %v5472_v4 = vadd.f32 %v1939_v31, %v1938_v2  ;;  %2062 = vmatprep.subr.bf16.mxu0 %v6947_v32  ;;  %2103 = vmatprep.subr.bf16.mxu1 %v6948_v54  ;;  %v6955_v31 = vld [vmem:[#allocation37_spill] sm:$0xff]  ;;  %v6956_v2 = vld [vmem:[#allocation38_spill] sm:$0xff] }
 0x595   :  { %3354 = vtanh.f32 %v5472_v4 }
 0x596   :  { %2063 = vmatpush1.bf16.msra.mxu0 %v6949_v42  ;;  %2104 = vmatpush1.bf16.msra.mxu1 %v6950_v30  ;;  %v3353_v50 = vpop.eup %3352 }
 0x597   :  { %2064 = vmatprep.subr.bf16.mxu0 %v6951_v21  ;;  %2105 = vmatprep.subr.bf16.mxu1 %v6952_v14  ;;  %v5491_v14 = vld [vmem:[%s6350_s2 + $0xc] ss:$16 sps:$4 sm:$0xff]  }
 0x598   :  { %6958 = vst [vmem:[#allocation77_spill] sm:$0xff] %v5491_v14 }
 0x59a   :  { %2065 = vmatpush1.bf16.msra.mxu0 %v6953_v33  ;;  %2106 = vmatpush1.bf16.msra.mxu1 %v6954_v15 }
 0x59b   :  { %2066 = vmatprep.subr.bf16.mxu0 %v6955_v31  ;;  %2107 = vmatprep.subr.bf16.mxu1 %v6956_v2 }
 0x59e   :  { %2067 = vmatpush1.bf16.msra.mxu0 %v6957_v53  ;;  %2108 = vmatpush1.bf16.msra.mxu1 %v5340_v38  ;;  %v6992_v53 = vld [vmem:[#allocation23_spill] sm:$0xff] }
 0x59f   :  { %v3355_v42 = vpop.eup %3354  ;;  %2166 = vmatprep.subr.bf16.mxu0 %v5348_v18  ;;  %2207 = vmatprep.subr.bf16.mxu1 %v5491_v14  ;;  %v5504_v18 = vld [vmem:[%s6350_s2 + $0x8] ss:$16 sps:$4 sm:$0xff]  }
 0x5a0   :  { %v5494_v15 = vmul.f32 %v3355_v42, %v3353_v50  ;;  %6960 = vst [vmem:[#allocation79_spill] sm:$0xff] %v5504_v18  ;;  %v5511_v42 = vld [vmem:[%s6350_s2 + $0x2c] ss:$16 sps:$4 sm:$0xff]  }
 0x5a1   :  { %6961 = vst [vmem:[#allocation80_spill] sm:$0xff] %v5511_v42  ;;  %v5532_v50 = vld [vmem:[%s6350_s2 + $0x4c] ss:$16 sps:$4 sm:$0xff]  }
 0x5a2   :  { %6959 = vst [vmem:[#allocation78_spill] sm:$0xff] %v5494_v15  ;;  %v2035_v2 = vpack.c.bf16 %v5494_v15, %v5494_v15  ;;  %6964 = vst [vmem:[#allocation83_spill] sm:$0xff] %v5532_v50  ;;  %v5538_v15 = vld [vmem:[%s6350_s2 + $0x40] ss:$16 sps:$4 sm:$0xff]   ;;  %v6991_v14 = vld [vmem:[#allocation11_spill] sm:$0xff] }
 0x5a3   :  { %6965 = vst [vmem:[#allocation84_spill] sm:$0xff] %v5538_v15 }
 0x5a4   :  { %2068 = vmatprep.mubr.bf16.mxu0 %v2035_v2  ;;  %2109 = vmatprep.mubr.bf16.mxu1 %v2035_v2  ;;  %v5526_v2 = vld [vmem:[%s6350_s2 + $0x44] ss:$16 sps:$4 sm:$0xff]  }
 0x5a5   :  { %2069 = vmatmul.mubr.bf16.vlgmr.msra.gmra.mrb[40].mxu0 %v5413_v3  ;;  %2110 = vmatmul.mubr.bf16.vlgmr.msra.gmra.mrb[72].mxu1 %v5413_v3  ;;  %v5520_v3 = vld [vmem:[%s6350_s2 + $0x28] ss:$16 sps:$4 sm:$0xff]   ;;  %6963 = vst [vmem:[#allocation82_spill] sm:$0xff] %v5526_v2 }
 0x5a6   :  { %2167 = vmatpush1.bf16.msra.mxu0 %v5359_v51  ;;  %2208 = vmatpush1.bf16.msra.mxu1 %v5504_v18  ;;  %6962 = vst [vmem:[#allocation81_spill] sm:$0xff] %v5520_v3 }
 0x5a7   :  { %2168 = vmatprep.subr.bf16.mxu0 %v5366_v5  ;;  %2209 = vmatprep.subr.bf16.mxu1 %v5511_v42  ;;  %v6990_v5 = vld [vmem:[#allocation22_spill] sm:$0xff] }
 0x5a8   :  { %2198 = vmatprep.mubr.bf16.mxu0 %v6833_v34  ;;  %2239 = vmatprep.mubr.bf16.mxu1 %v6833_v34  ;;  %v6989_v34 = vld [vmem:[#allocation10_spill] sm:$0xff] }
 0x5aa   :  { %2169 = vmatpush1.bf16.msra.mxu0 %v5375_v0  ;;  %2210 = vmatpush1.bf16.msra.mxu1 %v5520_v3  ;;  %v5544_v3 = vld [vmem:[%s6350_s2 + $0x48] ss:$16 sps:$4 sm:$0xff]  }
 0x5ab   :  { %2170 = vmatprep.subr.bf16.mxu0 %v5526_v2  ;;  %2211 = vmatprep.subr.bf16.mxu1 %v5532_v50  ;;  %6966 = vst [vmem:[#allocation85_spill] sm:$0xff] %v5544_v3  ;;  %v5550_v2 = vld [vmem:[%s6350_s2 + $0x64] ss:$16 sps:$4 sm:$0xff]   ;;  %v5556_v50 = vld [vmem:[%s6350_s2 + $0x6c] ss:$16 sps:$4 sm:$0xff]  }
 0x5ac   :  { %6967 = vst [vmem:[#allocation86_spill] sm:$0xff] %v5550_v2  ;;  %6968 = vst [vmem:[#allocation87_spill] sm:$0xff] %v5556_v50 }
 0x5ae   :  { %2171 = vmatpush1.bf16.msra.mxu0 %v5538_v15  ;;  %2212 = vmatpush1.bf16.msra.mxu1 %v5544_v3  ;;  %v5562_v15 = vld [vmem:[%s6350_s2 + $0x60] ss:$16 sps:$4 sm:$0xff]   ;;  %v5568_v3 = vld [vmem:[%s6350_s2 + $0x68] ss:$16 sps:$4 sm:$0xff]  }
 0x5af   :  { %2172 = vmatprep.subr.bf16.mxu0 %v5550_v2  ;;  %2213 = vmatprep.subr.bf16.mxu1 %v5556_v50  ;;  %6969 = vst [vmem:[#allocation88_spill] sm:$0xff] %v5562_v15  ;;  %6970 = vst [vmem:[#allocation89_spill] sm:$0xff] %v5568_v3  ;;  %v5574_v2 = vld [vmem:[%s6350_s2 + $0x84] ss:$16 sps:$4 sm:$0xff]   ;;  %v5580_v50 = vld [vmem:[%s6350_s2 + $0x8c] ss:$16 sps:$4 sm:$0xff]  }
 0x5b0   :  { %6971 = vst [vmem:[#allocation90_spill] sm:$0xff] %v5574_v2  ;;  %6972 = vst [vmem:[#allocation91_spill] sm:$0xff] %v5580_v50 }
 0x5b2   :  { %2173 = vmatpush1.bf16.msra.mxu0 %v5562_v15  ;;  %2214 = vmatpush1.bf16.msra.mxu1 %v5568_v3  ;;  %v5586_v15 = vld [vmem:[%s6350_s2 + $0x80] ss:$16 sps:$4 sm:$0xff]   ;;  %v5592_v3 = vld [vmem:[%s6350_s2 + $0x88] ss:$16 sps:$4 sm:$0xff]  }
 0x5b3   :  { %2174 = vmatprep.subr.bf16.mxu0 %v5574_v2  ;;  %2215 = vmatprep.subr.bf16.mxu1 %v5580_v50  ;;  %6973 = vst [vmem:[#allocation6_spill] sm:$0xff] %v5586_v15  ;;  %6974 = vst [vmem:[#allocation18_spill] sm:$0xff] %v5592_v3  ;;  %v5598_v2 = vld [vmem:[%s6350_s2 + $0xa4] ss:$16 sps:$4 sm:$0xff]   ;;  %v5604_v50 = vld [vmem:[%s6350_s2 + $0xac] ss:$16 sps:$4 sm:$0xff]  }
 0x5b4   :  { %6975 = vst [vmem:[#allocation7_spill] sm:$0xff] %v5598_v2  ;;  %6976 = vst [vmem:[#allocation19_spill] sm:$0xff] %v5604_v50 }
 0x5b6   :  { %2175 = vmatpush1.bf16.msra.mxu0 %v5586_v15  ;;  %2216 = vmatpush1.bf16.msra.mxu1 %v5592_v3  ;;  %v5610_v15 = vld [vmem:[%s6350_s2 + $0xa0] ss:$16 sps:$4 sm:$0xff]   ;;  %v5616_v3 = vld [vmem:[%s6350_s2 + $0xa8] ss:$16 sps:$4 sm:$0xff]  }
 0x5b7   :  { %2176 = vmatprep.subr.bf16.mxu0 %v5598_v2  ;;  %2217 = vmatprep.subr.bf16.mxu1 %v5604_v50  ;;  %6977 = vst [vmem:[#allocation8_spill] sm:$0xff] %v5610_v15  ;;  %6978 = vst [vmem:[#allocation20_spill] sm:$0xff] %v5616_v3  ;;  %v5622_v2 = vld [vmem:[%s6350_s2 + $0xc4] ss:$16 sps:$4 sm:$0xff]   ;;  %v5628_v50 = vld [vmem:[%s6350_s2 + $0xcc] ss:$16 sps:$4 sm:$0xff]  }
 0x5b8   :  { %6979 = vst [vmem:[#allocation9_spill] sm:$0xff] %v5622_v2  ;;  %6980 = vst [vmem:[#allocation21_spill] sm:$0xff] %v5628_v50 }
 0x5ba   :  { %2177 = vmatpush1.bf16.msra.mxu0 %v5610_v15  ;;  %2218 = vmatpush1.bf16.msra.mxu1 %v5616_v3  ;;  %v5634_v15 = vld [vmem:[%s6350_s2 + $0xc0] ss:$16 sps:$4 sm:$0xff]   ;;  %v5640_v3 = vld [vmem:[%s6350_s2 + $0xc8] ss:$16 sps:$4 sm:$0xff]  }
 0x5bb   :  { %2178 = vmatprep.subr.bf16.mxu0 %v5622_v2  ;;  %2219 = vmatprep.subr.bf16.mxu1 %v5628_v50  ;;  %6981 = vst [vmem:[#allocation16_spill] sm:$0xff] %v5634_v15  ;;  %6982 = vst [vmem:[#allocation5_spill] sm:$0xff] %v5640_v3  ;;  %v5646_v2 = vld [vmem:[%s6350_s2 + $0xe4] ss:$16 sps:$4 sm:$0xff]   ;;  %v5652_v50 = vld [vmem:[%s6350_s2 + $0xec] ss:$16 sps:$4 sm:$0xff]  }
 0x5bc   :  { %6983 = vst [vmem:[#allocation17_spill] sm:$0xff] %v5646_v2  ;;  %6984 = vst [vmem:[#allocation42_spill] sm:$0xff] %v5652_v50 }
 0x5be   :  { %2179 = vmatpush1.bf16.msra.mxu0 %v5634_v15  ;;  %2220 = vmatpush1.bf16.msra.mxu1 %v5640_v3  ;;  %v5658_v15 = vld [vmem:[%s6350_s2 + $0xe0] ss:$16 sps:$4 sm:$0xff]   ;;  %v5664_v3 = vld [vmem:[%s6350_s2 + $0xe8] ss:$16 sps:$4 sm:$0xff]  }
 0x5bf   :  { %2180 = vmatprep.subr.bf16.mxu0 %v5646_v2  ;;  %2221 = vmatprep.subr.bf16.mxu1 %v5652_v50  ;;  %6985 = vst [vmem:[#allocation43_spill] sm:$0xff] %v5658_v15  ;;  %6986 = vst [vmem:[#allocation44_spill] sm:$0xff] %v5664_v3  ;;  %v5670_v2 = vld [vmem:[%s6352_s4 + $0x4] ss:$16 sps:$4 sm:$0xff]   ;;  %v5676_v50 = vld [vmem:[%s6352_s4 + $0xc] ss:$16 sps:$4 sm:$0xff]  }
 0x5c0   :  { %6987 = vst [vmem:[#allocation45_spill] sm:$0xff] %v5670_v2  ;;  %6988 = vst [vmem:[#allocation46_spill] sm:$0xff] %v5676_v50 }
 0x5c2   :  { %2181 = vmatpush1.bf16.msra.mxu0 %v5658_v15  ;;  %2222 = vmatpush1.bf16.msra.mxu1 %v5664_v3 }
 0x5c3   :  { %2253 = vmatprep.subr.bf16.mxu0 %v5670_v2  ;;  %2294 = vmatprep.subr.bf16.mxu1 %v5676_v50 }
 0x634   :  { %v1983_v15 = vpop.f32.mrb[36].mxu0  ;;  %v2024_v0 = vpop.f32.mrb[68].mxu1 }
 0x635   :  { %v2031_v42 = vadd.f32 %v1983_v15, %v6989_v34  ;;  %v2033_v3 = vadd.f32 %v2024_v0, %v6990_v5  ;;  %v1985_v18 = vpop.f32.mrb[37].mxu0  ;;  %v2026_v51 = vpop.f32.mrb[69].mxu1 }
 0x636   :  { %v2032_v38 = vadd.f32 %v1985_v18, %v6991_v14  ;;  %v2034_v31 = vadd.f32 %v2026_v51, %v6992_v53  ;;  %v1987_v2 = vpop.f32.mrb[38].mxu0  ;;  %v2028_v33 = vpop.f32.mrb[70].mxu1 }
 0x637   :  { %v2118_v21 = vsub.f32 0.0, %v2031_v42  ;;  %v1988_v30 = vpop.f32.mrb[39].mxu0  ;;  %v2029_v54 = vpop.f32.mrb[71].mxu1 }
 0x638   :  { %v2123_v32 = vsub.f32 0.0, %v2032_v38  ;;  %v2129_v46 = vsub.f32 0.0, %v2034_v31 }
 0x639   :  { %v2119_v35 = vmul.f32 1.442695, %v2118_v21 }
 0x63a   :  { %v2124_v50 = vmul.f32 1.442695, %v2123_v32  ;;  %v2130_v34 = vmul.f32 1.442695, %v2129_v46 }
 0x63b   :  { %3356 = vpow2.f32 %v2119_v35 }
 0x63c   :  { %3358 = vpow2.f32 %v2124_v50  ;;  %v7004_v50 = vld [vmem:[#allocation69_spill] sm:$0xff] }
 0x63d   :  { %3360 = vpow2.f32 %v2130_v34  ;;  %v7005_v34 = vld [vmem:[#allocation31_spill] sm:$0xff] }
 0x63e   :  { %3362 = vtanh.f32 %v2033_v3 }
 0x645   :  { %v3357_v15 = vpop.eup %3356 }
 0x646   :  { %v3359_v5 = vpop.eup %3358  ;;  %v2121_v0 = vadd.f32 1.0, %v3357_v15  ;;  %v7006_v15 = vld [vmem:[#allocation70_spill] sm:$0xff] }
 0x647   :  { %v2126_v18 = vadd.f32 1.0, %v3359_v5  ;;  %v3361_v51 = vpop.eup %3360  ;;  %v7007_v5 = vld [vmem:[#allocation32_spill] sm:$0xff] }
 0x648   :  { %3364 = vrcp.f32 %v2121_v0  ;;  %v3363_v14 = vpop.eup %3362  ;;  %v2132_v38 = vadd.f32 1.0, %v3361_v51  ;;  %v7008_v0 = vld [vmem:[#allocation71_spill] sm:$0xff]  ;;  %v7010_v51 = vld [vmem:[#allocation72_spill] sm:$0xff] }
 0x649   :  { %3366 = vrcp.f32 %v2126_v18  ;;  %v7009_v18 = vld [vmem:[#allocation33_spill] sm:$0xff] }
 0x64a   :  { %3368 = vrcp.f32 %v2132_v38  ;;  %v7016_v38 = vld [vmem:[#allocation39_spill] sm:$0xff] }
 0x652   :  { %v3365_v33 = vpop.eup %3364 }
 0x653   :  { %v3367_v30 = vpop.eup %3366  ;;  %v2135_v54 = vmul.f32 %v3365_v33, %v3363_v14  ;;  %v7012_v14 = vld [vmem:[#allocation35_spill] sm:$0xff]  ;;  %v7013_v33 = vld [vmem:[#allocation36_spill] sm:$0xff] }
 0x654   :  { %v2134_v32 = vmul.f32 %v3367_v30, %v5410_v23  ;;  %v3369_v46 = vpop.eup %3368  ;;  %v7014_v30 = vld [vmem:[#allocation37_spill] sm:$0xff] }
 0x656   :  { %v5684_v35 = vadd.f32 %v2135_v54, %v2134_v32  ;;  %v7015_v54 = vld [vmem:[#allocation38_spill] sm:$0xff]  ;;  %v7017_v32 = vld [vmem:[#allocation40_spill] sm:$0xff] }
 0x658   :  { %3370 = vtanh.f32 %v5684_v35 }
 0x662   :  { %v3371_v21 = vpop.eup %3370 }
 0x663   :  { %v2138_v31 = vmul.f32 %v3371_v21, %v3369_v46  ;;  %v7018_v21 = vld [vmem:[#allocation48_spill] sm:$0xff] }
 0x665   :  { %v5687_v53 = vpack.c.bf16 %v2138_v31, %v2138_v31  ;;  %v7019_v31 = vld [vmem:[#allocation77_spill] sm:$0xff] }
 0x667   :  { %2199 = vmatmul.mubr.bf16.vlgmr.msra.gmra.mrb[44].mxu0 %v5687_v53  ;;  %2240 = vmatmul.mubr.bf16.vlgmr.msra.gmra.mrb[76].mxu1 %v5687_v53 }
 0x668   :  { %2254 = vmatpush1.bf16.msra.mxu0 %v4966_v8  ;;  %2295 = vmatpush1.bf16.msra.mxu1 %v4972_v12 }
 0x669   :  { %2255 = vmatprep.subr.bf16.mxu0 %v4978_v11  ;;  %2296 = vmatprep.subr.bf16.mxu1 %v4984_v59 }
 0x66c   :  { %2256 = vmatpush1.bf16.msra.mxu0 %v4990_v19  ;;  %2297 = vmatpush1.bf16.msra.mxu1 %v4996_v41 }
 0x66d   :  { %2257 = vmatprep.subr.bf16.mxu0 %v5002_v26  ;;  %2298 = vmatprep.subr.bf16.mxu1 %v5008_v6 }
 0x670   :  { %2258 = vmatpush1.bf16.msra.mxu0 %v5014_v47  ;;  %2299 = vmatpush1.bf16.msra.mxu1 %v5020_v16 }
 0x671   :  { %2259 = vmatprep.subr.bf16.mxu0 %v5026_v55  ;;  %2300 = vmatprep.subr.bf16.mxu1 %v5032_v58 }
 0x674   :  { %2260 = vmatpush1.bf16.msra.mxu0 %v5038_v61  ;;  %2301 = vmatpush1.bf16.msra.mxu1 %v5044_v20 }
 0x675   :  { %2261 = vmatprep.subr.bf16.mxu0 %v5050_v57  ;;  %2302 = vmatprep.subr.bf16.mxu1 %v6917_v52 }
 0x678   :  { %v2070_v8 = vpop.f32.mrb[40].mxu0  ;;  %v2111_v12 = vpop.f32.mrb[72].mxu1  ;;  %2262 = vmatpush1.bf16.msra.mxu0 %v5064_v1  ;;  %2303 = vmatpush1.bf16.msra.mxu1 %v6919_v25 }
 0x679   :  { %v2071_v11 = vadd.f32 %v2070_v8, %v6918_v36  ;;  %v2072_v59 = vpop.f32.mrb[41].mxu0  ;;  %v2113_v19 = vpop.f32.mrb[73].mxu1  ;;  %2263 = vmatprep.subr.bf16.mxu0 %v5076_v45  ;;  %2304 = vmatprep.subr.bf16.mxu1 %v5082_v43  ;;  %v2112_v43 = vadd.f32 %v2111_v12, %v6932_v37 }
 0x67a   :  { %v2073_v41 = vadd.f32 %v2072_v59, %v6920_v13  ;;  %v2074_v26 = vpop.f32.mrb[42].mxu0  ;;  %v2115_v6 = vpop.f32.mrb[74].mxu1  ;;  %v2114_v57 = vadd.f32 %v2113_v19, %v6921_v24  ;;  %v7021_v59 = vld [vmem:[#allocation51_spill] sm:$0xff] }
 0x67b   :  { %v2139_v47 = vsub.f32 0.0, %v2071_v11  ;;  %v2075_v16 = vpop.f32.mrb[43].mxu0  ;;  %v2116_v55 = vpop.f32.mrb[75].mxu1  ;;  %v7022_v19 = vld [vmem:[#allocation79_spill] sm:$0xff]  ;;  %v7024_v26 = vld [vmem:[#allocation80_spill] sm:$0xff]  ;;  %v7025_v6 = vmov 0  }
 0x67c   :  { %v2144_v58 = vsub.f32 0.0, %v2073_v41  ;;  %2264 = vmatpush1.bf16.msra.mxu0 %v5089_v22  ;;  %2305 = vmatpush1.bf16.msra.mxu1 %v5095_v10  ;;  %v2150_v1 = vsub.f32 0.0, %v2114_v57  ;;  %v6993_v10 = vld [vmem:[#allocation55_spill] sm:$0xff]  ;;  %v7023_v41 = vld [vmem:[#allocation52_spill] sm:$0xff]  ;;  %v7027_v16 = vld [vmem:[#allocation81_spill] sm:$0xff] }
 0x67d   :  { %v2140_v61 = vmul.f32 1.442695, %v2139_v47  ;;  %2265 = vmatprep.subr.bf16.mxu0 %v6922_v56  ;;  %2306 = vmatprep.subr.bf16.mxu1 %v6923_v39  ;;  %v6994_v56 = vld [vmem:[#allocation57_spill] sm:$0xff]  ;;  %v6995_v39 = vld [vmem:[#allocation59_spill] sm:$0xff]  ;;  %v7026_v47 = vld [vmem:[#allocation76_spill] sm:$0xff] }
 0x67e   :  { %v2145_v20 = vmul.f32 1.442695, %v2144_v58  ;;  %v2151_v45 = vmul.f32 1.442695, %v2150_v1  ;;  %v7028_v55 = vld [vmem:[#allocation82_spill] sm:$0xff]  ;;  %v7029_v58 = vld [vmem:[#allocation83_spill] sm:$0xff] }
 0x67f   :  { %3372 = vpow2.f32 %v2140_v61  ;;  %v7031_v61 = vld [vmem:[#allocation85_spill] sm:$0xff]  ;;  %v7033_v57 = vld [vmem:[#allocation87_spill] sm:$0xff]  ;;  %v7034_v1 = vld [vmem:[#allocation88_spill] sm:$0xff] }
 0x680   :  { %3374 = vpow2.f32 %v2145_v20  ;;  %2266 = vmatpush1.bf16.msra.mxu0 %v6924_v40  ;;  %2307 = vmatpush1.bf16.msra.mxu1 %v6925_v44  ;;  %v6996_v40 = vld [vmem:[#allocation60_spill] sm:$0xff]  ;;  %v6997_v44 = vld [vmem:[#allocation61_spill] sm:$0xff]  ;;  %v7032_v20 = vld [vmem:[#allocation86_spill] sm:$0xff] }
 0x681   :  { %2267 = vmatprep.subr.bf16.mxu0 %v6926_v27  ;;  %2308 = vmatprep.subr.bf16.mxu1 %v6927_v28  ;;  %3376 = vpow2.f32 %v2151_v45  ;;  %v6998_v27 = vld [vmem:[#allocation62_spill] sm:$0xff]  ;;  %v6999_v28 = vld [vmem:[#allocation63_spill] sm:$0xff]  ;;  %v7035_v45 = vld [vmem:[#allocation89_spill] sm:$0xff] }
 0x682   :  { %3378 = vtanh.f32 %v2112_v43  ;;  %v7036_v43 = vld [vmem:[#allocation90_spill] sm:$0xff] }
 0x684   :  { %2268 = vmatpush1.bf16.msra.mxu0 %v6928_v17  ;;  %2309 = vmatpush1.bf16.msra.mxu1 %v6929_v9  ;;  %v7000_v17 = vld [vmem:[#allocation64_spill] sm:$0xff] }
 0x685   :  { %2269 = vmatprep.subr.bf16.mxu0 %v6930_v63  ;;  %2310 = vmatprep.subr.bf16.mxu1 %v6931_v62  ;;  %v7001_v63 = vld [vmem:[#allocation65_spill] sm:$0xff] }
 0x688   :  { %2270 = vmatpush1.bf16.msra.mxu0 %v6933_v48  ;;  %2311 = vmatpush1.bf16.msra.mxu1 %v6934_v49  ;;  %v7002_v48 = vld [vmem:[#allocation67_spill] sm:$0xff]  ;;  %v7003_v49 = vld [vmem:[#allocation68_spill] sm:$0xff] }
 0x689   :  { %v3373_v22 = vpop.eup %3372  ;;  %2271 = vmatprep.subr.bf16.mxu0 %v6993_v10  ;;  %2312 = vmatprep.subr.bf16.mxu1 %v6936_v60  ;;  %v7038_v10 = vld [vmem:[#allocation6_spill] sm:$0xff] }
 0x68a   :  { %v3375_v23 = vpop.eup %3374  ;;  %v2142_v52 = vadd.f32 1.0, %v3373_v22  ;;  %v7037_v22 = vld [vmem:[#allocation91_spill] sm:$0xff] }
 0x68b   :  { %v2147_v25 = vadd.f32 1.0, %v3375_v23  ;;  %v3377_v9 = vpop.eup %3376  ;;  %v7039_v23 = vld [vmem:[#allocation18_spill] sm:$0xff] }
 0x68c   :  { %3380 = vrcp.f32 %v2142_v52  ;;  %2272 = vmatpush1.bf16.msra.mxu0 %v6994_v56  ;;  %2313 = vmatpush1.bf16.msra.mxu1 %v6938_v29  ;;  %v3379_v62 = vpop.eup %3378  ;;  %v2153_v3 = vadd.f32 1.0, %v3377_v9  ;;  %v7040_v52 = vld [vmem:[#allocation7_spill] sm:$0xff]  ;;  %v7042_v56 = vld [vmem:[#allocation8_spill] sm:$0xff]  ;;  %v7049_v9 = vld [vmem:[#allocation42_spill] sm:$0xff] }
 0x68d   :  { %3382 = vrcp.f32 %v2147_v25  ;;  %2273 = vmatprep.subr.bf16.mxu0 %v6995_v39  ;;  %2314 = vmatprep.subr.bf16.mxu1 %v6996_v40  ;;  %v7041_v25 = vld [vmem:[#allocation19_spill] sm:$0xff]  ;;  %v7043_v39 = vld [vmem:[#allocation20_spill] sm:$0xff]  ;;  %v7044_v40 = vld [vmem:[#allocation9_spill] sm:$0xff] }
 0x68e   :  { %3384 = vrcp.f32 %v2153_v3 }
 0x690   :  { %2274 = vmatpush1.bf16.msra.mxu0 %v6997_v44  ;;  %2315 = vmatpush1.bf16.msra.mxu1 %v6998_v27  ;;  %v7045_v44 = vld [vmem:[#allocation21_spill] sm:$0xff]  ;;  %v7046_v27 = vld [vmem:[#allocation16_spill] sm:$0xff] }
 0x691   :  { %2275 = vmatprep.subr.bf16.mxu0 %v6999_v28  ;;  %2316 = vmatprep.subr.bf16.mxu1 %v7000_v17  ;;  %v7047_v28 = vld [vmem:[#allocation5_spill] sm:$0xff] }
 0x692   :  { %v7048_v17 = vld [vmem:[#allocation17_spill] sm:$0xff] }
 0x694   :  { %2276 = vmatpush1.bf16.msra.mxu0 %v7001_v63  ;;  %2317 = vmatpush1.bf16.msra.mxu1 %v6946_v7  ;;  %v7050_v63 = vld [vmem:[#allocation43_spill] sm:$0xff] }
 0x695   :  { %2277 = vmatprep.subr.bf16.mxu0 %v7002_v48  ;;  %2318 = vmatprep.subr.bf16.mxu1 %v7003_v49  ;;  %v7052_v48 = vld [vmem:[#allocation45_spill] sm:$0xff]  ;;  %v7053_v49 = vld [vmem:[#allocation46_spill] sm:$0xff] }
 0x696   :  { %v3381_v60 = vpop.eup %3380 }
 0x697   :  { %v3383_v29 = vpop.eup %3382  ;;  %v2156_v42 = vmul.f32 %v3381_v60, %v3379_v62  ;;  %v7051_v62 = vld [vmem:[#allocation44_spill] sm:$0xff] }
 0x698   :  { %v2155_v2 = vmul.f32 %v3383_v29, %v5472_v4  ;;  %2278 = vmatpush1.bf16.msra.mxu0 %v7004_v50  ;;  %2319 = vmatpush1.bf16.msra.mxu1 %v7005_v34  ;;  %v7011_v4 = vld [vmem:[#allocation34_spill] sm:$0xff]  ;;  %v3385_v46 = vpop.eup %3384 }
 0x699   :  { %2279 = vmatprep.subr.bf16.mxu0 %v7006_v15  ;;  %2320 = vmatprep.subr.bf16.mxu1 %v7007_v5  ;;  %v7056_v5 = vld [vmem:[#allocation13_spill] sm:$0xff] }
 0x69a   :  { %v5748_v7 = vadd.f32 %v2156_v42, %v2155_v2  ;;  %v7054_v42 = vld [vmem:[#allocation12_spill] sm:$0xff] }
 0x69b   :  { %v7055_v2 = vld [vmem:[#allocation24_spill] sm:$0xff] }
 0x69c   :  { %2280 = vmatpush1.bf16.msra.mxu0 %v7008_v0  ;;  %2321 = vmatpush1.bf16.msra.mxu1 %v7009_v18  ;;  %3386 = vtanh.f32 %v5748_v7  ;;  %v7057_v18 = vld [vmem:[#allocation25_spill] sm:$0xff] }
 0x69d   :  { %2281 = vmatprep.subr.bf16.mxu0 %v7010_v51  ;;  %2322 = vmatprep.subr.bf16.mxu1 %v7011_v4 }
 0x6a0   :  { %2282 = vmatpush1.bf16.msra.mxu0 %v7012_v14  ;;  %2323 = vmatpush1.bf16.msra.mxu1 %v7013_v33 }
 0x6a1   :  { %2283 = vmatprep.subr.bf16.mxu0 %v7014_v30  ;;  %2324 = vmatprep.subr.bf16.mxu1 %v7015_v54 }
 0x6a4   :  { %2284 = vmatpush1.bf16.msra.mxu0 %v7016_v38  ;;  %2325 = vmatpush1.bf16.msra.mxu1 %v7017_v32 }
 0x6a5   :  { %2383 = vmatprep.subr.bf16.mxu0 %v7018_v21  ;;  %2424 = vmatprep.subr.bf16.mxu1 %v7019_v31 }
 0x6a6   :  { %v3387_v8 = vpop.eup %3386 }
 0x6a7   :  { %v5763_v12 = vmul.f32 %v3387_v8, %v3385_v46 }
 0x6a9   :  { %7020 = vst [vmem:[#allocation47_spill] sm:$0xff] %v5763_v12  ;;  %v2252_v11 = vpack.c.bf16 %v5763_v12, %v5763_v12  ;;  %v6110_v12 = vld [vmem:[%s6352_s4 + $0x180] ss:$16 sps:$4 sm:$0xff]  }
 0x6ab   :  { %2285 = vmatprep.mubr.bf16.mxu0 %v2252_v11  ;;  %2326 = vmatprep.mubr.bf16.mxu1 %v2252_v11 }
 0x6ac   :  { %2286 = vmatmul.mubr.bf16.vlgmr.msra.gmra.mrb[48].mxu0 %v5687_v53  ;;  %2327 = vmatmul.mubr.bf16.vlgmr.msra.gmra.mrb[80].mxu1 %v5687_v53  ;;  %v7030_v53 = vld [vmem:[#allocation84_spill] sm:$0xff] }
 0x6ad   :  { %2384 = vmatpush1.bf16.msra.mxu0 %v7021_v59  ;;  %2425 = vmatpush1.bf16.msra.mxu1 %v7022_v19 }
 0x6ae   :  { %2385 = vmatprep.subr.bf16.mxu0 %v7023_v41  ;;  %2426 = vmatprep.subr.bf16.mxu1 %v7024_v26 }
 0x6af   :  { %2415 = vmatprep.mubr.bf16.mxu0 %v7025_v6  ;;  %2456 = vmatprep.mubr.bf16.mxu1 %v7025_v6 }
 0x6b1   :  { %2386 = vmatpush1.bf16.msra.mxu0 %v7026_v47  ;;  %2427 = vmatpush1.bf16.msra.mxu1 %v7027_v16 }
 0x6b2   :  { %2387 = vmatprep.subr.bf16.mxu0 %v7028_v55  ;;  %2428 = vmatprep.subr.bf16.mxu1 %v7029_v58 }
 0x6b5   :  { %2388 = vmatpush1.bf16.msra.mxu0 %v7030_v53  ;;  %2429 = vmatpush1.bf16.msra.mxu1 %v7031_v61 }
 0x6b6   :  { %2389 = vmatprep.subr.bf16.mxu0 %v7032_v20  ;;  %2430 = vmatprep.subr.bf16.mxu1 %v7033_v57 }
 0x6b9   :  { %2390 = vmatpush1.bf16.msra.mxu0 %v7034_v1  ;;  %2431 = vmatpush1.bf16.msra.mxu1 %v7035_v45  ;;  %v5818_v45 = vld [vmem:[%s6352_s4] ss:$16 sps:$4 sm:$0xff]  }
 0x6ba   :  { %2391 = vmatprep.subr.bf16.mxu0 %v7036_v43  ;;  %2432 = vmatprep.subr.bf16.mxu1 %v7037_v22  ;;  %v5830_v43 = vld [vmem:[%s6352_s4 + $0x24] ss:$16 sps:$4 sm:$0xff]   ;;  %v5836_v22 = vld [vmem:[%s6352_s4 + $0x2c] ss:$16 sps:$4 sm:$0xff]  }
 0x6bd   :  { %2392 = vmatpush1.bf16.msra.mxu0 %v7038_v10  ;;  %2433 = vmatpush1.bf16.msra.mxu1 %v7039_v23  ;;  %v5842_v10 = vld [vmem:[%s6352_s4 + $0x20] ss:$16 sps:$4 sm:$0xff]   ;;  %v5848_v23 = vld [vmem:[%s6352_s4 + $0x28] ss:$16 sps:$4 sm:$0xff]  }
 0x6be   :  { %2393 = vmatprep.subr.bf16.mxu0 %v7040_v52  ;;  %2434 = vmatprep.subr.bf16.mxu1 %v7041_v25  ;;  %v5854_v52 = vld [vmem:[%s6352_s4 + $0x44] ss:$16 sps:$4 sm:$0xff]   ;;  %v5860_v25 = vld [vmem:[%s6352_s4 + $0x4c] ss:$16 sps:$4 sm:$0xff]  }
 0x6c1   :  { %2394 = vmatpush1.bf16.msra.mxu0 %v7042_v56  ;;  %2435 = vmatpush1.bf16.msra.mxu1 %v7043_v39  ;;  %v5866_v56 = vld [vmem:[%s6352_s4 + $0x40] ss:$16 sps:$4 sm:$0xff]   ;;  %v5872_v39 = vld [vmem:[%s6352_s4 + $0x48] ss:$16 sps:$4 sm:$0xff]  }
 0x6c2   :  { %2395 = vmatprep.subr.bf16.mxu0 %v7044_v40  ;;  %2436 = vmatprep.subr.bf16.mxu1 %v7045_v44  ;;  %v5878_v40 = vld [vmem:[%s6352_s4 + $0x64] ss:$16 sps:$4 sm:$0xff]   ;;  %v5884_v44 = vld [vmem:[%s6352_s4 + $0x6c] ss:$16 sps:$4 sm:$0xff]  }
 0x6c5   :  { %2396 = vmatpush1.bf16.msra.mxu0 %v7046_v27  ;;  %2437 = vmatpush1.bf16.msra.mxu1 %v7047_v28  ;;  %v5890_v27 = vld [vmem:[%s6352_s4 + $0x60] ss:$16 sps:$4 sm:$0xff]   ;;  %v5896_v28 = vld [vmem:[%s6352_s4 + $0x68] ss:$16 sps:$4 sm:$0xff]  }
 0x6c6   :  { %2397 = vmatprep.subr.bf16.mxu0 %v7048_v17  ;;  %2438 = vmatprep.subr.bf16.mxu1 %v7049_v9  ;;  %v5902_v17 = vld [vmem:[%s6352_s4 + $0x84] ss:$16 sps:$4 sm:$0xff]   ;;  %v5908_v9 = vld [vmem:[%s6352_s4 + $0x8c] ss:$16 sps:$4 sm:$0xff]  }
 0x6c9   :  { %2398 = vmatpush1.bf16.msra.mxu0 %v7050_v63  ;;  %2439 = vmatpush1.bf16.msra.mxu1 %v7051_v62  ;;  %v5914_v63 = vld [vmem:[%s6352_s4 + $0x80] ss:$16 sps:$4 sm:$0xff]   ;;  %v5920_v62 = vld [vmem:[%s6352_s4 + $0x88] ss:$16 sps:$4 sm:$0xff]  }
 0x6ca   :  { %2470 = vmatprep.subr.bf16.mxu0 %v7052_v48  ;;  %2511 = vmatprep.subr.bf16.mxu1 %v7053_v49 }
 0x73a   :  { %v2200_v60 = vpop.f32.mrb[44].mxu0  ;;  %v2241_v29 = vpop.f32.mrb[76].mxu1 }
 0x73b   :  { %v2248_v3 = vadd.f32 %v2200_v60, %v7054_v42  ;;  %v2250_v50 = vadd.f32 %v2241_v29, %v7055_v2  ;;  %v2202_v34 = vpop.f32.mrb[45].mxu0  ;;  %v2243_v15 = vpop.f32.mrb[77].mxu1  ;;  %v5926_v42 = vld [vmem:[%s6352_s4 + $0xa4] ss:$16 sps:$4 sm:$0xff]  }
 0x73c   :  { %v2249_v0 = vadd.f32 %v2202_v34, %v7056_v5  ;;  %v2251_v51 = vadd.f32 %v2243_v15, %v7057_v18  ;;  %v2204_v4 = vpop.f32.mrb[46].mxu0  ;;  %v2245_v14 = vpop.f32.mrb[78].mxu1 }
 0x73d   :  { %v2335_v33 = vsub.f32 0.0, %v2248_v3  ;;  %v2205_v30 = vpop.f32.mrb[47].mxu0  ;;  %v2246_v54 = vpop.f32.mrb[79].mxu1  ;;  %v5932_v3 = vld [vmem:[%s6352_s4 + $0xac] ss:$16 sps:$4 sm:$0xff]  }
 0x73e   :  { %v2340_v38 = vsub.f32 0.0, %v2249_v0  ;;  %v2346_v21 = vsub.f32 0.0, %v2251_v51  ;;  %v5940_v14 = vld [vmem:[%s6352_s4 + $0xa0] ss:$16 sps:$4 sm:$0xff]   ;;  %v5952_v54 = vld [vmem:[%s6352_s4 + $0xc4] ss:$16 sps:$4 sm:$0xff]  }
 0x73f   :  { %v2336_v32 = vmul.f32 1.442695, %v2335_v33  ;;  %v5946_v33 = vld [vmem:[%s6352_s4 + $0xa8] ss:$16 sps:$4 sm:$0xff]  }
 0x740   :  { %v2341_v46 = vmul.f32 1.442695, %v2340_v38  ;;  %v2347_v31 = vmul.f32 1.442695, %v2346_v21  ;;  %v5958_v38 = vld [vmem:[%s6352_s4 + $0xcc] ss:$16 sps:$4 sm:$0xff]  }
 0x741   :  { %3388 = vpow2.f32 %v2336_v32 }
 0x742   :  { %3390 = vpow2.f32 %v2341_v46 }
 0x743   :  { %3392 = vpow2.f32 %v2347_v31  ;;  %v5965_v31 = vld [vmem:[%s6352_s4 + $0xc0] ss:$16 sps:$4 sm:$0xff]  }
 0x744   :  { %3394 = vtanh.f32 %v2250_v50 }
 0x74b   :  { %v3389_v8 = vpop.eup %3388 }
 0x74c   :  { %v3391_v11 = vpop.eup %3390  ;;  %v2338_v59 = vadd.f32 1.0, %v3389_v8  ;;  %v5971_v8 = vld [vmem:[%s6352_s4 + $0xc8] ss:$16 sps:$4 sm:$0xff]  }
 0x74d   :  { %v2343_v19 = vadd.f32 1.0, %v3391_v11  ;;  %v3393_v41 = vpop.eup %3392  ;;  %v5977_v11 = vld [vmem:[%s6352_s4 + $0xe4] ss:$16 sps:$4 sm:$0xff]  }
 0x74e   :  { %3396 = vrcp.f32 %v2338_v59  ;;  %v3395_v26 = vpop.eup %3394  ;;  %v2349_v55 = vadd.f32 1.0, %v3393_v41  ;;  %v5983_v59 = vld [vmem:[%s6352_s4 + $0xec] ss:$16 sps:$4 sm:$0xff]   ;;  %v5989_v41 = vld [vmem:[%s6352_s4 + $0xe0] ss:$16 sps:$4 sm:$0xff]  }
 0x74f   :  { %3398 = vrcp.f32 %v2343_v19 }
 0x750   :  { %3400 = vrcp.f32 %v2349_v55 }
 0x758   :  { %v3397_v6 = vpop.eup %3396 }
 0x759   :  { %v3399_v47 = vpop.eup %3398  ;;  %v2352_v16 = vmul.f32 %v3397_v6, %v3395_v26  ;;  %v5995_v26 = vld [vmem:[%s6352_s4 + $0xe8] ss:$16 sps:$4 sm:$0xff]   ;;  %v6001_v6 = vld [vmem:[%s6352_s4 + $0x104] ss:$16 sps:$4 sm:$0xff]  }
 0x75a   :  { %v2351_v58 = vmul.f32 %v3399_v47, %v5684_v35  ;;  %v3401_v61 = vpop.eup %3400  ;;  %v5824_v35 = vld [vmem:[%s6352_s4 + $0x8] ss:$16 sps:$4 sm:$0xff]   ;;  %v6007_v47 = vld [vmem:[%s6352_s4 + $0x10c] ss:$16 sps:$4 sm:$0xff]  }
 0x75c   :  { %v5808_v53 = vadd.f32 %v2352_v16, %v2351_v58  ;;  %v6014_v58 = vld [vmem:[%s6352_s4 + $0x100] ss:$16 sps:$4 sm:$0xff]  }
 0x75e   :  { %7058 = vst [vmem:[#allocation49_spill] sm:$0xff] %v5808_v53  ;;  %3402 = vtanh.f32 %v5808_v53  ;;  %v6186_v53 = vld [vmem:[%s6352_s4 + $0x1e0] ss:$16 sps:$4 sm:$0xff]  }
 0x768   :  { %v3403_v20 = vpop.eup %3402 }
 0x769   :  { %v2355_v57 = vmul.f32 %v3403_v20, %v3401_v61  ;;  %v6020_v61 = vld [vmem:[%s6352_s4 + $0x108] ss:$16 sps:$4 sm:$0xff]   ;;  %v6026_v20 = vld [vmem:[%s6352_s4 + $0x124] ss:$16 sps:$4 sm:$0xff]  }
 0x76b   :  { %v5811_v1 = vpack.c.bf16 %v2355_v57, %v2355_v57  ;;  %v6032_v57 = vld [vmem:[%s6352_s4 + $0x12c] ss:$16 sps:$4 sm:$0xff]  }
 0x76d   :  { %2416 = vmatmul.mubr.bf16.vlgmr.msra.gmra.mrb[52].mxu0 %v5811_v1  ;;  %2457 = vmatmul.mubr.bf16.vlgmr.msra.gmra.mrb[84].mxu1 %v5811_v1 }
 0x76e   :  { %2471 = vmatpush1.bf16.msra.mxu0 %v5818_v45  ;;  %2512 = vmatpush1.bf16.msra.mxu1 %v5824_v35 }
 0x76f   :  { %2472 = vmatprep.subr.bf16.mxu0 %v5830_v43  ;;  %2513 = vmatprep.subr.bf16.mxu1 %v5836_v22 }
 0x772   :  { %2473 = vmatpush1.bf16.msra.mxu0 %v5842_v10  ;;  %2514 = vmatpush1.bf16.msra.mxu1 %v5848_v23 }
 0x773   :  { %2474 = vmatprep.subr.bf16.mxu0 %v5854_v52  ;;  %2515 = vmatprep.subr.bf16.mxu1 %v5860_v25 }
 0x776   :  { %2475 = vmatpush1.bf16.msra.mxu0 %v5866_v56  ;;  %2516 = vmatpush1.bf16.msra.mxu1 %v5872_v39 }
 0x777   :  { %2476 = vmatprep.subr.bf16.mxu0 %v5878_v40  ;;  %2517 = vmatprep.subr.bf16.mxu1 %v5884_v44 }
 0x77a   :  { %2477 = vmatpush1.bf16.msra.mxu0 %v5890_v27  ;;  %2518 = vmatpush1.bf16.msra.mxu1 %v5896_v28 }
 0x77b   :  { %2478 = vmatprep.subr.bf16.mxu0 %v5902_v17  ;;  %2519 = vmatprep.subr.bf16.mxu1 %v5908_v9 }
 0x77e   :  { %2479 = vmatpush1.bf16.msra.mxu0 %v5914_v63  ;;  %2520 = vmatpush1.bf16.msra.mxu1 %v5920_v62 }
 0x77f   :  { %v2287_v60 = vpop.f32.mrb[48].mxu0  ;;  %v2328_v29 = vpop.f32.mrb[80].mxu1  ;;  %2480 = vmatprep.subr.bf16.mxu0 %v5926_v42  ;;  %2521 = vmatprep.subr.bf16.mxu1 %v5932_v3 }
 0x780   :  { %v2288_v2 = vadd.f32 %v2287_v60, %v6918_v36  ;;  %v2289_v50 = vpop.f32.mrb[49].mxu0  ;;  %v2330_v34 = vpop.f32.mrb[81].mxu1  ;;  %v2329_v55 = vadd.f32 %v2328_v29, %v6932_v37  ;;  %v6116_v37 = vld [vmem:[%s6352_s4 + $0x188] ss:$16 sps:$4 sm:$0xff]   ;;  %v6174_v36 = vld [vmem:[%s6352_s4 + $0x1e4] ss:$16 sps:$4 sm:$0xff]  }
 0x781   :  { %v2290_v15 = vadd.f32 %v2289_v50, %v6920_v13  ;;  %v2291_v5 = vpop.f32.mrb[50].mxu0  ;;  %v2332_v0 = vpop.f32.mrb[82].mxu1  ;;  %v2331_v21 = vadd.f32 %v2330_v34, %v6921_v24  ;;  %v6038_v34 = vld [vmem:[%s6352_s4 + $0x120] ss:$16 sps:$4 sm:$0xff]   ;;  %v6168_v13 = vld [vmem:[%s6352_s4 + $0x1c8] ss:$16 sps:$4 sm:$0xff]  }
 0x782   :  { %v2356_v18 = vsub.f32 0.0, %v2288_v2  ;;  %v2292_v51 = vpop.f32.mrb[51].mxu0  ;;  %v2333_v4 = vpop.f32.mrb[83].mxu1  ;;  %2481 = vmatpush1.bf16.msra.mxu0 %v5940_v14  ;;  %2522 = vmatpush1.bf16.msra.mxu1 %v5946_v33  ;;  %v6050_v5 = vld [vmem:[%s6352_s4 + $0x144] ss:$16 sps:$4 sm:$0xff]   ;;  %7062 = vst [vmem:[#allocation54_spill] sm:$0xff] %v6168_v13 }
 0x783   :  { %v2361_v30 = vsub.f32 0.0, %v2290_v15  ;;  %2482 = vmatprep.subr.bf16.mxu0 %v5952_v54  ;;  %2523 = vmatprep.subr.bf16.mxu1 %v5958_v38  ;;  %v2367_v19 = vsub.f32 0.0, %v2331_v21  ;;  %v6044_v15 = vld [vmem:[%s6352_s4 + $0x128] ss:$16 sps:$4 sm:$0xff]   ;;  %v6056_v0 = vld [vmem:[%s6352_s4 + $0x14c] ss:$16 sps:$4 sm:$0xff]  }
 0x784   :  { %v2357_v32 = vmul.f32 1.442695, %v2356_v18  ;;  %v6062_v18 = vld [vmem:[%s6352_s4 + $0x140] ss:$16 sps:$4 sm:$0xff]   ;;  %v6068_v51 = vld [vmem:[%s6352_s4 + $0x148] ss:$16 sps:$4 sm:$0xff]  }
 0x785   :  { %v2362_v46 = vmul.f32 1.442695, %v2361_v30  ;;  %v2368_v16 = vmul.f32 1.442695, %v2367_v19  ;;  %v6074_v4 = vld [vmem:[%s6352_s4 + $0x164] ss:$16 sps:$4 sm:$0xff]  }
 0x786   :  { %3404 = vpow2.f32 %v2357_v32  ;;  %2483 = vmatpush1.bf16.msra.mxu0 %v5965_v31  ;;  %2524 = vmatpush1.bf16.msra.mxu1 %v5971_v8  ;;  %v6080_v30 = vld [vmem:[%s6352_s4 + $0x16c] ss:$16 sps:$4 sm:$0xff]   ;;  %v6086_v32 = vld [vmem:[%s6352_s4 + $0x160] ss:$16 sps:$4 sm:$0xff]   ;;  %v6098_v19 = vld [vmem:[%s6352_s4 + $0x184] ss:$16 sps:$4 sm:$0xff]  }
 0x787   :  { %3406 = vpow2.f32 %v2362_v46  ;;  %2484 = vmatprep.subr.bf16.mxu0 %v5977_v11  ;;  %2525 = vmatprep.subr.bf16.mxu1 %v5983_v59  ;;  %v6092_v46 = vld [vmem:[%s6352_s4 + $0x168] ss:$16 sps:$4 sm:$0xff]   ;;  %7063 = vst [vmem:[#allocation56_spill] sm:$0xff] %v6174_v36 }
 0x788   :  { %3408 = vpow2.f32 %v2368_v16  ;;  %v6104_v16 = vld [vmem:[%s6352_s4 + $0x18c] ss:$16 sps:$4 sm:$0xff]  }
 0x789   :  { %3410 = vtanh.f32 %v2329_v55 }
 0x78a   :  { %2485 = vmatpush1.bf16.msra.mxu0 %v5989_v41  ;;  %2526 = vmatpush1.bf16.msra.mxu1 %v5995_v26 }
 0x78b   :  { %2486 = vmatprep.subr.bf16.mxu0 %v6001_v6  ;;  %2527 = vmatprep.subr.bf16.mxu1 %v6007_v47 }
 0x78e   :  { %2487 = vmatpush1.bf16.msra.mxu0 %v6014_v58  ;;  %2528 = vmatpush1.bf16.msra.mxu1 %v6020_v61 }
 0x78f   :  { %2488 = vmatprep.subr.bf16.mxu0 %v6026_v20  ;;  %2529 = vmatprep.subr.bf16.mxu1 %v6032_v57 }
 0x790   :  { %v3405_v60 = vpop.eup %3404 }
 0x791   :  { %v3407_v29 = vpop.eup %3406  ;;  %v2359_v2 = vadd.f32 1.0, %v3405_v60 }
 0x792   :  { %v2364_v50 = vadd.f32 1.0, %v3407_v29  ;;  %2489 = vmatpush1.bf16.msra.mxu0 %v6038_v34  ;;  %2530 = vmatpush1.bf16.msra.mxu1 %v6044_v15  ;;  %v3409_v21 = vpop.eup %3408 }
 0x793   :  { %3412 = vrcp.f32 %v2359_v2  ;;  %2490 = vmatprep.subr.bf16.mxu0 %v6050_v5  ;;  %2531 = vmatprep.subr.bf16.mxu1 %v6056_v0  ;;  %v3411_v55 = vpop.eup %3410 }
 0x794   :  { %3414 = vrcp.f32 %v2364_v50  ;;  %v2370_v50 = vadd.f32 1.0, %v3409_v21  ;;  %v6123_v21 = vld [vmem:[%s6352_s4 + $0x1a4] ss:$16 sps:$4 sm:$0xff]  }
 0x796   :  { %2491 = vmatpush1.bf16.msra.mxu0 %v6062_v18  ;;  %2532 = vmatpush1.bf16.msra.mxu1 %v6068_v51  ;;  %3416 = vrcp.f32 %v2370_v50  ;;  %v6162_v50 = vld [vmem:[%s6352_s4 + $0x1c0] ss:$16 sps:$4 sm:$0xff]  }
 0x797   :  { %2492 = vmatprep.subr.bf16.mxu0 %v6074_v4  ;;  %2533 = vmatprep.subr.bf16.mxu1 %v6080_v30  ;;  %7061 = vst [vmem:[#allocation53_spill] sm:$0xff] %v6162_v50 }
 0x79a   :  { %2493 = vmatpush1.bf16.msra.mxu0 %v6086_v32  ;;  %2534 = vmatpush1.bf16.msra.mxu1 %v6092_v46 }
 0x79b   :  { %2494 = vmatprep.subr.bf16.mxu0 %v6098_v19  ;;  %2535 = vmatprep.subr.bf16.mxu1 %v6104_v16 }
 0x79d   :  { %v3413_v60 = vpop.eup %3412 }
 0x79e   :  { %v3415_v29 = vpop.eup %3414  ;;  %v2373_v2 = vmul.f32 %v3413_v60, %v3411_v55  ;;  %2495 = vmatpush1.bf16.msra.mxu0 %v6110_v12  ;;  %2536 = vmatpush1.bf16.msra.mxu1 %v6116_v37  ;;  %v6129_v55 = vld [vmem:[%s6352_s4 + $0x1ac] ss:$16 sps:$4 sm:$0xff]  }
 0x79f   :  { %v2372_v24 = vmul.f32 %v3415_v29, %v5748_v7  ;;  %2496 = vmatprep.subr.bf16.mxu0 %v6123_v21  ;;  %2537 = vmatprep.subr.bf16.mxu1 %v6129_v55  ;;  %v6137_v7 = vld [vmem:[%s6352_s4 + $0x1a0] ss:$16 sps:$4 sm:$0xff]   ;;  %v6143_v29 = vld [vmem:[%s6352_s4 + $0x1a8] ss:$16 sps:$4 sm:$0xff]  }
 0x7a1   :  { %v6132_v60 = vadd.f32 %v2373_v2, %v2372_v24  ;;  %v6149_v24 = vld [vmem:[%s6352_s4 + $0x1c4] ss:$16 sps:$4 sm:$0xff]   ;;  %v6155_v2 = vld [vmem:[%s6352_s4 + $0x1cc] ss:$16 sps:$4 sm:$0xff]  }
 0x7a2   :  { %2497 = vmatpush1.bf16.msra.mxu0 %v6137_v7  ;;  %2538 = vmatpush1.bf16.msra.mxu1 %v6143_v29  ;;  %7060 = vst [vmem:[#allocation29_spill] sm:$0xff] %v6155_v2 }
 0x7a3   :  { %7059 = vst [vmem:[#allocation50_spill] sm:$0xff] %v6132_v60  ;;  %2498 = vmatprep.subr.bf16.mxu0 %v6149_v24  ;;  %2539 = vmatprep.subr.bf16.mxu1 %v6155_v2  ;;  %3418 = vtanh.f32 %v6132_v60  ;;  %v6180_v60 = vld [vmem:[%s6352_s4 + $0x1ec] ss:$16 sps:$4 sm:$0xff]  }
 0x7a4   :  { %7064 = vst [vmem:[#allocation58_spill] sm:$0xff] %v6180_v60 }
 0x7a6   :  { %2499 = vmatpush1.bf16.msra.mxu0 %v6162_v50  ;;  %2540 = vmatpush1.bf16.msra.mxu1 %v6168_v13  ;;  %v6192_v13 = vld [vmem:[%s6352_s4 + $0x1e8] ss:$16 sps:$4 sm:$0xff]  }
 0x7a7   :  { %2500 = vmatprep.subr.bf16.mxu0 %v6174_v36  ;;  %2541 = vmatprep.subr.bf16.mxu1 %v6180_v60  ;;  %v3417_v36 = vpop.eup %3416 }
 0x7aa   :  { %2501 = vmatpush1.bf16.msra.mxu0 %v6186_v53  ;;  %2542 = vmatpush1.bf16.msra.mxu1 %v6192_v13 }
 0x7ab   :  { %2597 = vmatprep.subr.bf16.mxu0 %v7052_v48  ;;  %2638 = vmatprep.subr.bf16.mxu1 %v7053_v49  ;;  %v7066_v48 = vld [vmem:[#allocation53_spill] sm:$0xff]  ;;  %v7067_v49 = vld [vmem:[#allocation54_spill] sm:$0xff] }
 0x7ad   :  { %v3419_v60 = vpop.eup %3418 }
 0x7ae   :  { %v6197_v50 = vmul.f32 %v3419_v60, %v3417_v36  ;;  %v7065_v36 = vld [vmem:[#allocation29_spill] sm:$0xff] }
 0x7b0   :  { %v2469_v2 = vpack.c.bf16 %v6197_v50, %v6197_v50 }
 0x7b2   :  { %2502 = vmatprep.mubr.bf16.mxu0 %v2469_v2  ;;  %2543 = vmatprep.mubr.bf16.mxu1 %v2469_v2 }
 0x7b3   :  { %2503 = vmatmul.mubr.bf16.vlgmr.msra.gmra.mrb[56].mxu0 %v5811_v1  ;;  %2544 = vmatmul.mubr.bf16.vlgmr.msra.gmra.mrb[88].mxu1 %v5811_v1  ;;  %v7068_v1 = vld [vmem:[#allocation56_spill] sm:$0xff] }
 0x7b4   :  { %2598 = vmatpush1.bf16.msra.mxu0 %v5818_v45  ;;  %2639 = vmatpush1.bf16.msra.mxu1 %v5824_v35 }
 0x7b5   :  { %2599 = vmatprep.subr.bf16.mxu0 %v5830_v43  ;;  %2640 = vmatprep.subr.bf16.mxu1 %v5836_v22  ;;  %v7070_v43 = vld [vmem:[#allocation14_spill] sm:$0xff] }
 0x7b8   :  { %2600 = vmatpush1.bf16.msra.mxu0 %v5842_v10  ;;  %2641 = vmatpush1.bf16.msra.mxu1 %v5848_v23  ;;  %v7071_v10 = vld [vmem:[#allocation26_spill] sm:$0xff] }
 0x7b9   :  { %2601 = vmatprep.subr.bf16.mxu0 %v5854_v52  ;;  %2642 = vmatprep.subr.bf16.mxu1 %v5860_v25 }
 0x7bc   :  { %2602 = vmatpush1.bf16.msra.mxu0 %v5866_v56  ;;  %2643 = vmatpush1.bf16.msra.mxu1 %v5872_v39  ;;  %v7072_v56 = vld [vmem:[#allocation15_spill] sm:$0xff] }
 0x7bd   :  { %2603 = vmatprep.subr.bf16.mxu0 %v5878_v40  ;;  %2644 = vmatprep.subr.bf16.mxu1 %v5884_v44 }
 0x7c0   :  { %2604 = vmatpush1.bf16.msra.mxu0 %v5890_v27  ;;  %2645 = vmatpush1.bf16.msra.mxu1 %v5896_v28 }
 0x7c1   :  { %2605 = vmatprep.subr.bf16.mxu0 %v5902_v17  ;;  %2646 = vmatprep.subr.bf16.mxu1 %v5908_v9 }
 0x7c4   :  { %2606 = vmatpush1.bf16.msra.mxu0 %v5914_v63  ;;  %2647 = vmatpush1.bf16.msra.mxu1 %v5920_v62 }
 0x7c5   :  { %2607 = vmatprep.subr.bf16.mxu0 %v5926_v42  ;;  %2648 = vmatprep.subr.bf16.mxu1 %v5932_v3 }
 0x7c8   :  { %2608 = vmatpush1.bf16.msra.mxu0 %v5940_v14  ;;  %2649 = vmatpush1.bf16.msra.mxu1 %v5946_v33 }
 0x7c9   :  { %2609 = vmatprep.subr.bf16.mxu0 %v5952_v54  ;;  %2650 = vmatprep.subr.bf16.mxu1 %v5958_v38 }
 0x7cc   :  { %2610 = vmatpush1.bf16.msra.mxu0 %v5965_v31  ;;  %2651 = vmatpush1.bf16.msra.mxu1 %v5971_v8 }
 0x7cd   :  { %2611 = vmatprep.subr.bf16.mxu0 %v5977_v11  ;;  %2652 = vmatprep.subr.bf16.mxu1 %v5983_v59 }
 0x7d0   :  { %2612 = vmatpush1.bf16.msra.mxu0 %v5989_v41  ;;  %2653 = vmatpush1.bf16.msra.mxu1 %v5995_v26 }
 0x7d1   :  { %2613 = vmatprep.subr.bf16.mxu0 %v6001_v6  ;;  %2654 = vmatprep.subr.bf16.mxu1 %v6007_v47  ;;  %v7074_v6 = vld [vmem:[#allocation49_spill] sm:$0xff] }
 0x7d4   :  { %2614 = vmatpush1.bf16.msra.mxu0 %v6014_v58  ;;  %2655 = vmatpush1.bf16.msra.mxu1 %v6020_v61 }
 0x7d5   :  { %2615 = vmatprep.subr.bf16.mxu0 %v6026_v20  ;;  %2656 = vmatprep.subr.bf16.mxu1 %v6032_v57 }
 0x7d8   :  { %2616 = vmatpush1.bf16.msra.mxu0 %v6038_v34  ;;  %2657 = vmatpush1.bf16.msra.mxu1 %v6044_v15 }
 0x7d9   :  { %2617 = vmatprep.subr.bf16.mxu0 %v6050_v5  ;;  %2658 = vmatprep.subr.bf16.mxu1 %v6056_v0  ;;  %v7075_v5 = vld [vmem:[#allocation73_spill] sm:$0xff] }
 0x7dc   :  { %2618 = vmatpush1.bf16.msra.mxu0 %v6062_v18  ;;  %2659 = vmatpush1.bf16.msra.mxu1 %v6068_v51 }
 0x7dd   :  { %2619 = vmatprep.subr.bf16.mxu0 %v6074_v4  ;;  %2660 = vmatprep.subr.bf16.mxu1 %v6080_v30  ;;  %v7076_v4 = vld [vmem:[#allocation74_spill] sm:$0xff] }
 0x7e0   :  { %2620 = vmatpush1.bf16.msra.mxu0 %v6086_v32  ;;  %2661 = vmatpush1.bf16.msra.mxu1 %v6092_v46 }
 0x7e1   :  { %2621 = vmatprep.subr.bf16.mxu0 %v6098_v19  ;;  %2662 = vmatprep.subr.bf16.mxu1 %v6104_v16 }
 0x7e4   :  { %2622 = vmatpush1.bf16.msra.mxu0 %v6110_v12  ;;  %2663 = vmatpush1.bf16.msra.mxu1 %v6116_v37  ;;  %v7069_v12 = vld [vmem:[#allocation58_spill] sm:$0xff]  ;;  %v6268_v37 = vld [vmem:[%s6355_s6] sm:$0xff]  }
 0x7e5   :  { %2623 = vmatprep.subr.bf16.mxu0 %v6123_v21  ;;  %2664 = vmatprep.subr.bf16.mxu1 %v6129_v55 }
 0x7e8   :  { %2624 = vmatpush1.bf16.msra.mxu0 %v6137_v7  ;;  %2665 = vmatpush1.bf16.msra.mxu1 %v6143_v29  ;;  %v7077_v29 = vld [vmem:[#allocation75_spill] sm:$0xff] }
 0x7e9   :  { %2625 = vmatprep.subr.bf16.mxu0 %v6149_v24  ;;  %2666 = vmatprep.subr.bf16.mxu1 %v7065_v36 }
 0x7ec   :  { %2626 = vmatpush1.bf16.msra.mxu0 %v7066_v48  ;;  %2667 = vmatpush1.bf16.msra.mxu1 %v7067_v49  ;;  %v7078_v48 = vld [vmem:[#allocation28_spill] sm:$0xff] }
 0x7ed   :  { %2627 = vmatprep.subr.bf16.mxu0 %v7068_v1  ;;  %2668 = vmatprep.subr.bf16.mxu1 %v7069_v12 }
 0x7f0   :  { %2628 = vmatpush1.bf16.msra.mxu0 %v6186_v53  ;;  %2669 = vmatpush1.bf16.msra.mxu1 %v6192_v13  ;;  %v7073_v53 = vld [vmem:[#allocation27_spill] sm:$0xff] }
 0x7f1   :  { %3006 = vmatprep.subr.bf16.mxu0 %v6268_v37 }
 0x840   :  { %v2417_v45 = vpop.f32.mrb[52].mxu0  ;;  %v2458_v35 = vpop.f32.mrb[84].mxu1 }
 0x841   :  { %v2465_v22 = vadd.f32 %v2417_v45, %v7070_v43  ;;  %v2467_v23 = vadd.f32 %v2458_v35, %v7071_v10  ;;  %v2419_v52 = vpop.f32.mrb[53].mxu0  ;;  %v2460_v25 = vpop.f32.mrb[85].mxu1 }
 0x842   :  { %v2466_v39 = vadd.f32 %v2419_v52, %v7072_v56  ;;  %v2468_v40 = vadd.f32 %v2460_v25, %v7073_v53  ;;  %v2421_v13 = vpop.f32.mrb[54].mxu0  ;;  %v2462_v44 = vpop.f32.mrb[86].mxu1  ;;  %v7079_v56 = vld [vmem:[#allocation50_spill] sm:$0xff] }
 0x843   :  { %v2552_v27 = vsub.f32 0.0, %v2465_v22  ;;  %v2422_v28 = vpop.f32.mrb[55].mxu0  ;;  %v2463_v17 = vpop.f32.mrb[87].mxu1 }
 0x844   :  { %v2557_v9 = vsub.f32 0.0, %v2466_v39  ;;  %v2563_v42 = vsub.f32 0.0, %v2468_v40  ;;  %v3205_v17 = vld [vmem:[%s6355_s6 + $0x8] sm:$0xff]  }
 0x845   :  { %v2553_v63 = vmul.f32 1.442695, %v2552_v27 }
 0x846   :  { %v2558_v62 = vmul.f32 1.442695, %v2557_v9  ;;  %v2564_v3 = vmul.f32 1.442695, %v2563_v42  ;;  %v7080_v9 = vld [vmem:[#allocation30_spill] sm:$0xff] }
 0x847   :  { %3420 = vpow2.f32 %v2553_v63  ;;  %v7081_v63 = vld [vmem:[#allocation4_spill] sm:$0xff]  ;;  %v3206_v42 = vld [vmem:[%s6355_s6 + $0x10] sm:$0xff]  }
 0x848   :  { %3422 = vpow2.f32 %v2558_v62  ;;  %v2709_v62 = vpack.c.bf16 %v7081_v63, %v7080_v9 }
 0x849   :  { %3424 = vpow2.f32 %v2564_v3  ;;  %v3207_v3 = vld [vmem:[%s6355_s6 + $0x18] sm:$0xff]  }
 0x84a   :  { %3426 = vtanh.f32 %v2467_v23 }
 0x851   :  { %v3421_v14 = vpop.eup %3420 }
 0x852   :  { %v3423_v33 = vpop.eup %3422  ;;  %v2555_v54 = vadd.f32 1.0, %v3421_v14  ;;  %v3208_v14 = vld [vmem:[%s6355_s6 + $0x20] sm:$0xff]  }
 0x853   :  { %v2560_v38 = vadd.f32 1.0, %v3423_v33  ;;  %v3425_v31 = vpop.eup %3424  ;;  %v3210_v33 = vld [vmem:[%s6355_s6 + $0x30] sm:$0xff]  }
 0x854   :  { %3428 = vrcp.f32 %v2555_v54  ;;  %v3427_v8 = vpop.eup %3426  ;;  %v2566_v26 = vadd.f32 1.0, %v3425_v31  ;;  %v3211_v54 = vld [vmem:[%s6355_s6 + $0x38] sm:$0xff]   ;;  %v7083_v31 = vld [vmem:[#allocation78_spill] sm:$0xff] }
 0x855   :  { %3430 = vrcp.f32 %v2560_v38  ;;  %v7082_v38 = vld [vmem:[#allocation41_spill] sm:$0xff] }
 0x856   :  { %3432 = vrcp.f32 %v2566_v26 }
 0x85e   :  { %v3429_v11 = vpop.eup %3428 }
 0x85f   :  { %v3431_v59 = vpop.eup %3430  ;;  %v2569_v41 = vmul.f32 %v3429_v11, %v3427_v8  ;;  %v2710_v8 = vpack.c.bf16 %v7083_v31, %v7082_v38  ;;  %v7084_v11 = vld [vmem:[#allocation47_spill] sm:$0xff] }
 0x860   :  { %v2568_v47 = vmul.f32 %v3431_v59, %v7074_v6  ;;  %v3433_v61 = vpop.eup %3432  ;;  %v2711_v59 = vpack.c.bf16 %v6197_v50, %v7084_v11 }
 0x862   :  { %v2570_v58 = vadd.f32 %v2569_v41, %v2568_v47 }
 0x864   :  { %3434 = vtanh.f32 %v2570_v58 }
 0x86e   :  { %v3435_v20 = vpop.eup %3434 }
 0x86f   :  { %v2572_v57 = vmul.f32 %v3435_v20, %v3433_v61 }
 0x871   :  { %v2595_v28 = vpack.c.bf16 %v2572_v57, %v2572_v57 }
 0x886   :  { %v2504_v34 = vpop.f32.mrb[56].mxu0  ;;  %v2545_v15 = vpop.f32.mrb[88].mxu1 }
 0x887   :  { %v2505_v0 = vadd.f32 %v2504_v34, %v7075_v5  ;;  %v2506_v18 = vpop.f32.mrb[57].mxu0  ;;  %v2547_v51 = vpop.f32.mrb[89].mxu1  ;;  %v2546_v49 = vadd.f32 %v2545_v15, %v7078_v48 }
 0x888   :  { %v2507_v30 = vadd.f32 %v2506_v18, %v7076_v4  ;;  %v2508_v32 = vpop.f32.mrb[58].mxu0  ;;  %v2549_v46 = vpop.f32.mrb[90].mxu1  ;;  %v2548_v24 = vadd.f32 %v2547_v51, %v7077_v29 }
 0x889   :  { %v2573_v19 = vsub.f32 0.0, %v2505_v0  ;;  %v2509_v16 = vpop.f32.mrb[59].mxu0  ;;  %v2550_v21 = vpop.f32.mrb[91].mxu1 }
 0x88a   :  { %v2578_v55 = vsub.f32 0.0, %v2507_v30  ;;  %v2584_v2 = vsub.f32 0.0, %v2548_v24 }
 0x88b   :  { %v2574_v60 = vmul.f32 1.442695, %v2573_v19 }
 0x88c   :  { %v2579_v7 = vmul.f32 1.442695, %v2578_v55  ;;  %v2585_v36 = vmul.f32 1.442695, %v2584_v2 }
 0x88d   :  { %3436 = vpow2.f32 %v2574_v60 }
 0x88e   :  { %3438 = vpow2.f32 %v2579_v7 }
 0x88f   :  { %3440 = vpow2.f32 %v2585_v36 }
 0x890   :  { %3442 = vtanh.f32 %v2546_v49 }
 0x897   :  { %v3437_v1 = vpop.eup %3436 }
 0x898   :  { %v3439_v12 = vpop.eup %3438  ;;  %v2576_v45 = vadd.f32 1.0, %v3437_v1 }
 0x899   :  { %v2581_v35 = vadd.f32 1.0, %v3439_v12  ;;  %v3441_v43 = vpop.eup %3440 }
 0x89a   :  { %3444 = vrcp.f32 %v2576_v45  ;;  %v3443_v22 = vpop.eup %3442  ;;  %v2587_v25 = vadd.f32 1.0, %v3441_v43 }
 0x89b   :  { %3446 = vrcp.f32 %v2581_v35 }
 0x89c   :  { %3448 = vrcp.f32 %v2587_v25 }
 0x8a4   :  { %v3445_v10 = vpop.eup %3444 }
 0x8a5   :  { %v3447_v23 = vpop.eup %3446  ;;  %v2590_v52 = vmul.f32 %v3445_v10, %v3443_v22 }
 0x8a6   :  { %v2589_v39 = vmul.f32 %v3447_v23, %v7079_v56  ;;  %v3449_v40 = vpop.eup %3448 }
 0x8a8   :  { %v6281_v53 = vadd.f32 %v2590_v52, %v2589_v39 }
 0x8aa   :  { %3450 = vtanh.f32 %v6281_v53 }
 0x8b4   :  { %v3451_v13 = vpop.eup %3450 }
 0x8b5   :  { %v6284_v44 = vmul.f32 %v3451_v13, %v3449_v40 }
 0x8b7   :  { %v2596_v27 = vpack.c.bf16 %v6284_v44, %v6284_v44 }
 0x8b9   :  { %2629 = vmatprep.mubr.bf16.mxu0 %v2596_v27  ;;  %2670 = vmatprep.mubr.bf16.mxu1 %v2596_v27 }
 0x8ba   :  { %2630 = vmatmul.mubr.bf16.vlgmr.msra.gmra.mrb[60].mxu0 %v2595_v28  ;;  %2671 = vmatmul.mubr.bf16.vlgmr.msra.gmra.mrb[92].mxu1 %v2595_v28 }
 0x8bb   :  { %3007 = vmatpush3.bf16.msra.mxu0 %v6268_v37  ;;  %3022 = vmatprep.mubr.bf16.mxu0 %v2709_v62  ;;  %v3209_v37 = vld [vmem:[%s6355_s6 + $0x28] sm:$0xff]  }
 0x8bc   :  { %3008 = vmatprep.subr.bf16.mxu0 %v3205_v17 }
 0x8bf   :  { %3009 = vmatpush3.bf16.msra.mxu0 %v3205_v17 }
 0x8c0   :  { %3010 = vmatprep.subr.bf16.mxu0 %v3206_v42 }
 0x8c3   :  { %3011 = vmatpush3.bf16.msra.mxu0 %v3206_v42 }
 0x8c4   :  { %3012 = vmatprep.subr.bf16.mxu0 %v3207_v3 }
 0x8c7   :  { %3013 = vmatpush3.bf16.msra.mxu0 %v3207_v3 }
 0x8c8   :  { %3014 = vmatprep.subr.bf16.mxu0 %v3208_v14 }
 0x8cb   :  { %3015 = vmatpush3.bf16.msra.mxu0 %v3208_v14 }
 0x8cc   :  { %3016 = vmatprep.subr.bf16.mxu0 %v3209_v37 }
 0x8cf   :  { %3017 = vmatpush3.bf16.msra.mxu0 %v3209_v37 }
 0x8d0   :  { %3018 = vmatprep.subr.bf16.mxu0 %v3210_v33 }
 0x8d3   :  { %3019 = vmatpush3.bf16.msra.mxu0 %v3210_v33 }
 0x8d4   :  { %3020 = vmatprep.subr.bf16.mxu0 %v3211_v54 }
 0x8d7   :  { %3021 = vmatpush3.bf16.msra.mxu0 %v3211_v54 }
 0x8da   :  { %3023 = vmatmul.mubr.bf16.vlgmr.msra.gmra.mrb[64].mxu0 %v2710_v8 }
 0x8db   :  { %3026 = vmatprep.mubr.bf16.mxu0 %v2711_v59 }
 0x98d   :  { %v2631_v41 = vpop.f32.mrb[60].mxu0  ;;  %v2672_v26 = vpop.f32.mrb[92].mxu1 }
 0x98e   :  { %v2632_v6 = vadd.f32 %v2631_v41, %v7075_v5  ;;  %v2633_v47 = vpop.f32.mrb[61].mxu0  ;;  %v2674_v58 = vpop.f32.mrb[93].mxu1  ;;  %v2673_v5 = vadd.f32 %v2672_v26, %v7078_v48 }
 0x98f   :  { %v2634_v61 = vadd.f32 %v2633_v47, %v7076_v4  ;;  %v2635_v20 = vpop.f32.mrb[62].mxu0  ;;  %v2676_v57 = vpop.f32.mrb[94].mxu1  ;;  %v2675_v50 = vadd.f32 %v2674_v58, %v7077_v29  ;;  %v2985_v29 = vld [vmem:[%s6356_s7] ss:$0 sm:$0xff] }
 0x990   :  { %v2679_v34 = vsub.f32 0.0, %v2632_v6  ;;  %v2636_v15 = vpop.f32.mrb[63].mxu0  ;;  %v2677_v0 = vpop.f32.mrb[95].mxu1 }
 0x991   :  { %v2684_v18 = vsub.f32 0.0, %v2634_v61  ;;  %v2690_v32 = vsub.f32 0.0, %v2675_v50 }
 0x992   :  { %v2680_v51 = vmul.f32 1.442695, %v2679_v34 }
 0x993   :  { %v2685_v30 = vmul.f32 1.442695, %v2684_v18  ;;  %v2691_v46 = vmul.f32 1.442695, %v2690_v32 }
 0x994   :  { %3452 = vpow2.f32 %v2680_v51 }
 0x995   :  { %3454 = vpow2.f32 %v2685_v30 }
 0x996   :  { %3456 = vpow2.f32 %v2691_v46 }
 0x997   :  { %3458 = vtanh.f32 %v2673_v5 }
 0x99e   :  { %v3453_v19 = vpop.eup %3452 }
 0x99f   :  { %v3455_v16 = vpop.eup %3454  ;;  %v2682_v21 = vadd.f32 1.0, %v3453_v19 }
 0x9a0   :  { %v2687_v4 = vadd.f32 1.0, %v3455_v16  ;;  %v3457_v55 = vpop.eup %3456 }
 0x9a1   :  { %3460 = vrcp.f32 %v2682_v21  ;;  %v3459_v60 = vpop.eup %3458  ;;  %v2693_v36 = vadd.f32 1.0, %v3457_v55 }
 0x9a2   :  { %3462 = vrcp.f32 %v2687_v4 }
 0x9a3   :  { %3464 = vrcp.f32 %v2693_v36 }
 0x9ab   :  { %v3461_v7 = vpop.eup %3460 }
 0x9ac   :  { %v3463_v24 = vpop.eup %3462  ;;  %v2696_v2 = vmul.f32 %v3461_v7, %v3459_v60 }
 0x9ad   :  { %v2695_v48 = vmul.f32 %v3463_v24, %v6281_v53  ;;  %v3024_v49 = vpop.f32.mrb[64].mxu0  ;;  %v3465_v52 = vpop.eup %3464 }
 0x9ae   :  { %v2827_v1 = vadd.f32 %v3024_v49, %v2985_v29  ;;  %v2818_v12 = vpop.f32.mrb[65].mxu0 }
 0x9af   :  { %v2819_v45 = vadd.f32 %v2985_v29, %v2818_v12  ;;  %v3025_v35 = vpop.f32.mrb[66].mxu0  ;;  %v2697_v43 = vadd.f32 %v2696_v2, %v2695_v48 }
 0x9b0   :  { %2851 = vst [vmem:[%s6357_s8 + $0x10] sm:$0xff] %v2827_v1  ;;  %v2830_v22 = vadd.f32 %v3025_v35, %v2985_v29  ;;  %v2821_v10 = vpop.f32.mrb[67].mxu0 }
 0x9b1   :  { %2849 = vst [vmem:[%s6357_s8] sm:$0xff] %v2819_v45  ;;  %v2822_v23 = vadd.f32 %v2985_v29, %v2821_v10  ;;  %3466 = vtanh.f32 %v2697_v43 }
 0x9b2   :  { %2852 = vst [vmem:[%s6357_s8 + $0x18] sm:$0xff] %v2830_v22 }
 0x9b3   :  { %2850 = vst [vmem:[%s6357_s8 + $0x8] sm:$0xff] %v2822_v23 }
 0x9bb   :  { %v3467_v25 = vpop.eup %3466 }
 0x9bc   :  { %v2699_v56 = vmul.f32 %v3467_v25, %v3465_v52 }
 0x9be   :  { %v2712_v39 = vpack.c.bf16 %v2699_v56, %v6284_v44 }
 0x9c0   :  { %3027 = vmatmul.mubr.bf16.gmra.mrb[68].mxu0 %v2712_v39 }
 0xa93   :  { %v3028_v53 = vpop.f32.mrb[68].mxu0 }
 0xa94   :  { %v2843_v40 = vadd.f32 %v3028_v53, %v2985_v29  ;;  %v2834_v13 = vpop.f32.mrb[69].mxu0 }
 0xa95   :  { %v2835_v27 = vadd.f32 %v2985_v29, %v2834_v13  ;;  %v3029_v28 = vpop.f32.mrb[70].mxu0 }
 0xa96   :  { %2855 = vst [vmem:[%s6357_s8 + $0x30] sm:$0xff] %v2843_v40  ;;  %v2846_v17 = vadd.f32 %v3029_v28, %v2985_v29  ;;  %v2837_v9 = vpop.f32.mrb[71].mxu0 }
 0xa97   :  { %2853 = vst [vmem:[%s6357_s8 + $0x20] sm:$0xff] %v2835_v27  ;;  %v2838_v63 = vadd.f32 %v2985_v29, %v2837_v9 }
 0xa98   :  { %2856 = vst [vmem:[%s6357_s8 + $0x38] sm:$0xff] %v2846_v17 }
 0xa99   :  { %2854 = vst [vmem:[%s6357_s8 + $0x28] sm:$0xff] %v2838_v63 }

</bundles_post_ra>
